<compile_context>
chip_gen: v7x
topology: tpu7x:2x2x1
jax: 0.10.0
libtpu: 0.0.40
codegen_flags: <defaults>
</compile_context>

<pallas_src>
import math

import jax
import jax.numpy as jnp
from jax import lax
from jax.experimental import pallas as pl
from jax.experimental.pallas import tpu as pltpu


_INV_SQRT2 = 0.7071067811865476


def _round_up(a, b):
    return (a + b - 1) // b * b


def _elementwise_dtype():
    """bf16 elementwise math on v6e/v7x (packed bf16 VALU/EUP); f32 on older
    generations (v5e and earlier have no bf16 vector ALU)."""
    try:
        kind = jax.devices()[0].device_kind.lower()
    except Exception:
        return jnp.float32
    if any(tag in kind for tag in ("v2", "v3", "v4", "v5")):
        return jnp.float32
    return jnp.bfloat16


def _vmem_limit_bytes():
    """Generation-aware VMEM limit: ~3/4 of physical capacity (96 MiB on
    v5e/v6e with 128 MiB VMEM, 48 MiB on v7x with 64 MiB per core)."""
    try:
        cap = pltpu.get_tpu_info().vmem_capacity_bytes
    except Exception:
        cap = 64 * 1024 * 1024              # conservative: v7x per-core VMEM
    return int(min(3 * cap // 4, 110 * 1024 * 1024))


def _erf_approx(z):
    """erf via Abramowitz & Stegun 7.1.26 (|err| <= 1.5e-7 in f32); add/mul
    plus one EUP exp and one EUP approx-reciprocal.  Runs in z.dtype."""
    p = 0.3275911
    a1, a2, a3, a4, a5 = (0.254829592, -0.284496736, 1.421413741,
                          -1.453152027, 1.061405429)
    za = jnp.abs(z)
    den = 1.0 + p * za
    # EUP approx reciprocal: co-issues with the VALU chain instead of a divide.
    t = pl.reciprocal(den.astype(jnp.float32), approx=True).astype(z.dtype)
    poly = ((((a5 * t + a4) * t + a3) * t + a2) * t + a1) * t
    erf_abs = 1.0 - poly * jnp.exp(-(za * za))
    return jnp.where(z < 0.0, -erf_abs, erf_abs)


def _gelu_exact(h):
    # Matches torch nn.GELU() default (exact erf formulation).
    # TODO(synk): a tanh-approx GELU would be cheaper on v5e but changes the
    # module's math, so the exact erf form is kept on all generations.
    return 0.5 * h * (1.0 + _erf_approx(h * _INV_SQRT2))


# ----------------------------------------------------------------------------
# Fused kernel: Linear(dim->hidden) + GELU + Linear(hidden->dim)
# The hidden dimension is processed in `hk`-wide chunks so the f32 hidden
# intermediate is bounded by tm*hk regardless of hidden_dim.
# ----------------------------------------------------------------------------
def _make_ffn_kernel(n_hchunks, hk, compute_dtype):
    def kernel(x_ref, w1_ref, b1_ref, w2_ref, b2_ref, o_ref, acc_ref):
        # x_ref : (tm, Dp)  bf16 activations
        # w1_ref: (Dp, Hp)  bf16 (torch w1.T, zero padded)  -- grid-invariant
        # b1_ref: (1, Hp)   compute_dtype
        # w2_ref: (Hp, Dp)  bf16 (torch w2.T, zero padded)  -- grid-invariant
        # b2_ref: (1, Dp)   f32
        # o_ref : (tm, Dp)  caller dtype
        # acc_ref: (tm, Dp) f32 scratch accumulator
        acc_ref[...] = jnp.zeros_like(acc_ref)

        def h_chunk(c, carry):
            off = c * hk
            if not isinstance(off, int):
                off = pl.multiple_of(off, 128)
            # MXU matmul #1: bf16 operands, f32 accumulation.
            h = jnp.dot(x_ref[...], w1_ref[:, pl.ds(off, hk)],
                        preferred_element_type=jnp.float32)
            # Bias + exact GELU on VPU/EUP (bf16 on v6e/v7x, f32 on v5e).
            g = _gelu_exact(h.astype(compute_dtype) + b1_ref[:, pl.ds(off, hk)])
            # Dropout(p=0.0) is identity -> nothing to do.
            # MXU matmul #2, accumulated into the f32 VMEM scratch.
            acc_ref[...] += jnp.dot(g.astype(jnp.bfloat16),
                                    w2_ref[pl.ds(off, hk), :],
                                    preferred_element_type=jnp.float32)
            return carry

        if n_hchunks == 1:
            h_chunk(0, 0)
        else:
            lax.fori_loop(0, n_hchunks, h_chunk, 0, unroll=n_hchunks <= 8)

        o_ref[...] = (acc_ref[...] + b2_ref[...]).astype(o_ref.dtype)

    return kernel


def _pick_hk(Hp):
    """Hidden-chunk width: a multiple of 128 dividing Hp, at most 512, so the
    f32 hidden intermediate stays bounded regardless of hidden_dim."""
    for hk in (512, 384, 256, 128):
        if Hp % hk == 0:
            return hk
    return 128


def _pick_tm(M, Dp, Hp, hk, x_bytes, out_bytes, vmem_budget_bytes):
    """Largest row tile whose working set fits the VMEM budget while keeping
    >= 4 grid steps (>= 2 per TensorCore on v7x) so DMA overlaps compute."""
    cap = max(8, _round_up(pl.cdiv(M, 4), 8))
    # Grid-invariant operands are double-buffered by the default BlockSpec
    # pipeline -> count the resident weight/bias blocks twice.
    fixed = 2 * (2 * Dp * Hp * 2) + 2 * (Hp + Dp) * 4
    for tm in (1024, 512, 256, 128, 64, 32, 16, 8):
        if tm > cap:
            continue
        need = (fixed
                + 2 * tm * Dp * x_bytes        # double-buffered input tile
                + 2 * tm * Dp * out_bytes      # double-buffered output tile
                + tm * Dp * 4                  # f32 accumulator scratch
                + 3 * tm * hk * 4)             # hidden chunk + GELU temps
        if need <= vmem_budget_bytes:
            return tm
    return 8


# ----------------------------------------------------------------------------
# One-time parameter preparation (hoisted out of the forward pass)
# ----------------------------------------------------------------------------
def prepare_feedforward_params(params, compute_dtype=None):
    """Pad to lane-dense 128 multiples and cast weights to bf16 ONCE at init,
    so the full f32 weights are not re-read/re-written from HBM every call."""
    if compute_dtype is None:
        compute_dtype = _elementwise_dtype()
    w1 = jnp.asarray(params["w1"])   # (hidden, dim)  torch nn.Linear layout
    b1 = jnp.asarray(params["b1"])   # (hidden,)
    w2 = jnp.asarray(params["w2"])   # (dim, hidden)
    b2 = jnp.asarray(params["b2"])   # (dim,)
    H, D = w1.shape
    Dp = _round_up(D, 128)
    Hp = _round_up(H, 128)
    w1_t = jnp.pad(w1.T.astype(jnp.float32),
                   ((0, Dp - D), (0, Hp - H))).astype(jnp.bfloat16)
    w2_t = jnp.pad(w2.T.astype(jnp.float32),
                   ((0, Hp - H), (0, Dp - D))).astype(jnp.bfloat16)
    b1_p = jnp.pad(b1.astype(jnp.float32), (0, Hp - H)).reshape(1, Hp)
    b2_p = jnp.pad(b2.astype(jnp.float32), (0, Dp - D)).reshape(1, Dp)
    return {
        "w1_t": w1_t,
        "b1_p": b1_p.astype(compute_dtype),
        "w2_t": w2_t,
        "b2_p": b2_p,                        # f32: added to the f32 accumulator
        "dim": D,
        "hidden": H,
        "compute_dtype": compute_dtype,
    }


# ----------------------------------------------------------------------------
# Forward wrapper
# ----------------------------------------------------------------------------
def feedforward_forward(x, prep):
    """x: (B, N, dim) -> (B, N, dim).  Fused Linear -> GELU -> Linear."""
    B, N, D = x.shape
    assert D == prep["dim"], (D, prep["dim"])
    w1_t, b1_p = prep["w1_t"], prep["b1_p"]
    w2_t, b2_p = prep["w2_t"], prep["b2_p"]
    cdt = prep["compute_dtype"]
    Dp, Hp = w1_t.shape

    hk = _pick_hk(Hp)
    n_hchunks = Hp // hk

    M = B * N
    out_dtype = x.dtype
    x_bytes = 2                                  # activations DMA'd as bf16
    out_bytes = x.dtype.itemsize

    vmem_limit = _vmem_limit_bytes()
    tm = _pick_tm(M, Dp, Hp, hk, x_bytes, out_bytes, int(vmem_limit * 0.85))
    Mp = _round_up(M, tm)                        # ragged M -> pad rows

    # bf16 activation DMA: halves the input HBM stream; MXU gets bf16 anyway.
    x_flat = x.reshape(M, D).astype(jnp.bfloat16)
    if (Mp, Dp) != (M, D):
        x_flat = jnp.pad(x_flat, ((0, Mp - M), (0, Dp - D)))

    grid = (Mp // tm,)

    cost = pl.CostEstimate(
        flops=4 * Mp * Dp * Hp,                          # two matmuls
        transcendentals=Mp * Hp,                         # exp in GELU
        bytes_accessed=(Mp * Dp * x_bytes                # x in (bf16)
                        + Mp * Dp * out_bytes            # y out
                        + 2 * Dp * Hp * 2                # bf16 weights
                        + (Hp + Dp) * 4),                # biases
    )

    kernel = _make_ffn_kernel(n_hchunks, hk, cdt)

    out = pl.pallas_call(
        kernel,
        out_shape=jax.ShapeDtypeStruct((Mp, Dp), out_dtype),
        grid_spec=pltpu.PrefetchScalarGridSpec(
            num_scalar_prefetch=0,
            grid=grid,
            in_specs=[
                pl.BlockSpec((tm, Dp), lambda i: (i, 0)),   # x row tile
                pl.BlockSpec((Dp, Hp), lambda i: (0, 0)),   # w1 (resident)
                pl.BlockSpec((1, Hp), lambda i: (0, 0)),    # b1
                pl.BlockSpec((Hp, Dp), lambda i: (0, 0)),   # w2 (resident)
                pl.BlockSpec((1, Dp), lambda i: (0, 0)),    # b2
            ],
            out_specs=pl.BlockSpec((tm, Dp), lambda i: (i, 0)),
            scratch_shapes=[pltpu.VMEM((tm, Dp), jnp.float32)],
        ),
        compiler_params=pltpu.CompilerParams(
            dimension_semantics=("parallel",),
            vmem_limit_bytes=vmem_limit,
        ),
        cost_estimate=cost,
    )(x_flat, w1_t, b1_p, w2_t, b2_p)

    return out[:M, :D].reshape(B, N, D)


# ----------------------------------------------------------------------------
# Pure-JAX reference (f32) for verification
# ----------------------------------------------------------------------------
def feedforward_ref(x, params):
    xf = x.astype(jnp.float32)
    h = xf @ params["w1"].T.astype(jnp.float32) + params["b1"].astype(jnp.float32)
    h = jax.nn.gelu(h, approximate=False)        # exact erf GELU (torch default)
    y = h @ params["w2"].T.astype(jnp.float32) + params["b2"].astype(jnp.float32)
    return y


# ----------------------------------------------------------------------------
# Main
# ----------------------------------------------------------------------------
if __name__ == "__main__":
    # Small config consistent with the module.  dim / hidden chosen as
    # multiples of 256 so the MXU contraction/output dims are full-width on
    # v6e/v7x, and hidden=1024 exercises the chunked (hk=512) hidden path.
    B, N, dim, hidden_dim = 2, 128, 256, 1024

    key = jax.random.PRNGKey(0)
    kx, kw1, kb1, kw2, kb2 = jax.random.split(key, 5)

    x = jax.random.normal(kx, (B, N, dim), dtype=jnp.float32)

    # Parameters with nn.Linear-style init bounds and torch weight layouts.
    bound1 = 1.0 / math.sqrt(dim)
    bound2 = 1.0 / math.sqrt(hidden_dim)
    params = {
        "w1": jax.random.uniform(kw1, (hidden_dim, dim),
                                 minval=-bound1, maxval=bound1, dtype=jnp.float32),
        "b1": jax.random.uniform(kb1, (hidden_dim,),
                                 minval=-bound1, maxval=bound1, dtype=jnp.float32),
        "w2": jax.random.uniform(kw2, (dim, hidden_dim),
                                 minval=-bound2, maxval=bound2, dtype=jnp.float32),
        "b2": jax.random.uniform(kb2, (dim,),
                                 minval=-bound2, maxval=bound2, dtype=jnp.float32),
    }

    prep = prepare_feedforward_params(params)    # one-time pad + bf16 cast
    out = feedforward_forward(x, prep)
    out = jax.block_until_ready(out)

    ref = feedforward_ref(x, params)
    assert out.shape == (B, N, dim), out.shape
    max_err = float(jnp.max(jnp.abs(out - ref)))
    # bf16 MXU operands + f32 accumulation everywhere; v6e/v7x additionally do
    # the GELU chain in bf16, so allow a slightly looser (still bf16-level) tol.
    tol = 2e-2 if prep["compute_dtype"] == jnp.float32 else 4e-2
    assert max_err < tol, max_err

    print("KERNEL_OK")
</pallas_src>

<mosaic_0001>
module attributes {stable_mosaic.version = 11 : i64} {
  func.func @kernel(%arg0: i32, %arg1: memref<64x256xbf16, #tpu.memory_space<vmem>>, %arg2: memref<256x1024xbf16, #tpu.memory_space<vmem>>, %arg3: memref<1x1024xbf16, #tpu.memory_space<vmem>>, %arg4: memref<1024x256xbf16, #tpu.memory_space<vmem>>, %arg5: memref<1x256xf32, #tpu.memory_space<vmem>>, %arg6: memref<64x256xf32, #tpu.memory_space<vmem>>, %arg7: memref<64x256xf32, #tpu.memory_space<vmem>>) attributes {dimension_semantics = [#tpu.dimension_semantics<parallel>], iteration_bounds = array<i64: 4>, scalar_prefetch = 0 : i64, scratch_operands = 1 : i64, tpu.core_type = #tpu.core_type<tc>, window_params = [{transform_indices = @transform_0, window_bounds = array<i64: 64, 256>}, {pipeline_mode = #tpu.pipeline_mode<synchronous>, transform_indices = @transform_1, window_bounds = array<i64: 256, 1024>}, {pipeline_mode = #tpu.pipeline_mode<synchronous>, transform_indices = @transform_2, window_bounds = array<i64: 1, 1024>}, {pipeline_mode = #tpu.pipeline_mode<synchronous>, transform_indices = @transform_3, window_bounds = array<i64: 1024, 256>}, {pipeline_mode = #tpu.pipeline_mode<synchronous>, transform_indices = @transform_4, window_bounds = array<i64: 1, 256>}, {transform_indices = @transform_5, window_bounds = array<i64: 64, 256>}]} {
    %cst = arith.constant 0.000000e+00 : f32
    %0 = vector.broadcast %cst : f32 to vector<64x256xf32>
    %c0 = arith.constant 0 : index
    %c0_0 = arith.constant 0 : index
    %1 = vector.load %arg7[%c0, %c0_0] : memref<64x256xf32, #tpu.memory_space<vmem>>, vector<64x256xf32>
    tpu.vector_store %arg7[%c0, %c0_0], %0 {strides = array<i32>} : memref<64x256xf32, #tpu.memory_space<vmem>>, vector<64x256xf32>,
    %c0_i32 = arith.constant 0 : i32
    %c512_i32 = arith.constant 512 : i32
    %2 = arith.muli %c0_i32, %c512_i32 : i32
    %3 = tpu.assume_multiple %2, 128 : i32
    %c0_1 = arith.constant 0 : index
    %c0_2 = arith.constant 0 : index
    %4 = vector.load %arg1[%c0_1, %c0_2] : memref<64x256xbf16, #tpu.memory_space<vmem>>, vector<64x256xbf16>
    %c0_3 = arith.constant 0 : index
    %5 = arith.index_cast %3 : i32 to index
    %6 = vector.load %arg2[%c0_3, %5] : memref<256x1024xbf16, #tpu.memory_space<vmem>>, vector<256x512xbf16>
    %cst_4 = arith.constant dense<0.000000e+00> : vector<64x512xf32>
    %7 = tpu.matmul %4, %6, %cst_4 {dimension_numbers = #tpu.dot_dimension_numbers<[1], [0], [0], [1], [0, 0, 1, 1], [], []>} : vector<64x256xbf16>, vector<256x512xbf16>, vector<64x512xf32> -> vector<64x512xf32>
    %8 = arith.truncf %7 : vector<64x512xf32> to vector<64x512xbf16>
    %c0_5 = arith.constant 0 : index
    %9 = arith.index_cast %3 : i32 to index
    %10 = vector.load %arg3[%c0_5, %9] : memref<1x1024xbf16, #tpu.memory_space<vmem>>, vector<1x512xbf16>
    %11 = vector.broadcast %10 : vector<1x512xbf16> to vector<64x512xbf16>
    %12 = arith.addf %8, %11 : vector<64x512xbf16>
    %cst_6 = arith.constant 5.000000e-01 : bf16
    %13 = vector.broadcast %cst_6 : bf16 to vector<64x512xbf16>
    %14 = arith.mulf %13, %12 : vector<64x512xbf16>
    %cst_7 = arith.constant 7.070310e-01 : bf16
    %15 = vector.broadcast %cst_7 : bf16 to vector<64x512xbf16>
    %16 = arith.mulf %12, %15 : vector<64x512xbf16>
    %17 = math.absf %16 : vector<64x512xbf16>
    %cst_8 = arith.constant 3.281250e-01 : bf16
    %18 = vector.broadcast %cst_8 : bf16 to vector<64x512xbf16>
    %19 = arith.mulf %18, %17 : vector<64x512xbf16>
    %cst_9 = arith.constant 1.000000e+00 : bf16
    %20 = vector.broadcast %cst_9 : bf16 to vector<64x512xbf16>
    %21 = arith.addf %20, %19 : vector<64x512xbf16>
    %22 = arith.extf %21 : vector<64x512xbf16> to vector<64x512xf32>
    %23 = tpu.reciprocal %22 {approx = true} : vector<64x512xf32> -> vector<64x512xf32>
    %24 = arith.truncf %23 : vector<64x512xf32> to vector<64x512xbf16>
    %cst_10 = arith.constant 1.062500e+00 : bf16
    %25 = vector.broadcast %cst_10 : bf16 to vector<64x512xbf16>
    %26 = arith.mulf %25, %24 : vector<64x512xbf16>
    %cst_11 = arith.constant -1.453130e+00 : bf16
    %27 = vector.broadcast %cst_11 : bf16 to vector<64x512xbf16>
    %28 = arith.addf %26, %27 : vector<64x512xbf16>
    %29 = arith.mulf %28, %24 : vector<64x512xbf16>
    %cst_12 = arith.constant 1.421880e+00 : bf16
    %30 = vector.broadcast %cst_12 : bf16 to vector<64x512xbf16>
    %31 = arith.addf %29, %30 : vector<64x512xbf16>
    %32 = arith.mulf %31, %24 : vector<64x512xbf16>
    %cst_13 = arith.constant -2.851560e-01 : bf16
    %33 = vector.broadcast %cst_13 : bf16 to vector<64x512xbf16>
    %34 = arith.addf %32, %33 : vector<64x512xbf16>
    %35 = arith.mulf %34, %24 : vector<64x512xbf16>
    %cst_14 = arith.constant 2.539060e-01 : bf16
    %36 = vector.broadcast %cst_14 : bf16 to vector<64x512xbf16>
    %37 = arith.addf %35, %36 : vector<64x512xbf16>
    %38 = arith.mulf %37, %24 : vector<64x512xbf16>
    %39 = arith.mulf %17, %17 : vector<64x512xbf16>
    %cst_15 = arith.constant 0.000000e+00 : bf16
    %40 = vector.broadcast %cst_15 : bf16 to vector<64x512xbf16>
    %41 = arith.subf %40, %39 : vector<64x512xbf16>
    %42 = math.exp %41 : vector<64x512xbf16>
    %43 = arith.mulf %38, %42 : vector<64x512xbf16>
    %cst_16 = arith.constant 1.000000e+00 : bf16
    %44 = vector.broadcast %cst_16 : bf16 to vector<64x512xbf16>
    %45 = arith.subf %44, %43 : vector<64x512xbf16>
    %cst_17 = arith.constant 0.000000e+00 : bf16
    %46 = vector.broadcast %cst_17 : bf16 to vector<64x512xbf16>
    %47 = arith.cmpf olt, %16, %46 : vector<64x512xbf16>
    %cst_18 = arith.constant 0.000000e+00 : bf16
    %48 = vector.broadcast %cst_18 : bf16 to vector<64x512xbf16>
    %49 = arith.subf %48, %45 : vector<64x512xbf16>
    %50 = arith.select %47, %49, %45 : vector<64x512xi1>, vector<64x512xbf16>
    %cst_19 = arith.constant 1.000000e+00 : bf16
    %51 = vector.broadcast %cst_19 : bf16 to vector<64x512xbf16>
    %52 = arith.addf %51, %50 : vector<64x512xbf16>
    %53 = arith.mulf %14, %52 : vector<64x512xbf16>
    %c0_20 = arith.constant 0 : index
    %c0_21 = arith.constant 0 : index
    %54 = vector.load %arg7[%c0_20, %c0_21] : memref<64x256xf32, #tpu.memory_space<vmem>>, vector<64x256xf32>
    %55 = arith.index_cast %3 : i32 to index
    %c0_22 = arith.constant 0 : index
    %56 = vector.load %arg4[%55, %c0_22] : memref<1024x256xbf16, #tpu.memory_space<vmem>>, vector<512x256xbf16>
    %cst_23 = arith.constant dense<0.000000e+00> : vector<64x256xf32>
    %57 = tpu.matmul %53, %56, %cst_23 {dimension_numbers = #tpu.dot_dimension_numbers<[1], [0], [0], [1], [0, 0, 1, 1], [], []>} : vector<64x512xbf16>, vector<512x256xbf16>, vector<64x256xf32> -> vector<64x256xf32>
    %58 = arith.addf %54, %57 : vector<64x256xf32>
    %c0_24 = arith.constant 0 : index
    %c0_25 = arith.constant 0 : index
    %59 = vector.load %arg7[%c0_24, %c0_25] : memref<64x256xf32, #tpu.memory_space<vmem>>, vector<64x256xf32>
    tpu.vector_store %arg7[%c0_24, %c0_25], %58 {strides = array<i32>} : memref<64x256xf32, #tpu.memory_space<vmem>>, vector<64x256xf32>,
    %c1_i32 = arith.constant 1 : i32
    %c512_i32_26 = arith.constant 512 : i32
    %60 = arith.muli %c1_i32, %c512_i32_26 : i32
    %61 = tpu.assume_multiple %60, 128 : i32
    %c0_27 = arith.constant 0 : index
    %c0_28 = arith.constant 0 : index
    %62 = vector.load %arg1[%c0_27, %c0_28] : memref<64x256xbf16, #tpu.memory_space<vmem>>, vector<64x256xbf16>
    %c0_29 = arith.constant 0 : index
    %63 = arith.index_cast %61 : i32 to index
    %64 = vector.load %arg2[%c0_29, %63] : memref<256x1024xbf16, #tpu.memory_space<vmem>>, vector<256x512xbf16>
    %cst_30 = arith.constant dense<0.000000e+00> : vector<64x512xf32>
    %65 = tpu.matmul %62, %64, %cst_30 {dimension_numbers = #tpu.dot_dimension_numbers<[1], [0], [0], [1], [0, 0, 1, 1], [], []>} : vector<64x256xbf16>, vector<256x512xbf16>, vector<64x512xf32> -> vector<64x512xf32>
    %66 = arith.truncf %65 : vector<64x512xf32> to vector<64x512xbf16>
    %c0_31 = arith.constant 0 : index
    %67 = arith.index_cast %61 : i32 to index
    %68 = vector.load %arg3[%c0_31, %67] : memref<1x1024xbf16, #tpu.memory_space<vmem>>, vector<1x512xbf16>
    %69 = vector.broadcast %68 : vector<1x512xbf16> to vector<64x512xbf16>
    %70 = arith.addf %66, %69 : vector<64x512xbf16>
    %cst_32 = arith.constant 5.000000e-01 : bf16
    %71 = vector.broadcast %cst_32 : bf16 to vector<64x512xbf16>
    %72 = arith.mulf %71, %70 : vector<64x512xbf16>
    %cst_33 = arith.constant 7.070310e-01 : bf16
    %73 = vector.broadcast %cst_33 : bf16 to vector<64x512xbf16>
    %74 = arith.mulf %70, %73 : vector<64x512xbf16>
    %75 = math.absf %74 : vector<64x512xbf16>
    %cst_34 = arith.constant 3.281250e-01 : bf16
    %76 = vector.broadcast %cst_34 : bf16 to vector<64x512xbf16>
    %77 = arith.mulf %76, %75 : vector<64x512xbf16>
    %cst_35 = arith.constant 1.000000e+00 : bf16
    %78 = vector.broadcast %cst_35 : bf16 to vector<64x512xbf16>
    %79 = arith.addf %78, %77 : vector<64x512xbf16>
    %80 = arith.extf %79 : vector<64x512xbf16> to vector<64x512xf32>
    %81 = tpu.reciprocal %80 {approx = true} : vector<64x512xf32> -> vector<64x512xf32>
    %82 = arith.truncf %81 : vector<64x512xf32> to vector<64x512xbf16>
    %cst_36 = arith.constant 1.062500e+00 : bf16
    %83 = vector.broadcast %cst_36 : bf16 to vector<64x512xbf16>
    %84 = arith.mulf %83, %82 : vector<64x512xbf16>
    %cst_37 = arith.constant -1.453130e+00 : bf16
    %85 = vector.broadcast %cst_37 : bf16 to vector<64x512xbf16>
    %86 = arith.addf %84, %85 : vector<64x512xbf16>
    %87 = arith.mulf %86, %82 : vector<64x512xbf16>
    %cst_38 = arith.constant 1.421880e+00 : bf16
    %88 = vector.broadcast %cst_38 : bf16 to vector<64x512xbf16>
    %89 = arith.addf %87, %88 : vector<64x512xbf16>
    %90 = arith.mulf %89, %82 : vector<64x512xbf16>
    %cst_39 = arith.constant -2.851560e-01 : bf16
    %91 = vector.broadcast %cst_39 : bf16 to vector<64x512xbf16>
    %92 = arith.addf %90, %91 : vector<64x512xbf16>
    %93 = arith.mulf %92, %82 : vector<64x512xbf16>
    %cst_40 = arith.constant 2.539060e-01 : bf16
    %94 = vector.broadcast %cst_40 : bf16 to vector<64x512xbf16>
    %95 = arith.addf %93, %94 : vector<64x512xbf16>
    %96 = arith.mulf %95, %82 : vector<64x512xbf16>
    %97 = arith.mulf %75, %75 : vector<64x512xbf16>
    %cst_41 = arith.constant 0.000000e+00 : bf16
    %98 = vector.broadcast %cst_41 : bf16 to vector<64x512xbf16>
    %99 = arith.subf %98, %97 : vector<64x512xbf16>
    %100 = math.exp %99 : vector<64x512xbf16>
    %101 = arith.mulf %96, %100 : vector<64x512xbf16>
    %cst_42 = arith.constant 1.000000e+00 : bf16
    %102 = vector.broadcast %cst_42 : bf16 to vector<64x512xbf16>
    %103 = arith.subf %102, %101 : vector<64x512xbf16>
    %cst_43 = arith.constant 0.000000e+00 : bf16
    %104 = vector.broadcast %cst_43 : bf16 to vector<64x512xbf16>
    %105 = arith.cmpf olt, %74, %104 : vector<64x512xbf16>
    %cst_44 = arith.constant 0.000000e+00 : bf16
    %106 = vector.broadcast %cst_44 : bf16 to vector<64x512xbf16>
    %107 = arith.subf %106, %103 : vector<64x512xbf16>
    %108 = arith.select %105, %107, %103 : vector<64x512xi1>, vector<64x512xbf16>
    %cst_45 = arith.constant 1.000000e+00 : bf16
    %109 = vector.broadcast %cst_45 : bf16 to vector<64x512xbf16>
    %110 = arith.addf %109, %108 : vector<64x512xbf16>
    %111 = arith.mulf %72, %110 : vector<64x512xbf16>
    %c0_46 = arith.constant 0 : index
    %c0_47 = arith.constant 0 : index
    %112 = vector.load %arg7[%c0_46, %c0_47] : memref<64x256xf32, #tpu.memory_space<vmem>>, vector<64x256xf32>
    %113 = arith.index_cast %61 : i32 to index
    %c0_48 = arith.constant 0 : index
    %114 = vector.load %arg4[%113, %c0_48] : memref<1024x256xbf16, #tpu.memory_space<vmem>>, vector<512x256xbf16>
    %cst_49 = arith.constant dense<0.000000e+00> : vector<64x256xf32>
    %115 = tpu.matmul %111, %114, %cst_49 {dimension_numbers = #tpu.dot_dimension_numbers<[1], [0], [0], [1], [0, 0, 1, 1], [], []>} : vector<64x512xbf16>, vector<512x256xbf16>, vector<64x256xf32> -> vector<64x256xf32>
    %116 = arith.addf %112, %115 : vector<64x256xf32>
    %c0_50 = arith.constant 0 : index
    %c0_51 = arith.constant 0 : index
    %117 = vector.load %arg7[%c0_50, %c0_51] : memref<64x256xf32, #tpu.memory_space<vmem>>, vector<64x256xf32>
    tpu.vector_store %arg7[%c0_50, %c0_51], %116 {strides = array<i32>} : memref<64x256xf32, #tpu.memory_space<vmem>>, vector<64x256xf32>,
    %c2_i32 = arith.constant 2 : i32
    %c0_52 = arith.constant 0 : index
    %c0_53 = arith.constant 0 : index
    %118 = vector.load %arg7[%c0_52, %c0_53] : memref<64x256xf32, #tpu.memory_space<vmem>>, vector<64x256xf32>
    %c0_54 = arith.constant 0 : index
    %c0_55 = arith.constant 0 : index
    %119 = vector.load %arg5[%c0_54, %c0_55] : memref<1x256xf32, #tpu.memory_space<vmem>>, vector<1x256xf32>
    %120 = vector.broadcast %119 : vector<1x256xf32> to vector<64x256xf32>
    %121 = arith.addf %118, %120 : vector<64x256xf32>
    %c0_56 = arith.constant 0 : index
    %c0_57 = arith.constant 0 : index
    %122 = vector.load %arg6[%c0_56, %c0_57] : memref<64x256xf32, #tpu.memory_space<vmem>>, vector<64x256xf32>
    tpu.vector_store %arg6[%c0_56, %c0_57], %121 {strides = array<i32>} : memref<64x256xf32, #tpu.memory_space<vmem>>, vector<64x256xf32>,
    return
  }
  func.func @transform_0(%arg0: i32) -> (i32, i32) {
    %c0_i32 = arith.constant 0 : i32
    %c0_i32_0 = arith.constant 0 : i32
    return %arg0, %c0_i32 : i32, i32
  }
  func.func @transform_1(%arg0: i32) -> (i32, i32) {
    %c0_i32 = arith.constant 0 : i32
    %c0_i32_0 = arith.constant 0 : i32
    %c0_i32_1 = arith.constant 0 : i32
    return %c0_i32, %c0_i32_0 : i32, i32
  }
  func.func @transform_2(%arg0: i32) -> (i32, i32) {
    %c0_i32 = arith.constant 0 : i32
    %c0_i32_0 = arith.constant 0 : i32
    %c0_i32_1 = arith.constant 0 : i32
    return %c0_i32, %c0_i32_0 : i32, i32
  }
  func.func @transform_3(%arg0: i32) -> (i32, i32) {
    %c0_i32 = arith.constant 0 : i32
    %c0_i32_0 = arith.constant 0 : i32
    %c0_i32_1 = arith.constant 0 : i32
    return %c0_i32, %c0_i32_0 : i32, i32
  }
  func.func @transform_4(%arg0: i32) -> (i32, i32) {
    %c0_i32 = arith.constant 0 : i32
    %c0_i32_0 = arith.constant 0 : i32
    %c0_i32_1 = arith.constant 0 : i32
    return %c0_i32, %c0_i32_0 : i32, i32
  }
  func.func @transform_5(%arg0: i32) -> (i32, i32) {
    %c0_i32 = arith.constant 0 : i32
    %c0_i32_0 = arith.constant 0 : i32
    return %arg0, %c0_i32 : i32, i32
  }
}

</mosaic_0001>

<bundles_post_ra>
// kernel: tpu_custom_call.1
= control target key start
LH: loop header
LB: loop body
LE: loop exit
PB: predicated region body
PF: predicated region fallthrough
CT: control target
= control target key end

     0   :  { %10 = vsyncpa [#allocation4], 0  ;;  %s6351_s0 = inlined_call_operand.hbm [shape: bf16[256,256], index: 0, kind: input, shape index: {}]   ;;  %s6352_s1 = inlined_call_operand.hbm [shape: bf16[256,1024], index: 1, kind: input, shape index: {}]   ;;  %s6353_s2 = inlined_call_operand.hbm [shape: bf16[1,1024], index: 2, kind: input, shape index: {}]   ;;  %s6354_s3 = inlined_call_operand.hbm [shape: bf16[1024,256], index: 3, kind: input, shape index: {}]   ;;  %s6355_s4 = inlined_call_operand.vmem [shape: f32[1,256], index: 4, kind: input, shape index: {}]   ;;  %s6356_s5 = inlined_call_operand.hbm [shape: f32[256,256], index: 5, kind: output, shape index: {}]  }
   0x1   :  { %12 = vsyncpa [#allocation4 + $0x1], 0 }
   0x2   :  { %13 = vsyncpa [#allocation7], 0 }
   0x3   :  { %14 = vsyncpa [#allocation10], 0 }
   0x4   :  { %15 = vsyncpa [#allocation5], 0 }
   0x5   :  { %17 = vsyncpa [#allocation5 + $0x1], 0  ;;  %s5037_s18 = smov 0   ;;  %s5039_s19 = smov 0  }
   0x6   :  { %s5041_s20 = smov 0   ;;  %s5043_s21 = smov 0  }
   0x7 LB: > { %s5058_s22 = sadd.s32 4294967295, %s4993_s21   ;;  %s3976_s23 = sadd.s32 4294967294, %s4993_s21   ;;  %s4993_s21 = sphi %s5043_s21, %s6416_s21   ;;  %s4989_s20 = sphi %s5041_s20, %s6415_s20   ;;  %s4985_s19 = sphi %s5039_s19, %s6414_s19   ;;  %s4981_s18 = sphi %s5037_s18, %s6413_s18  }
   0x8   : > { %p43_p0 = scmp.ne.s32.totalorder %s4985_s19, %s4981_s18  ;;  %p6357_p1 = scmp.eq.s32.totalorder %s5058_s22, 0 }
   0x9   : > { %p157_p3 = scmp.eq.s32.totalorder %s3976_s23, 3  ;;  %p3977_p5 = scmp.ge.s32.totalorder %s4993_s21, 1 }
   0xa   : > { %p5067_p4 = por %p6357_p1, %p43_p0  ;;  %p164_p7 = scmp.lt.s32.totalorder %s4993_s21, 5 }
   0xb   : > { %p5072_p6 = por %p157_p3, %p43_p0  ;;  %s4995_s27 = smov [#allocation6]  }
   0xc   : > { %s6360_s24 = scalar_select %p5067_p4, 1, 0 }
   0xd   : > { %s6361_s25 = scalar_select %p5072_p6, 1, 0 }
   0xe   : > { %p5077_p8 = pnand %p3977_p5, %p164_p7  ;;  %s176_s28 = sshll.u32 %s4995_s27, 4  ;;  %s5081_s28 = int_to_ptr.vmem [resolvable:$true] %s176_s28 }
   0xf   : > { %s4996_s30 = smov [#allocation8]   ;;  %s4997_s7 = smov [#allocation9]  }
  0x10   : > { %s6362_s26 = scalar_select %p5077_p8, 1, 0 }
  0x11   : > { %p4340_p9 = pneg %p5077_p8  ;;  %s190_s6 = sshll.u32 %s4996_s30, 4  ;;  %s5091_s6 = int_to_ptr.vmem [resolvable:$true] %s190_s6 }
  0x12   : > { %s5093_s8 = sshll.u32 %s4997_s7, 4  ;;  %s4805_s11 = scalar_lea.hbm %s6352_s1, 16384  ;;  %s201_s8 = int_to_ptr.vmem [resolvable:$true] %s5093_s8 }
  0x13   : > { %p5087_p10 = pnand %p4340_p9, %p6357_p1  ;;  %p4806_p11 = scmp.ne.s32.totalorder %s6352_s1, %s4805_s11 }
  0x14   : > { %p4812_p3 = scmp.lt.u32.totalorder %s4805_s11, %s6352_s1 }
  0x15   : > { %p5103_p12 = pneg %p5087_p10 }
  0x17   : > { %p4808_p13 = pnand %p5103_p12, %p4806_p11 }
  0x19   : > { %p4809_p0 = pneg %p4808_p13 }
  0x1b   : > { %p4814_p5 = pnand %p4812_p3, %p4809_p0 }
  0x1d   : > { %4817 = shalt.err (!%p4814_p5)
}
  0x1e   : > { %s4818_s17 = scalar_lea.vmem %s5081_s28, 16384  ;;  %p4826_p2 = scmp.lt.s32.totalorder %s5081_s28, %s5081_s28 }
  0x1f   : > { %p4819_p7 = scmp.ne.s32.totalorder %s5081_s28, %s4818_s17  ;;  %p4827_p6 = scmp.lt.s32.totalorder %s4818_s17, %s4818_s17 }
  0x21   : > { %p4821_p9 = pnand %p4819_p7, %p5103_p12  ;;  %p4828_p11 = por %p4827_p6, %p4826_p2 }
  0x23   : > { %p4822_p1 = pneg %p4821_p9 }
  0x25   : > { %p4829_p13 = pnand %p4828_p11, %p4822_p1 }
  0x27   : > { %4832 = shalt.err (!%p4829_p13)
}
  0x28   : > { %s4998_s23 = smov 512   ;;  %s4999_s27 = smov 32  }
  0x29   : > { %4343 = dma.hbm_to_vmem [thread:$0]  (!%p5087_p10), %s6352_s1, 16384, %s5081_s28, [#allocation7], %s4998_s23, %s4998_s23, %s4999_s27  }
  0x2a   : > { %s4833_s11 = scalar_lea.hbm %s6353_s2, 128 }
  0x2b   : > { %p4834_p2 = scmp.ne.s32.totalorder %s6353_s2, %s4833_s11  ;;  %p4840_p0 = scmp.lt.u32.totalorder %s4833_s11, %s6353_s2 }
  0x2d   : > { %p4836_p1 = pnand %p4834_p2, %p5103_p12 }
  0x2f   : > { %p4837_p6 = pneg %p4836_p1 }
  0x31   : > { %p4842_p3 = pnand %p4840_p0, %p4837_p6 }
  0x33   : > { %4845 = shalt.err (!%p4842_p3)
}
  0x34   : > { %s4846_s28 = scalar_lea.vmem %s5091_s6, 128  ;;  %p4854_p11 = scmp.lt.s32.totalorder %s5091_s6, %s5091_s6 }
  0x35   : > { %p4847_p5 = scmp.ne.s32.totalorder %s5091_s6, %s4846_s28  ;;  %p4855_p13 = scmp.lt.s32.totalorder %s4846_s28, %s4846_s28 }
  0x37   : > { %p4849_p7 = pnand %p4847_p5, %p5103_p12  ;;  %p4856_p2 = por %p4855_p13, %p4854_p11 }
  0x39   : > { %p4850_p9 = pneg %p4849_p7 }
  0x3b   : > { %p4857_p1 = pnand %p4856_p2, %p4850_p9 }
  0x3d   : > { %4860 = shalt.err (!%p4857_p1)
}
  0x3e   : > { %4346 = dma.hbm_to_vmem [thread:$0]  (!%p5087_p10), %s6353_s2, 128, %s5091_s6, [#allocation7]  }
  0x3f   : > { %s4861_s7 = scalar_lea.hbm %s6354_s3, 16384 }
  0x40   : > { %p4862_p6 = scmp.ne.s32.totalorder %s6354_s3, %s4861_s7  ;;  %p4868_p5 = scmp.lt.u32.totalorder %s4861_s7, %s6354_s3 }
  0x42   : > { %p4864_p0 = pnand %p4862_p6, %p5103_p12 }
  0x44   : > { %p4865_p3 = pneg %p4864_p0 }
  0x46   : > { %p4870_p7 = pnand %p4868_p5, %p4865_p3 }
  0x48   : > { %4873 = shalt.err (!%p4870_p7)
}
  0x49   : > { %s4874_s13 = scalar_lea.vmem %s201_s8, 16384  ;;  %p4882_p2 = scmp.lt.s32.totalorder %s201_s8, %s201_s8 }
  0x4a   : > { %p4875_p9 = scmp.ne.s32.totalorder %s201_s8, %s4874_s13  ;;  %p4883_p1 = scmp.lt.s32.totalorder %s4874_s13, %s4874_s13 }
  0x4c   : > { %p4877_p11 = pnand %p4875_p9, %p5103_p12  ;;  %p4884_p4 = por %p4883_p1, %p4882_p2 }
  0x4e   : > { %p4878_p13 = pneg %p4877_p11 }
  0x50   : > { %p4885_p8 = pnand %p4884_p4, %p4878_p13 }
  0x52   : > { %4888 = shalt.err (!%p4885_p8)
}
  0x53   : > { %s5000_s6 = smov 128   ;;  %s5001_s14 = smov 8  }
  0x54   : > { %4349 = dma.hbm_to_vmem [thread:$0]  (!%p5087_p10), %s6354_s3, 16384, %s201_s8, [#allocation10], %s5000_s6, %s5000_s6, %s5001_s14  }
  0x55   : > { %s5170_s28 = sadd.s32 1, %s4993_s21   ;;  %s30_s23 = sadd.s32 1, %s4989_s20 }
  0x56   : > { %s27_s17 = ssub.s32 %s4993_s21, %s5170_s28  ;;  %p37_p8 = scmp.ne.s32.totalorder %s4989_s20, %s4985_s19 }
  0x57   : > { %p28_p4 = scmp.eq.s32.totalorder %s27_s17, 0  ;;  %p38_p12 = scmp.eq.s32.totalorder %s4993_s21, 0 }
  0x58   : > { %p4361_p6 = scmp.lt.s32.totalorder %s4993_s21, 4  ;;  %p6365_p3 = scmp.eq.s32.totalorder %s5058_s22, 3 }
  0x59   : > { %s5180_s27 = scalar_select %p28_p4, %s4989_s20, %s30_s23  }
  0x5a   : > { %p39_p0 = por %p38_p12, %p37_p8  ;;  %p5184_p5 = por %p6365_p3, %p37_p8 }
  0x5b   : > { %s217_s30 = sand.u32 1, %s4989_s20   ;;  %s4273_s7 = sshll.u32 %s4993_s21, 10 }
  0x5c   : > { %s3982_s8 = sshll.u32 %s217_s30, 6  ;;  %s5193_s11 = scalar_lea.hbm %s6351_s0, %s4273_s7 }
  0x5d   : > { %s221_s12 = scalar_lea.vmem [#allocation3], %s3982_s8  ;;  %p5195_p10 = pnand %p4361_p6, %p39_p0 }
  0x5e   : > { %s229_s13 = sshll.u32 %s221_s12, 4  ;;  %s5201_s16 = scalar_lea.sflag [#allocation4], %s217_s30  ;;  %s5199_s13 = int_to_ptr.vmem [resolvable:$true] %s229_s13 }
  0x5f   : > { %s4889_s17 = scalar_lea.hbm %s5193_s11, 1024  ;;  %p4891_p9 = pneg %p5195_p10 }
  0x60   : > { %p4890_p7 = scmp.ne.s32.totalorder %s5193_s11, %s4889_s17  ;;  %s4894_s8 = scalar_lea.hbm %s6351_s0, 4096 }
  0x61   : > { %p4895_p2 = scmp.lt.u32.totalorder %s5193_s11, %s6351_s0  ;;  %p4896_p1 = scmp.lt.u32.totalorder %s4894_s8, %s4889_s17 }
  0x62   : > { %p4892_p11 = pnand %p4891_p9, %p4890_p7  ;;  %p4898_p8 = scmp.lt.u32.totalorder %s4889_s17, %s5193_s11 }
  0x63   : > { %p4897_p4 = por %p4896_p1, %p4895_p2 }
  0x64   : > { %p4893_p13 = pneg %p4892_p11 }
  0x65   : > { %p4899_p12 = por %p4898_p8, %p4897_p4 }
  0x67   : > { %p4900_p6 = pnand %p4899_p12, %p4893_p13 }
  0x69   : > { %4903 = shalt.err (!%p4900_p6)
}
  0x6a   : > { %s4904_s30 = scalar_lea.vmem %s5199_s13, 1024  ;;  %s5002_s12 = smov [#allocation3]  }
  0x6b   : > { %p4905_p0 = scmp.ne.s32.totalorder %s5199_s13, %s4904_s30  ;;  %s4909_s23 = sshll.u32 %s5002_s12, 4  ;;  %s4910_s23 = int_to_ptr.vmem [resolvable:$false] %s4909_s23 }
  0x6c   : > { %s4911_s7 = scalar_lea.vmem %s4910_s23, 2048  ;;  %p4912_p11 = scmp.lt.s32.totalorder %s5199_s13, %s4910_s23 }
  0x6d   : > { %p4907_p3 = pnand %p4905_p0, %p4891_p9  ;;  %p4913_p2 = scmp.lt.s32.totalorder %s4911_s7, %s4904_s30 }
  0x6f   : > { %p4908_p7 = pneg %p4907_p3  ;;  %p4914_p1 = por %p4913_p2, %p4912_p11 }
  0x71   : > { %p4915_p4 = pnand %p4914_p1, %p4908_p7 }
  0x73   : > { %4918 = shalt.err (!%p4915_p4)
}
  0x74   : > { %4353 = dma.hbm_to_vmem [thread:$0]  (!%p5195_p10), %s5193_s11, 1024, %s5199_s13, %s5201_s16, %s5000_s6, %s5000_s6, %s5001_s14  }
  0x75   : > { %p6368_p9 = scmp.ne.s32.totalorder %s6362_s26, 0 }
  0x76   : > { %s5235_s17 = sand.u32 (!%p6368_p9), 1, %s4985_s19   ;;  %p6369_p13 = scmp.ne.s32.totalorder (!%p6368_p9), %s6360_s24, 0 }
  0x77   : > { %241 = sbr.rel (%p6368_p9) target bundleno = 935 (0x3a7), region = 40  ;;  %s3987_s8 = sshll.u32 (!%p6368_p9), %s5235_s17, 6 }
  0x78   : > { %s244_s9 = scalar_lea.sflag (!%p6368_p9), [#allocation4], %s5235_s17  ;;  %s5239_s10 = scalar_lea.vmem (!%p6368_p9), [#allocation3], %s3987_s8 }
  0x7e   : > { %4964 = dma.done.wait (%p6369_p13), %s244_s9, 1024  }
  0x7f   : > { %4966 = vsyncadd (%p6369_p13), %s244_s9, 4294966272  ;;  %p6370_p10 = scmp.eq.s32.totalorder %s5058_s22, 0 }
  0x81   : > { %4968 = dma.done.wait (%p6370_p10), [#allocation7], 16512   ;;  %p6371_p8 = pmov %p6370_p10 }
  0x83   : > { %4970 = vsyncadd (%p6371_p8), [#allocation7], 4294950784  ;;  %p6372_p12 = pmov %p6371_p8 }
  0x84   : > { %p6373_p6 = pmov %p6371_p8 }
  0x85   : > { %4972 = dma.done.wait (%p6372_p12), [#allocation10], 16384  }
  0x86   : > { %4974 = vsyncadd (%p6373_p6), [#allocation10], 4294950912  ;;  %v322_v0 = vld [vmem:[#allocation6] sm:$0xff]  ;;  %v323_v63 = vld [vmem:[#allocation6 + $0x8] sm:$0xff]  ;;  %s3991_s6 = sshll.u32 %s5235_s17, 7  ;;  %s4275_s11 = sshll.u32 %s5058_s22, 11 }
  0x87   : > { %v324_v1 = vld [vmem:[#allocation6 + $0x20] sm:$0xff]  ;;  %s6283_s14 = scalar_lea.vmem [#allocation11], %s3991_s6  ;;  %s6303_s30 = scalar_lea.hbm %s6356_s5, %s4275_s11 }
  0x88   : > { %v326_v2 = vld [vmem:[#allocation6 + $0x40] sm:$0xff]  ;;  %v4001_v3 = vcombine.high %v322_v0, %v324_v1  ;;  %v4000_v4 = vcombine.low %v322_v0, %v324_v1  ;;  %v325_v0 = vld [vmem:[#allocation6 + $0x28] sm:$0xff]  ;;  %s3873_s13 = sshll.u32 %s6283_s14, 4  ;;  %s3859_s22 = scalar_lea.sflag [#allocation5], %s5235_s17  ;;  %s6305_s13 = int_to_ptr.vmem [resolvable:$true] %s3873_s13 }
  0x89   : > { %v328_v5 = vld [vmem:[#allocation6 + $0x60] sm:$0xff]  ;;  %s4919_s12 = scalar_lea.vmem %s6305_s13, 2048  ;;  %s5004_s23 = smov [#allocation11]  }
  0x8a   : > { %v4005_v6 = vcombine.high %v326_v2, %v328_v5  ;;  %v330_v7 = vld [vmem:[#allocation6 + $0x80] sm:$0xff]  ;;  %746 = vmatprep.subr.bf16.mxu1 %v4001_v3  ;;  %v4004_v9 = vcombine.low %v326_v2, %v328_v5  ;;  %v327_v3 = vld [vmem:[#allocation6 + $0x48] sm:$0xff]  ;;  %p4920_p0 = scmp.ne.s32.totalorder %s6305_s13, %s4919_s12  ;;  %s4923_s7 = sshll.u32 %s5004_s23, 4  ;;  %s4924_s7 = int_to_ptr.vmem [resolvable:$false] %s4923_s7 }
  0x8b   : > { %v332_v8 = vld [vmem:[#allocation6 + $0xa0] sm:$0xff]  ;;  %747 = vmatpush1.bf16.msra.mxu1 %v4000_v4  ;;  %v329_v4 = vld [vmem:[#allocation6 + $0x68] sm:$0xff]  ;;  %s4925_s8 = scalar_lea.vmem %s4924_s7, 4096  ;;  %p4926_p11 = scmp.lt.s32.totalorder %s6305_s13, %s4924_s7 }
  0x8c   : > { %748 = vmatprep.subr.bf16.mxu1 %v4005_v6  ;;  %v4009_v10 = vcombine.high %v330_v7, %v332_v8  ;;  %v334_v11 = vld [vmem:[#allocation6 + $0xc0] sm:$0xff]  ;;  %v4008_v13 = vcombine.low %v330_v7, %v332_v8  ;;  %v4003_v6 = vcombine.high %v323_v63, %v325_v0  ;;  %v5261_v7 = vld [vmem:[%s5239_s10 + $0x14] ss:$8 sps:$4 sm:$0xff]   ;;  %v4002_v8 = vcombine.low %v323_v63, %v325_v0  ;;  %v379_v0 = vld [vmem:[#allocation6 + $0x388] sm:$0xff]  ;;  %p4921_p3 = pnand %p4920_p0, %p5184_p5  ;;  %p4927_p2 = scmp.lt.s32.totalorder %s4925_s8, %s4919_s12 }
  0x8d   : > { %v336_v12 = vld [vmem:[#allocation6 + $0xe0] sm:$0xff] }
  0x8e   : > { %v4013_v14 = vcombine.high %v334_v11, %v336_v12  ;;  %v338_v15 = vld [vmem:[#allocation6 + $0x100] sm:$0xff]  ;;  %v4012_v18 = vcombine.low %v334_v11, %v336_v12  ;;  %v4007_v11 = vcombine.high %v327_v3, %v329_v4  ;;  %v4006_v12 = vcombine.low %v327_v3, %v329_v4  ;;  %v383_v4 = vld [vmem:[#allocation6 + $0x3c8] sm:$0xff]  ;;  %p4922_p7 = pneg %p4921_p3  ;;  %p4928_p1 = por %p4927_p2, %p4926_p11 }
  0x8f   : > { %749 = vmatpush1.bf16.msra.mxu1 %v4004_v9  ;;  %v340_v16 = vld [vmem:[#allocation6 + $0x120] sm:$0xff]  ;;  %v331_v9 = vld [vmem:[#allocation6 + $0x88] sm:$0xff] }
  0x90   : > { %750 = vmatprep.subr.bf16.mxu1 %v4009_v10  ;;  %v5254_v17 = vld [vmem:[%s5239_s10 + $0x4] ss:$8 sps:$4 sm:$0xff]   ;;  %v4017_v19 = vcombine.high %v338_v15, %v340_v16  ;;  %v4016_v22 = vcombine.low %v338_v15, %v340_v16  ;;  %v5258_v5 = vld [vmem:[%s5239_s10] ss:$8 sps:$4 sm:$0xff]   ;;  %v5266_v15 = vld [vmem:[%s5239_s10 + $0x10] ss:$8 sps:$4 sm:$0xff]   ;;  %p4929_p4 = pnand %p4928_p1, %p4922_p7 }
  0x91   : > { %778 = vmatprep.mubr.bf16.mxu1 %v5254_v17  ;;  %v342_v20 = vld [vmem:[#allocation6 + $0x140] sm:$0xff]  ;;  %v333_v10 = vld [vmem:[#allocation6 + $0xa8] sm:$0xff] }
  0x92   : > { %v344_v21 = vld [vmem:[#allocation6 + $0x160] sm:$0xff]  ;;  %v4011_v16 = vcombine.high %v331_v9, %v333_v10 }
  0x93   : > { %751 = vmatpush1.bf16.msra.mxu1 %v4008_v13  ;;  %v4021_v23 = vcombine.high %v342_v20, %v344_v21  ;;  %v346_v24 = vld [vmem:[#allocation6 + $0x180] sm:$0xff]  ;;  %v4020_v26 = vcombine.low %v342_v20, %v344_v21  ;;  %v335_v13 = vld [vmem:[#allocation6 + $0xc8] sm:$0xff] }
  0x94   : > { %752 = vmatprep.subr.bf16.mxu1 %v4013_v14  ;;  %v348_v25 = vld [vmem:[#allocation6 + $0x1a0] sm:$0xff]  ;;  %v337_v14 = vld [vmem:[#allocation6 + $0xe8] sm:$0xff] }
  0x95   : > { %v4025_v27 = vcombine.high %v346_v24, %v348_v25  ;;  %v350_v28 = vld [vmem:[#allocation6 + $0x1c0] sm:$0xff]  ;;  %v4024_v30 = vcombine.low %v346_v24, %v348_v25  ;;  %v339_v20 = vld [vmem:[#allocation6 + $0x108] sm:$0xff] }
  0x96   : > { %v352_v29 = vld [vmem:[#allocation6 + $0x1e0] sm:$0xff]  ;;  %v341_v21 = vld [vmem:[#allocation6 + $0x128] sm:$0xff] }
  0x97   : > { %753 = vmatpush1.bf16.msra.mxu1 %v4012_v18  ;;  %v4029_v31 = vcombine.high %v350_v28, %v352_v29  ;;  %v354_v32 = vld [vmem:[#allocation6 + $0x200] sm:$0xff]  ;;  %v4028_v34 = vcombine.low %v350_v28, %v352_v29  ;;  %v343_v24 = vld [vmem:[#allocation6 + $0x148] sm:$0xff]  ;;  %v5277_v28 = vld [vmem:[%s5239_s10 + $0x34] ss:$8 sps:$4 sm:$0xff]   ;;  %v4018_v29 = vcombine.low %v339_v20, %v341_v21 }
  0x98   : > { %754 = vmatprep.subr.bf16.mxu1 %v4017_v19  ;;  %v356_v33 = vld [vmem:[#allocation6 + $0x220] sm:$0xff]  ;;  %v4010_v19 = vcombine.low %v331_v9, %v333_v10  ;;  %v345_v25 = vld [vmem:[#allocation6 + $0x168] sm:$0xff]  ;;  %v2064_v10 = vld [vmem:[#allocation6 + $0x10] sm:$0xff] }
  0x99   : > { %v4033_v35 = vcombine.high %v354_v32, %v356_v33  ;;  %v358_v36 = vld [vmem:[#allocation6 + $0x240] sm:$0xff]  ;;  %v4032_v38 = vcombine.low %v354_v32, %v356_v33  ;;  %v4023_v32 = vcombine.high %v343_v24, %v345_v25  ;;  %v4022_v33 = vcombine.low %v343_v24, %v345_v25  ;;  %v2076_v25 = vld [vmem:[#allocation6 + $0xd0] sm:$0xff] }
  0x9a   : > { %v360_v37 = vld [vmem:[#allocation6 + $0x260] sm:$0xff] }
  0x9b   : > { %755 = vmatpush1.bf16.msra.mxu1 %v4016_v22  ;;  %v362_v39 = vld [vmem:[#allocation6 + $0x280] sm:$0xff]  ;;  %v4037_v41 = vcombine.high %v358_v36, %v360_v37  ;;  %v4036_v42 = vcombine.low %v358_v36, %v360_v37  ;;  %v4015_v22 = vcombine.high %v335_v13, %v337_v14  ;;  %v353_v36 = vld [vmem:[#allocation6 + $0x1e8] sm:$0xff]  ;;  %v5282_v37 = vld [vmem:[%s5239_s10 + $0x30] ss:$8 sps:$4 sm:$0xff]  }
  0x9c   : > { %756 = vmatprep.subr.bf16.mxu1 %v4021_v23  ;;  %v364_v40 = vld [vmem:[#allocation6 + $0x2a0] sm:$0xff]  ;;  %v4014_v23 = vcombine.low %v335_v13, %v337_v14  ;;  %v2068_v14 = vld [vmem:[#allocation6 + $0x50] sm:$0xff] }
  0x9d   : > { %v366_v43 = vld [vmem:[#allocation6 + $0x2c0] sm:$0xff]  ;;  %v4041_v45 = vcombine.high %v362_v39, %v364_v40  ;;  %v4040_v46 = vcombine.low %v362_v39, %v364_v40  ;;  %v355_v40 = vld [vmem:[#allocation6 + $0x208] sm:$0xff] }
  0x9e   : > { %v368_v44 = vld [vmem:[#allocation6 + $0x2e0] sm:$0xff] }
  0x9f   : > { %757 = vmatpush1.bf16.msra.mxu1 %v4020_v26  ;;  %v370_v47 = vld [vmem:[#allocation6 + $0x300] sm:$0xff]  ;;  %v4045_v49 = vcombine.high %v366_v43, %v368_v44  ;;  %v4044_v50 = vcombine.low %v366_v43, %v368_v44  ;;  %v359_v44 = vld [vmem:[#allocation6 + $0x248] sm:$0xff] }
  0xa0   : > { %758 = vmatprep.subr.bf16.mxu1 %v4025_v27  ;;  %v372_v48 = vld [vmem:[#allocation6 + $0x320] sm:$0xff]  ;;  %v4019_v27 = vcombine.high %v339_v20, %v341_v21  ;;  %v2072_v21 = vld [vmem:[#allocation6 + $0x90] sm:$0xff] }
  0xa1   : > { %v374_v51 = vld [vmem:[#allocation6 + $0x340] sm:$0xff]  ;;  %v4049_v53 = vcombine.high %v370_v47, %v372_v48  ;;  %v4048_v54 = vcombine.low %v370_v47, %v372_v48  ;;  %v363_v48 = vld [vmem:[#allocation6 + $0x288] sm:$0xff] }
  0xa2   : > { %v376_v52 = vld [vmem:[#allocation6 + $0x360] sm:$0xff] }
  0xa3   : > { %759 = vmatpush1.bf16.msra.mxu1 %v4024_v30  ;;  %v378_v55 = vld [vmem:[#allocation6 + $0x380] sm:$0xff]  ;;  %v4053_v57 = vcombine.high %v374_v51, %v376_v52  ;;  %v4052_v58 = vcombine.low %v374_v51, %v376_v52  ;;  %v347_v30 = vld [vmem:[#allocation6 + $0x188] sm:$0xff] }
  0xa4   : > { %760 = vmatprep.subr.bf16.mxu1 %v4029_v31  ;;  %v380_v56 = vld [vmem:[#allocation6 + $0x3a0] sm:$0xff]  ;;  %v349_v31 = vld [vmem:[#allocation6 + $0x1a8] sm:$0xff] }
  0xa5   : > { %v382_v59 = vld [vmem:[#allocation6 + $0x3c0] sm:$0xff]  ;;  %v4057_v61 = vcombine.high %v378_v55, %v380_v56  ;;  %v4056_v62 = vcombine.low %v378_v55, %v380_v56  ;;  %v367_v52 = vld [vmem:[#allocation6 + $0x2c8] sm:$0xff] }
  0xa6   : > { %v384_v60 = vld [vmem:[#allocation6 + $0x3e0] sm:$0xff]  ;;  %v371_v56 = vld [vmem:[#allocation6 + $0x308] sm:$0xff] }
  0xa7   : > { %761 = vmatpush1.bf16.msra.mxu1 %v4028_v34  ;;  %v4061_v1 = vcombine.high %v382_v59, %v384_v60  ;;  %v4060_v2 = vcombine.low %v382_v59, %v384_v60  ;;  %v5269_v18 = vld [vmem:[%s5239_s10 + $0x24] ss:$8 sps:$4 sm:$0xff]   ;;  %v5274_v26 = vld [vmem:[%s5239_s10 + $0x20] ss:$8 sps:$4 sm:$0xff]   ;;  %v4027_v34 = vcombine.high %v347_v30, %v349_v31 }
  0xa8   : > { %762 = vmatprep.subr.bf16.mxu1 %v4033_v35  ;;  %v351_v35 = vld [vmem:[#allocation6 + $0x1c8] sm:$0xff] }
  0xa9   : > { %v4031_v39 = vcombine.high %v351_v35, %v353_v36  ;;  %v375_v60 = vld [vmem:[#allocation6 + $0x348] sm:$0xff] }
  0xab   : > { %763 = vmatpush1.bf16.msra.mxu1 %v4032_v38  ;;  %v4026_v38 = vcombine.low %v347_v30, %v349_v31  ;;  %v2080_v31 = vld [vmem:[#allocation6 + $0x110] sm:$0xff] }
  0xac   : > { %764 = vmatprep.subr.bf16.mxu1 %v4037_v41  ;;  %v357_v41 = vld [vmem:[#allocation6 + $0x228] sm:$0xff] }
  0xad   : > { %v4035_v43 = vcombine.high %v355_v40, %v357_v41 }
  0xaf   : > { %765 = vmatpush1.bf16.msra.mxu1 %v4036_v42  ;;  %v4030_v42 = vcombine.low %v351_v35, %v353_v36  ;;  %v2084_v36 = vld [vmem:[#allocation6 + $0x150] sm:$0xff] }
  0xb0   : > { %766 = vmatprep.subr.bf16.mxu1 %v4041_v45  ;;  %v361_v45 = vld [vmem:[#allocation6 + $0x268] sm:$0xff] }
  0xb1   : > { %v4039_v47 = vcombine.high %v359_v44, %v361_v45 }
  0xb3   : > { %767 = vmatpush1.bf16.msra.mxu1 %v4040_v46  ;;  %v4034_v46 = vcombine.low %v355_v40, %v357_v41  ;;  %v2088_v41 = vld [vmem:[#allocation6 + $0x190] sm:$0xff] }
  0xb4   : > { %768 = vmatprep.subr.bf16.mxu1 %v4045_v49  ;;  %v365_v49 = vld [vmem:[#allocation6 + $0x2a8] sm:$0xff] }
  0xb5   : > { %v4043_v51 = vcombine.high %v363_v48, %v365_v49 }
  0xb7   : > { %769 = vmatpush1.bf16.msra.mxu1 %v4044_v50  ;;  %v4038_v50 = vcombine.low %v359_v44, %v361_v45 }
  0xb8   : > { %770 = vmatprep.subr.bf16.mxu1 %v4049_v53  ;;  %v369_v53 = vld [vmem:[#allocation6 + $0x2e8] sm:$0xff] }
  0xb9   : > { %v4047_v55 = vcombine.high %v367_v52, %v369_v53 }
  0xbb   : > { %771 = vmatpush1.bf16.msra.mxu1 %v4048_v54  ;;  %v4042_v54 = vcombine.low %v363_v48, %v365_v49  ;;  %v2094_v48 = vld [vmem:[#allocation6 + $0x1f0] sm:$0xff] }
  0xbc   : > { %772 = vmatprep.subr.bf16.mxu1 %v4053_v57  ;;  %v373_v57 = vld [vmem:[#allocation6 + $0x328] sm:$0xff] }
  0xbd   : > { %v4051_v59 = vcombine.high %v371_v56, %v373_v57 }
  0xbf   : > { %773 = vmatpush1.bf16.msra.mxu1 %v4052_v58  ;;  %v4046_v58 = vcombine.low %v367_v52, %v369_v53  ;;  %v2096_v52 = vld [vmem:[#allocation6 + $0x210] sm:$0xff] }
  0xc0   : > { %774 = vmatprep.subr.bf16.mxu1 %v4057_v61  ;;  %v377_v61 = vld [vmem:[#allocation6 + $0x368] sm:$0xff]  ;;  %v2098_v53 = vld [vmem:[#allocation6 + $0x230] sm:$0xff] }
  0xc1   : > { %v4055_v63 = vcombine.high %v375_v60, %v377_v61 }
  0xc3   : > { %775 = vmatpush1.bf16.msra.mxu1 %v4056_v62  ;;  %v4050_v62 = vcombine.low %v371_v56, %v373_v57  ;;  %v4426_v56 = vld [vmem:[#allocation9 + $0x24] ss:$8 sps:$4 sm:$0xff]  }
  0xc4   : > { %776 = vmatprep.subr.bf16.mxu1 %v4061_v1  ;;  %v381_v1 = vld [vmem:[#allocation6 + $0x3a8] sm:$0xff]  ;;  %v2100_v57 = vld [vmem:[#allocation6 + $0x250] sm:$0xff] }
  0xc5   : > { %v4059_v3 = vcombine.high %v379_v0, %v381_v1 }
  0xc7   : > { %777 = vmatpush1.bf16.msra.mxu1 %v4060_v2  ;;  %v4054_v2 = vcombine.low %v375_v60, %v377_v61  ;;  %v4169_v60 = vcombine.low %v2096_v52, %v2098_v53 }
  0xc8   : > { %819 = vmatprep.subr.bf16.mxu1 %v4003_v6  ;;  %v385_v6 = vld [vmem:[#allocation6 + $0x3e8] sm:$0xff] }
  0xc9   : > { %v4063_v9 = vcombine.high %v383_v4, %v385_v6 }
  0xca   : > { %779 = vmatmul.mubr.bf16.vlgmr.msra.gmra.mrb[0].mxu1 %v5258_v5 }
  0xcb   : > { %820 = vmatpush1.bf16.msra.mxu1 %v4002_v8  ;;  %788 = vmatprep.mubr.bf16.mxu1 %v5261_v7  ;;  %v4058_v8 = vcombine.low %v379_v0, %v381_v1  ;;  %v2106_v0 = vld [vmem:[#allocation6 + $0x2b0] sm:$0xff]  ;;  %v4431_v1 = vld [vmem:[#allocation9 + $0x30] ss:$8 sps:$4 sm:$0xff]  }
  0xcc   : > { %821 = vmatprep.subr.bf16.mxu1 %v4007_v11  ;;  %v2066_v11 = vld [vmem:[#allocation6 + $0x30] sm:$0xff] }
  0xcd   : > { %v4138_v13 = vcombine.high %v2064_v10, %v2066_v11 }
  0xcf   : > { %822 = vmatpush1.bf16.msra.mxu1 %v4006_v12  ;;  %v4062_v12 = vcombine.low %v383_v4, %v385_v6  ;;  %v2108_v4 = vld [vmem:[#allocation6 + $0x2d0] sm:$0xff] }
  0xd0   : > { %823 = vmatprep.subr.bf16.mxu1 %v4011_v16  ;;  %v2070_v16 = vld [vmem:[#allocation6 + $0x70] sm:$0xff] }
  0xd1   : > { %v4142_v20 = vcombine.high %v2068_v14, %v2070_v16  ;;  %v2110_v6 = vld [vmem:[#allocation6 + $0x2f0] sm:$0xff] }
  0xd2   : > { %789 = vmatmul.mubr.bf16.gmra.mrb[4].mxu1 %v5266_v15 }
  0xd3   : > { %824 = vmatpush1.bf16.msra.mxu1 %v4010_v19  ;;  %798 = vmatprep.mubr.bf16.mxu1 %v5269_v18  ;;  %v4137_v19 = vcombine.low %v2064_v10, %v2066_v11  ;;  %v4182_v10 = vcombine.high %v2108_v4, %v2110_v6  ;;  %v4435_v11 = vld [vmem:[#allocation9 + $0x54] ss:$8 sps:$4 sm:$0xff]  }
  0xd4   : > { %825 = vmatprep.subr.bf16.mxu1 %v4015_v22  ;;  %v2074_v22 = vld [vmem:[#allocation6 + $0xb0] sm:$0xff] }
  0xd5   : > { %v4146_v24 = vcombine.high %v2072_v21, %v2074_v22 }
  0xd7   : > { %826 = vmatpush1.bf16.msra.mxu1 %v4014_v23  ;;  %v4141_v23 = vcombine.low %v2068_v14, %v2070_v16  ;;  %v4437_v14 = vld [vmem:[#allocation9 + $0x50] ss:$8 sps:$4 sm:$0xff]   ;;  %v4181_v16 = vcombine.low %v2108_v4, %v2110_v6 }
  0xd8   : > { %827 = vmatprep.subr.bf16.mxu1 %v4019_v27  ;;  %v2078_v27 = vld [vmem:[#allocation6 + $0xf0] sm:$0xff]  ;;  %v4461_v6 = vld [vmem:[#allocation9 + $0xd0] ss:$8 sps:$4 sm:$0xff]  }
  0xd9   : > { %v4150_v30 = vcombine.high %v2076_v25, %v2078_v27 }
  0xda   : > { %799 = vmatmul.mubr.bf16.gmra.mrb[8].mxu1 %v5274_v26 }
  0xdb   : > { %828 = vmatpush1.bf16.msra.mxu1 %v4018_v29  ;;  %808 = vmatprep.mubr.bf16.mxu1 %v5277_v28  ;;  %v4145_v29 = vcombine.low %v2072_v21, %v2074_v22  ;;  %v2116_v21 = vld [vmem:[#allocation6 + $0x350] sm:$0xff] }
  0xdc   : > { %829 = vmatprep.subr.bf16.mxu1 %v4023_v32  ;;  %v2082_v32 = vld [vmem:[#allocation6 + $0x130] sm:$0xff] }
  0xdd   : > { %v4154_v35 = vcombine.high %v2080_v31, %v2082_v32  ;;  %v2118_v22 = vld [vmem:[#allocation6 + $0x370] sm:$0xff] }
  0xdf   : > { %830 = vmatpush1.bf16.msra.mxu1 %v4022_v33  ;;  %v4149_v33 = vcombine.low %v2076_v25, %v2078_v27  ;;  %v4190_v25 = vcombine.high %v2116_v21, %v2118_v22  ;;  %v4441_v27 = vld [vmem:[#allocation9 + $0x74] ss:$8 sps:$4 sm:$0xff]  }
  0xe0   : > { %831 = vmatprep.subr.bf16.mxu1 %v4027_v34  ;;  %v4420_v34 = vld [vmem:[#allocation9 + $0x4] ss:$8 sps:$4 sm:$0xff]  }
  0xe1   : > { %1877 = vmatprep.subr.bf16.mxu0 %v4420_v34  ;;  %v2124_v34 = vld [vmem:[#allocation6 + $0x3d0] sm:$0xff] }
  0xe2   : > { %809 = vmatmul.mubr.bf16.gmra.mrb[12].mxu1 %v5282_v37 }
  0xe3   : > { %832 = vmatpush1.bf16.msra.mxu1 %v4026_v38  ;;  %851 = vmatprep.mubr.bf16.mxu1 %v5254_v17  ;;  %v2086_v38 = vld [vmem:[#allocation6 + $0x170] sm:$0xff] }
  0xe4   : > { %833 = vmatprep.subr.bf16.mxu1 %v4031_v39  ;;  %v4153_v39 = vcombine.low %v2080_v31, %v2082_v32  ;;  %v4158_v40 = vcombine.high %v2084_v36, %v2086_v38  ;;  %v4157_v44 = vcombine.low %v2084_v36, %v2086_v38  ;;  %v4443_v31 = vld [vmem:[#allocation9 + $0x70] ss:$8 sps:$4 sm:$0xff]   ;;  %v4189_v32 = vcombine.low %v2116_v21, %v2118_v22  ;;  %v4444_v38 = vld [vmem:[#allocation9 + $0x84] ss:$8 sps:$4 sm:$0xff]  }
  0xe7   : > { %834 = vmatpush1.bf16.msra.mxu1 %v4030_v42  ;;  %v2090_v42 = vld [vmem:[#allocation6 + $0x1b0] sm:$0xff] }
  0xe8   : > { %835 = vmatprep.subr.bf16.mxu1 %v4035_v43  ;;  %v4422_v43 = vld [vmem:[#allocation9] ss:$8 sps:$4 sm:$0xff]   ;;  %v4162_v45 = vcombine.high %v2088_v41, %v2090_v42  ;;  %v4161_v49 = vcombine.low %v2088_v41, %v2090_v42  ;;  %v2065_v41 = vld [vmem:[#allocation6 + $0x18] sm:$0xff] }
  0xe9   : > { %1878 = vmatpush1.bf16.msra.mxu0 %v4422_v43  ;;  %v2067_v42 = vld [vmem:[#allocation6 + $0x38] sm:$0xff] }
  0xeb   : > { %836 = vmatpush1.bf16.msra.mxu1 %v4034_v46  ;;  %v4423_v46 = vld [vmem:[#allocation9 + $0x14] ss:$8 sps:$4 sm:$0xff]  }
  0xec   : > { %837 = vmatprep.subr.bf16.mxu1 %v4039_v47  ;;  %v2092_v47 = vld [vmem:[#allocation6 + $0x1d0] sm:$0xff]  ;;  %1879 = vmatprep.subr.bf16.mxu0 %v4423_v46  ;;  %v4449_v46 = vld [vmem:[#allocation9 + $0x90] ss:$8 sps:$4 sm:$0xff]  }
  0xef   : > { %838 = vmatpush1.bf16.msra.mxu1 %v4038_v50  ;;  %v4425_v50 = vld [vmem:[#allocation9 + $0x10] ss:$8 sps:$4 sm:$0xff]  }
  0xf0   : > { %839 = vmatprep.subr.bf16.mxu1 %v4043_v51  ;;  %v4166_v51 = vcombine.high %v2092_v47, %v2094_v48  ;;  %1880 = vmatpush1.bf16.msra.mxu0 %v4425_v50  ;;  %v4450_v50 = vld [vmem:[#allocation9 + $0xa4] ss:$8 sps:$4 sm:$0xff]  }
  0xf1   : > { %1881 = vmatprep.subr.bf16.mxu0 %v4426_v56  ;;  %v4453_v56 = vld [vmem:[#allocation9 + $0xb4] ss:$8 sps:$4 sm:$0xff]  }
  0xf3   : > { %840 = vmatpush1.bf16.msra.mxu1 %v4042_v54  ;;  %v4165_v54 = vcombine.low %v2092_v47, %v2094_v48  ;;  %v2069_v47 = vld [vmem:[#allocation6 + $0x58] sm:$0xff] }
  0xf4   : > { %841 = vmatprep.subr.bf16.mxu1 %v4047_v55  ;;  %v4170_v55 = vcombine.high %v2096_v52, %v2098_v53  ;;  %v2071_v48 = vld [vmem:[#allocation6 + $0x78] sm:$0xff]  ;;  %v4452_v52 = vld [vmem:[#allocation9 + $0xa0] ss:$8 sps:$4 sm:$0xff]  }
  0xf5   : > { %v2073_v53 = vld [vmem:[#allocation6 + $0x98] sm:$0xff] }
  0xf7   : > { %842 = vmatpush1.bf16.msra.mxu1 %v4046_v58  ;;  %v2102_v58 = vld [vmem:[#allocation6 + $0x270] sm:$0xff] }
  0xf8   : > { %843 = vmatprep.subr.bf16.mxu1 %v4051_v59  ;;  %v4428_v59 = vld [vmem:[#allocation9 + $0x20] ss:$8 sps:$4 sm:$0xff]   ;;  %v4174_v61 = vcombine.high %v2100_v57, %v2102_v58 }
  0xf9   : > { %1882 = vmatpush1.bf16.msra.mxu0 %v4428_v59  ;;  %v2077_v59 = vld [vmem:[#allocation6 + $0xd8] sm:$0xff] }
  0xfb   : > { %844 = vmatpush1.bf16.msra.mxu1 %v4050_v62  ;;  %v4429_v62 = vld [vmem:[#allocation9 + $0x34] ss:$8 sps:$4 sm:$0xff]  }
  0xfc   : > { %845 = vmatprep.subr.bf16.mxu1 %v4055_v63  ;;  %v2104_v63 = vld [vmem:[#allocation6 + $0x290] sm:$0xff]  ;;  %1883 = vmatprep.subr.bf16.mxu0 %v4429_v62 }
  0xfd   : > { %1884 = vmatpush1.bf16.msra.mxu0 %v4431_v1  ;;  %v4456_v62 = vld [vmem:[#allocation9 + $0xc4] ss:$8 sps:$4 sm:$0xff]   ;;  %v2081_v1 = vld [vmem:[#allocation6 + $0x118] sm:$0xff] }
  0xff   : > { %846 = vmatpush1.bf16.msra.mxu1 %v4054_v2  ;;  %v4173_v2 = vcombine.low %v2100_v57, %v2102_v58  ;;  %v4455_v58 = vld [vmem:[#allocation9 + $0xb0] ss:$8 sps:$4 sm:$0xff]  }
 0x100   : > { %847 = vmatprep.subr.bf16.mxu1 %v4059_v3  ;;  %v4432_v3 = vld [vmem:[#allocation9 + $0x44] ss:$8 sps:$4 sm:$0xff]  }
 0x101   : > { %1885 = vmatprep.subr.bf16.mxu0 %v4432_v3  ;;  %v4459_v3 = vld [vmem:[#allocation9 + $0xd4] ss:$8 sps:$4 sm:$0xff]  }
 0x103   : > { %848 = vmatpush1.bf16.msra.mxu1 %v4058_v8  ;;  %v4434_v8 = vld [vmem:[#allocation9 + $0x40] ss:$8 sps:$4 sm:$0xff]  }
 0x104   : > { %849 = vmatprep.subr.bf16.mxu1 %v4063_v9  ;;  %v4177_v9 = vcombine.low %v2104_v63, %v2106_v0  ;;  %1886 = vmatpush1.bf16.msra.mxu0 %v4434_v8  ;;  %v2085_v8 = vld [vmem:[#allocation6 + $0x158] sm:$0xff] }
 0x105   : > { %1887 = vmatprep.subr.bf16.mxu0 %v4435_v11  ;;  %v4462_v11 = vld [vmem:[#allocation9 + $0xe4] ss:$8 sps:$4 sm:$0xff]  }
 0x107   : > { %850 = vmatpush1.bf16.msra.mxu1 %v4062_v12  ;;  %v2112_v12 = vld [vmem:[#allocation6 + $0x310] sm:$0xff] }
 0x108   : > { %2488 = vmatprep.subr.bf16.mxu1 %v4138_v13  ;;  %v2114_v13 = vld [vmem:[#allocation6 + $0x330] sm:$0xff]  ;;  %1888 = vmatpush1.bf16.msra.mxu0 %v4437_v14  ;;  %v2089_v14 = vld [vmem:[#allocation6 + $0x198] sm:$0xff] }
 0x10a   : > { %852 = vmatmul.mubr.bf16.vlgmr.msra.gmra.mrb[16].mxu1 %v5258_v5 }
 0x10b   : > { %2489 = vmatpush1.bf16.msra.mxu1 %v4137_v19  ;;  %861 = vmatprep.mubr.bf16.mxu1 %v5261_v7  ;;  %v4186_v19 = vcombine.high %v2112_v12, %v2114_v13 }
 0x10c   : > { %2490 = vmatprep.subr.bf16.mxu1 %v4142_v20  ;;  %v4438_v20 = vld [vmem:[#allocation9 + $0x64] ss:$8 sps:$4 sm:$0xff]  }
 0x10d   : > { %1889 = vmatprep.subr.bf16.mxu0 %v4438_v20  ;;  %v4467_v20 = vld [vmem:[#allocation9 + $0xf0] ss:$8 sps:$4 sm:$0xff]  }
 0x10f   : > { %2491 = vmatpush1.bf16.msra.mxu1 %v4141_v23  ;;  %v4440_v23 = vld [vmem:[#allocation9 + $0x60] ss:$8 sps:$4 sm:$0xff]  }
 0x110   : > { %2492 = vmatprep.subr.bf16.mxu1 %v4146_v24  ;;  %v4185_v24 = vcombine.low %v2112_v12, %v2114_v13  ;;  %1890 = vmatpush1.bf16.msra.mxu0 %v4440_v23  ;;  %v4464_v13 = vld [vmem:[#allocation9 + $0xe0] ss:$8 sps:$4 sm:$0xff]   ;;  %v2093_v23 = vld [vmem:[#allocation6 + $0x1d8] sm:$0xff] }
 0x111   : > { %1891 = vmatprep.subr.bf16.mxu0 %v4441_v27 }
 0x112   : > { %862 = vmatmul.mubr.bf16.gmra.mrb[20].mxu1 %v5266_v15 }
 0x113   : > { %2493 = vmatpush1.bf16.msra.mxu1 %v4145_v29  ;;  %871 = vmatprep.mubr.bf16.mxu1 %v5269_v18  ;;  %v2120_v29 = vld [vmem:[#allocation6 + $0x390] sm:$0xff] }
 0x114   : > { %2494 = vmatprep.subr.bf16.mxu1 %v4150_v30  ;;  %v2122_v30 = vld [vmem:[#allocation6 + $0x3b0] sm:$0xff]  ;;  %1892 = vmatpush1.bf16.msra.mxu0 %v4443_v31 }
 0x115   : > { %v4193_v36 = vcombine.low %v2120_v29, %v2122_v30  ;;  %1893 = vmatprep.subr.bf16.mxu0 %v4444_v38  ;;  %v4470_v31 = vld [vmem:[#allocation9 + $0x104] ss:$8 sps:$4 sm:$0xff]  }
 0x117   : > { %2495 = vmatpush1.bf16.msra.mxu1 %v4149_v33  ;;  %v4194_v33 = vcombine.high %v2120_v29, %v2122_v30  ;;  %v2097_v29 = vld [vmem:[#allocation6 + $0x218] sm:$0xff] }
 0x118   : > { %2496 = vmatprep.subr.bf16.mxu1 %v4154_v35  ;;  %v2126_v35 = vld [vmem:[#allocation6 + $0x3f0] sm:$0xff]  ;;  %v2099_v30 = vld [vmem:[#allocation6 + $0x238] sm:$0xff] }
 0x119   : > { %v4197_v43 = vcombine.low %v2124_v34, %v2126_v35  ;;  %v4171_v38 = vcombine.low %v2097_v29, %v2099_v30 }
 0x11a   : > { %872 = vmatmul.mubr.bf16.gmra.mrb[24].mxu1 %v5274_v26 }
 0x11b   : > { %2497 = vmatpush1.bf16.msra.mxu1 %v4153_v39  ;;  %881 = vmatprep.mubr.bf16.mxu1 %v5277_v28  ;;  %v4198_v39 = vcombine.high %v2124_v34, %v2126_v35  ;;  %v4172_v34 = vcombine.high %v2097_v29, %v2099_v30  ;;  %v2101_v35 = vld [vmem:[#allocation6 + $0x258] sm:$0xff] }
 0x11c   : > { %2498 = vmatprep.subr.bf16.mxu1 %v4158_v40  ;;  %v4446_v40 = vld [vmem:[#allocation9 + $0x80] ss:$8 sps:$4 sm:$0xff]  }
 0x11d   : > { %1894 = vmatpush1.bf16.msra.mxu0 %v4446_v40  ;;  %v2105_v40 = vld [vmem:[#allocation6 + $0x298] sm:$0xff] }
 0x11f   : > { %2499 = vmatpush1.bf16.msra.mxu1 %v4157_v44  ;;  %v4447_v44 = vld [vmem:[#allocation9 + $0x94] ss:$8 sps:$4 sm:$0xff]  }
 0x120   : > { %2500 = vmatprep.subr.bf16.mxu1 %v4162_v45  ;;  %v4140_v45 = vcombine.high %v2065_v41, %v2067_v42  ;;  %1895 = vmatprep.subr.bf16.mxu0 %v4447_v44  ;;  %v2109_v44 = vld [vmem:[#allocation6 + $0x2d8] sm:$0xff] }
 0x121   : > { %1896 = vmatpush1.bf16.msra.mxu0 %v4449_v46 }
 0x122   : > { %882 = vmatmul.mubr.bf16.gmra.mrb[28].mxu1 %v5282_v37  ;;  %1897 = vmatprep.subr.bf16.mxu0 %v4450_v50 }
 0x123   : > { %2501 = vmatpush1.bf16.msra.mxu1 %v4161_v49  ;;  %2520 = vmatprep.mubr.bf16.mxu1 %v5254_v17  ;;  %v4178_v17 = vcombine.high %v2104_v63, %v2106_v0  ;;  %v4139_v49 = vcombine.low %v2065_v41, %v2067_v42  ;;  %v4458_v0 = vld [vmem:[#allocation9 + $0xc0] ss:$8 sps:$4 sm:$0xff]   ;;  %v2107_v41 = vld [vmem:[#allocation6 + $0x2b8] sm:$0xff] }
 0x124   : > { %2502 = vmatprep.subr.bf16.mxu1 %v4166_v51  ;;  %v4144_v51 = vcombine.high %v2069_v47, %v2071_v48  ;;  %v4179_v46 = vcombine.low %v2105_v40, %v2107_v41 }
 0x125   : > { %1898 = vmatpush1.bf16.msra.mxu0 %v4452_v52  ;;  %v2117_v52 = vld [vmem:[#allocation6 + $0x358] sm:$0xff] }
 0x126   : > { %1899 = vmatprep.subr.bf16.mxu0 %v4453_v56  ;;  %v2121_v56 = vld [vmem:[#allocation6 + $0x398] sm:$0xff] }
 0x127   : > { %2503 = vmatpush1.bf16.msra.mxu1 %v4165_v54  ;;  %v2075_v54 = vld [vmem:[#allocation6 + $0xb8] sm:$0xff] }
 0x128   : > { %2504 = vmatprep.subr.bf16.mxu1 %v4170_v55  ;;  %v4143_v55 = vcombine.low %v2069_v47, %v2071_v48  ;;  %v4148_v57 = vcombine.high %v2073_v53, %v2075_v54  ;;  %v2113_v48 = vld [vmem:[#allocation6 + $0x318] sm:$0xff] }
 0x129   : > { %1900 = vmatpush1.bf16.msra.mxu0 %v4455_v58 }
 0x12a   : > { %1901 = vmatprep.subr.bf16.mxu0 %v4456_v62 }
 0x12b   : > { %2505 = vmatpush1.bf16.msra.mxu1 %v4169_v60  ;;  %v2079_v60 = vld [vmem:[#allocation6 + $0xf8] sm:$0xff] }
 0x12c   : > { %2506 = vmatprep.subr.bf16.mxu1 %v4174_v61  ;;  %v4147_v61 = vcombine.low %v2073_v53, %v2075_v54  ;;  %v4152_v63 = vcombine.high %v2077_v59, %v2079_v60  ;;  %v2119_v53 = vld [vmem:[#allocation6 + $0x378] sm:$0xff] }
 0x12d   : > { %1902 = vmatpush1.bf16.msra.mxu0 %v4458_v0  ;;  %v4191_v58 = vcombine.low %v2117_v52, %v2119_v53 }
 0x12e   : > { %1903 = vmatprep.subr.bf16.mxu0 %v4459_v3 }
 0x12f   : > { %2507 = vmatpush1.bf16.msra.mxu1 %v4173_v2  ;;  %v2083_v2 = vld [vmem:[#allocation6 + $0x138] sm:$0xff] }
 0x130   : > { %2508 = vmatprep.subr.bf16.mxu1 %v4178_v17  ;;  %v4151_v17 = vcombine.low %v2077_v59, %v2079_v60  ;;  %v4156_v4 = vcombine.high %v2081_v1, %v2083_v2  ;;  %v2125_v60 = vld [vmem:[#allocation6 + $0x3d8] sm:$0xff] }
 0x131   : > { %1904 = vmatpush1.bf16.msra.mxu0 %v4461_v6  ;;  %v4064_v6 = vld.sshfl [vmem:[#allocation8] sm:$0x33 pattern:$0x75316420] }
 0x132   : > { %1905 = vmatprep.subr.bf16.mxu0 %v4462_v11 }
 0x133   : > { %2509 = vmatpush1.bf16.msra.mxu1 %v4177_v9  ;;  %v2087_v9 = vld [vmem:[#allocation6 + $0x178] sm:$0xff] }
 0x134   : > { %2510 = vmatprep.subr.bf16.mxu1 %v4182_v10  ;;  %v4155_v10 = vcombine.low %v2081_v1, %v2083_v2  ;;  %v4160_v12 = vcombine.high %v2085_v8, %v2087_v9  ;;  %v4159_v21 = vcombine.low %v2085_v8, %v2087_v9  ;;  %v5003_v1 = vmov 1966171168  }
 0x135   : > { %1906 = vmatpush1.bf16.msra.mxu0 %v4464_v13  ;;  %v919_v2 = vunpack.c.l.s4 %v5003_v1  ;;  %v917_v9 = vcombine.high %v4064_v6, %v4064_v6 }
 0x137   : > { %2511 = vmatpush1.bf16.msra.mxu1 %v4181_v16  ;;  %v2091_v16 = vld [vmem:[#allocation6 + $0x1b8] sm:$0xff]  ;;  %v920_v3 = vunpack.c.0.s8 %v919_v2 }
 0x138   : > { %2512 = vmatprep.subr.bf16.mxu1 %v4186_v19  ;;  %v4465_v19 = vld [vmem:[#allocation9 + $0xf4] ss:$8 sps:$4 sm:$0xff]   ;;  %v4164_v22 = vcombine.high %v2089_v14, %v2091_v16 }
 0x139   : > { %1907 = vmatprep.subr.bf16.mxu0 %v4465_v19 }
 0x13a   : > { %1908 = vmatpush1.bf16.msra.mxu0 %v4467_v20 }
 0x13b   : > { %2513 = vmatpush1.bf16.msra.mxu1 %v4185_v24  ;;  %v2095_v24 = vld [vmem:[#allocation6 + $0x1f8] sm:$0xff]  ;;  %1950 = vmatprep.subr.bf16.mxu0 %v4470_v31 }
 0x13c   : > { %2514 = vmatprep.subr.bf16.mxu1 %v4190_v25  ;;  %v4163_v25 = vcombine.low %v2089_v14, %v2091_v16  ;;  %v4168_v27 = vcombine.high %v2093_v23, %v2095_v24 }
 0x13f   : > { %2515 = vmatpush1.bf16.msra.mxu1 %v4189_v32  ;;  %v4167_v32 = vcombine.low %v2093_v23, %v2095_v24 }
 0x140   : > { %2516 = vmatprep.subr.bf16.mxu1 %v4194_v33  ;;  %v4804_v33 = vld [vmem:[%s5239_s10 + $0x4] ss:$8 sps:$4 sm:$0xff]  }
 0x143   : > { %2517 = vmatpush1.bf16.msra.mxu1 %v4193_v36  ;;  %v2103_v36 = vld [vmem:[#allocation6 + $0x278] sm:$0xff] }
 0x144   : > { %2518 = vmatprep.subr.bf16.mxu1 %v4198_v39  ;;  %v4176_v39 = vcombine.high %v2101_v35, %v2103_v36  ;;  %v4175_v42 = vcombine.low %v2101_v35, %v2103_v36 }
 0x147   : > { %2519 = vmatpush1.bf16.msra.mxu1 %v4197_v43  ;;  %v4180_v43 = vcombine.high %v2105_v40, %v2107_v41 }
 0x148   : > { %2561 = vmatprep.subr.bf16.mxu1 %v4140_v45  ;;  %v2111_v45 = vld [vmem:[#allocation6 + $0x2f8] sm:$0xff] }
 0x149   : > { %v4184_v47 = vcombine.high %v2109_v44, %v2111_v45  ;;  %v4183_v50 = vcombine.low %v2109_v44, %v2111_v45 }
 0x14a   : > { %2521 = vmatmul.mubr.bf16.vlgmr.msra.gmra.mrb[32].mxu1 %v5258_v5 }
 0x14b   : > { %2562 = vmatpush1.bf16.msra.mxu1 %v4139_v49  ;;  %2530 = vmatprep.mubr.bf16.mxu1 %v5261_v7  ;;  %v2115_v49 = vld [vmem:[#allocation6 + $0x338] sm:$0xff] }
 0x14c   : > { %2563 = vmatprep.subr.bf16.mxu1 %v4144_v51  ;;  %v4188_v51 = vcombine.high %v2113_v48, %v2115_v49  ;;  %v4187_v54 = vcombine.low %v2113_v48, %v2115_v49 }
 0x14f   : > { %2564 = vmatpush1.bf16.msra.mxu1 %v4143_v55  ;;  %v4192_v55 = vcombine.high %v2117_v52, %v2119_v53 }
 0x150   : > { %2565 = vmatprep.subr.bf16.mxu1 %v4148_v57  ;;  %v2123_v57 = vld [vmem:[#allocation6 + $0x3b8] sm:$0xff] }
 0x151   : > { %v4196_v59 = vcombine.high %v2121_v56, %v2123_v57  ;;  %v4195_v62 = vcombine.low %v2121_v56, %v2123_v57 }
 0x152   : > { %2531 = vmatmul.mubr.bf16.gmra.mrb[36].mxu1 %v5266_v15 }
 0x153   : > { %2566 = vmatpush1.bf16.msra.mxu1 %v4147_v61  ;;  %2540 = vmatprep.mubr.bf16.mxu1 %v5269_v18  ;;  %v2127_v61 = vld [vmem:[#allocation6 + $0x3f8] sm:$0xff] }
 0x154   : > { %2567 = vmatprep.subr.bf16.mxu1 %v4152_v63  ;;  %v4200_v63 = vcombine.high %v2125_v60, %v2127_v61  ;;  %v4199_v0 = vcombine.low %v2125_v60, %v2127_v61 }
 0x157   : > { %2568 = vmatpush1.bf16.msra.mxu1 %v4151_v17  ;;  %v921_v17 = vlaneseq }
 0x158   : > { %2569 = vmatprep.subr.bf16.mxu1 %v4156_v4 }
 0x159   : > { %v5304_v4 = vshrl.u32 %v921_v17, 7 }
 0x15a   : > { %2541 = vmatmul.mubr.bf16.gmra.mrb[40].mxu1 %v5274_v26 }
 0x15b   : > { %2570 = vmatpush1.bf16.msra.mxu1 %v4155_v10  ;;  %2550 = vmatprep.mubr.bf16.mxu1 %v5277_v28  ;;  %v5308_v8 = vsub.s32 %v920_v3, %v5304_v4  ;;  %v5321_v11 = vsub.s32 0, %v5304_v4 }
 0x15c   : > { %2571 = vmatprep.subr.bf16.mxu1 %v4160_v12 }
 0x15d   : > { %v5312_v10 = vrot.slane %v4064_v6, %v5308_v8 }
 0x15f   : > { %2572 = vmatpush1.bf16.msra.mxu1 %v4159_v21 }
 0x160   : > { %2573 = vmatprep.subr.bf16.mxu1 %v4164_v22 }
 0x162   : > { %2551 = vmatmul.mubr.bf16.gmra.mrb[44].mxu1 %v5282_v37 }
 0x163   : > { %2574 = vmatpush1.bf16.msra.mxu1 %v4163_v25  ;;  %2593 = vmatprep.mubr.bf16.mxu1 %v4804_v33 }
 0x164   : > { %2575 = vmatprep.subr.bf16.mxu1 %v4168_v27 }
 0x167   : > { %2576 = vmatpush1.bf16.msra.mxu1 %v4167_v32 }
 0x168   : > { %2577 = vmatprep.subr.bf16.mxu1 %v4172_v34 }
 0x16b   : > { %2578 = vmatpush1.bf16.msra.mxu1 %v4171_v38 }
 0x16c   : > { %2579 = vmatprep.subr.bf16.mxu1 %v4176_v39 }
 0x16f   : > { %2580 = vmatpush1.bf16.msra.mxu1 %v4175_v42 }
 0x170   : > { %2581 = vmatprep.subr.bf16.mxu1 %v4180_v43 }
 0x173   : > { %2582 = vmatpush1.bf16.msra.mxu1 %v4179_v46 }
 0x174   : > { %2583 = vmatprep.subr.bf16.mxu1 %v4184_v47 }
 0x177   : > { %2584 = vmatpush1.bf16.msra.mxu1 %v4183_v50 }
 0x178   : > { %2585 = vmatprep.subr.bf16.mxu1 %v4188_v51 }
 0x17b   : > { %2586 = vmatpush1.bf16.msra.mxu1 %v4187_v54 }
 0x17c   : > { %2587 = vmatprep.subr.bf16.mxu1 %v4192_v55 }
 0x17f   : > { %2588 = vmatpush1.bf16.msra.mxu1 %v4191_v58 }
 0x180   : > { %2589 = vmatprep.subr.bf16.mxu1 %v4196_v59 }
 0x183   : > { %2590 = vmatpush1.bf16.msra.mxu1 %v4195_v62 }
 0x184   : > { %2591 = vmatprep.subr.bf16.mxu1 %v4200_v63 }
 0x187   : > { %2592 = vmatpush1.bf16.msra.mxu1 %v4199_v0 }
 0x18a   : > { %2594 = vmatmul.mubr.bf16.vlgmr.msra.gmra.mrb[48].mxu1 %v5258_v5  ;;  %v5315_v5 = vrot.slane %v917_v9, %v5308_v8 }
 0x18b   : > { %2603 = vmatprep.mubr.bf16.mxu1 %v5261_v7  ;;  %v935_v7 = vpack.i.b16 %v5312_v10, %v5312_v10 }
 0x18d   : > { %v5327_v13 = vrot.slane %v935_v7, %v5321_v11 }
 0x192   : > { %2604 = vmatmul.mubr.bf16.gmra.mrb[52].mxu1 %v5266_v15  ;;  %v942_v15 = vpack.i.b16 %v5315_v5, %v5315_v5 }
 0x193   : > { %2613 = vmatprep.mubr.bf16.mxu1 %v5269_v18 }
 0x194   : > { %v5330_v16 = vrot.slane %v942_v15, %v5321_v11 }
 0x19a   : > { %2614 = vmatmul.mubr.bf16.gmra.mrb[56].mxu1 %v5274_v26 }
 0x19b   : > { %2623 = vmatprep.mubr.bf16.mxu1 %v5277_v28 }
 0x19d   : > { %v780_v18 = vpop.f32.mrb[0].mxu1 }
 0x19e   : > { %v782_v12 = vpop.f32.mrb[1].mxu1 }
 0x19f   : > { %v784_v14 = vpop.f32.mrb[2].mxu1 }
 0x1a0   : > { %v892_v26 = vpack.c.bf16 %v784_v14, %v780_v18  ;;  %v786_v19 = vpop.f32.mrb[3].mxu1 }
 0x1a1   : > { %v893_v20 = vpack.c.bf16 %v786_v19, %v782_v12 }
 0x1a2   : > { %v5333_v21 = vadd.bf16 %v5327_v13, %v892_v26  ;;  %2624 = vmatmul.mubr.bf16.gmra.mrb[60].mxu1 %v5282_v37 }
 0x1a3   : > { %v5337_v22 = vadd.bf16 %v5330_v16, %v893_v20 }
 0x1a4   : > { %v994_v28 = vmul.bf16 1060454197, %v5333_v21 }
 0x1a5   : > { %v995_v23 = vmul.bf16 1060454197, %v5337_v22  ;;  %v790_v24 = vpop.f32.mrb[4].mxu1 }
 0x1a6   : > { %v5343_v25 = vand.u32 2147450879, %v994_v28  ;;  %v792_v27 = vpop.f32.mrb[5].mxu1  ;;  %vm5461_vm0 = vcmp.lt.bf16.partialorder %v994_v28, 0 }
 0x1a7   : > { %v5347_v29 = vand.u32 2147450879, %v995_v23  ;;  %v794_v30 = vpop.f32.mrb[6].mxu1  ;;  %vm1395_vm1 = vcmp.lt.bf16.partialorder %v995_v23, 0 }
 0x1a8   : > { %v1026_v37 = vmul.bf16 1051213480, %v5343_v25  ;;  %v896_v31 = vpack.c.bf16 %v794_v30, %v790_v24  ;;  %v796_v32 = vpop.f32.mrb[7].mxu1  ;;  %v1282_v9 = vmul.bf16 %v5343_v25, %v5343_v25 }
 0x1a9   : > { %v1027_v33 = vmul.bf16 1051213480, %v5347_v29  ;;  %v897_v34 = vpack.c.bf16 %v796_v32, %v792_v27  ;;  %v1283_v19 = vmul.bf16 %v5347_v29, %v5347_v29  ;;  %v5391_v29 = vcombine.high %v5312_v10, %v5312_v10 }
 0x1aa   : > { %v1042_v35 = vadd.bf16 1065369472, %v1026_v37  ;;  %v5352_v36 = vadd.bf16 %v5327_v13, %v896_v31  ;;  %v1298_v37 = vsub.bf16 0, %v1282_v9 }
 0x1ab   : > { %v1043_v38 = vadd.bf16 1065369472, %v1027_v33  ;;  %v5355_v39 = vadd.bf16 %v5330_v16, %v897_v34 }
 0x1ac   : > { %v1058_v40 = vunpack.c.l.bf16 %v1042_v35  ;;  %v1062_v41 = vunpack.c.h.bf16 %v1042_v35  ;;  %v998_v43 = vmul.bf16 1060454197, %v5352_v36 }
 0x1ad   : > { %v1059_v42 = vunpack.c.l.bf16 %v1043_v38  ;;  %v800_v44 = vpop.f32.mrb[8].mxu1  ;;  %v1063_v45 = vunpack.c.h.bf16 %v1043_v38  ;;  %v999_v46 = vmul.bf16 1060454197, %v5355_v39 }
 0x1ae   : > { %v802_v47 = vpop.f32.mrb[9].mxu1  ;;  %4612 = vrcp.f32 %v1058_v40  ;;  %v1014_v48 = vand.u32 2147450879, %v998_v43  ;;  %vm5482_vm2 = vcmp.lt.bf16.partialorder %v998_v43, 0 }
 0x1af   : > { %v804_v49 = vpop.f32.mrb[10].mxu1  ;;  %4614 = vrcp.f32 %v1062_v41  ;;  %v5363_v50 = vand.u32 2147450879, %v999_v46  ;;  %vm1399_vm3 = vcmp.lt.bf16.partialorder %v999_v46, 0 }
 0x1b0   : > { %v900_v51 = vpack.c.bf16 %v804_v49, %v800_v44  ;;  %v806_v52 = vpop.f32.mrb[11].mxu1  ;;  %4616 = vrcp.f32 %v1059_v42  ;;  %v1030_v53 = vmul.bf16 1051213480, %v1014_v48  ;;  %v1286_v31 = vmul.bf16 %v1014_v48, %v1014_v48 }
 0x1b1   : > { %v901_v54 = vpack.c.bf16 %v806_v52, %v802_v47  ;;  %4618 = vrcp.f32 %v1063_v45  ;;  %v1031_v55 = vmul.bf16 1051213480, %v5363_v50  ;;  %v1315_v47 = vmul.bf16 1069105081, %v1298_v37 }
 0x1b2   : > { %v5367_v56 = vadd.bf16 %v5327_v13, %v900_v51  ;;  %v1046_v57 = vadd.bf16 1065369472, %v1030_v53  ;;  %v1302_v48 = vsub.bf16 0, %v1286_v31  ;;  %v1287_v51 = vmul.bf16 %v5363_v50, %v5363_v50 }
 0x1b3   : > { %v5370_v58 = vadd.bf16 %v5330_v16, %v901_v54  ;;  %v1047_v59 = vadd.bf16 1065369472, %v1031_v55 }
 0x1b4   : > { %v1066_v60 = vunpack.c.l.bf16 %v1046_v57  ;;  %v1070_v61 = vunpack.c.h.bf16 %v1046_v57  ;;  %v1002_v62 = vmul.bf16 1060454197, %v5367_v56 }
 0x1b5   : > { %v810_v63 = vpop.f32.mrb[12].mxu1  ;;  %v1067_v0 = vunpack.c.l.bf16 %v1047_v59  ;;  %v1071_v2 = vunpack.c.h.bf16 %v1047_v59  ;;  %v1003_v3 = vmul.bf16 1060454197, %v5370_v58 }
 0x1b6   : > { %v812_v1 = vpop.f32.mrb[13].mxu1  ;;  %4620 = vrcp.f32 %v1066_v60  ;;  %v1018_v17 = vand.u32 2147450879, %v1002_v62  ;;  %vm5507_vm4 = vcmp.lt.bf16.partialorder %v1002_v62, 0 }
 0x1b7   : > { %v814_v6 = vpop.f32.mrb[14].mxu1  ;;  %4622 = vrcp.f32 %v1070_v61  ;;  %v5380_v14 = vand.u32 2147450879, %v1003_v3  ;;  %vm1403_vm5 = vcmp.lt.bf16.partialorder %v1003_v3, 0 }
 0x1b8   : > { %v904_v7 = vpack.c.bf16 %v814_v6, %v810_v63  ;;  %v816_v15 = vpop.f32.mrb[15].mxu1  ;;  %v4613_v18 = vpop.eup %4612  ;;  %v1034_v12 = vmul.bf16 1051213480, %v1018_v17  ;;  %4624 = vrcp.f32 %v1067_v0  ;;  %v1290_v52 = vmul.bf16 %v1018_v17, %v1018_v17 }
 0x1b9   : > { %v4615_v26 = vpop.eup %4614  ;;  %4626 = vrcp.f32 %v1071_v2  ;;  %v1035_v27 = vmul.bf16 1051213480, %v5380_v14  ;;  %v905_v41 = vpack.c.bf16 %v816_v15, %v812_v1  ;;  %v949_v63 = vpack.i.b16 %v5391_v29, %v5391_v29 }
 0x1ba   : > { %v5385_v20 = vadd.bf16 %v5327_v13, %v904_v7  ;;  %v4617_v24 = vpop.eup %4616  ;;  %v1050_v25 = vadd.bf16 1065369472, %v1034_v12  ;;  %v5393_v38 = vpack.c.bf16 %v4615_v26, %v4613_v18  ;;  %v1299_v13 = vsub.bf16 0, %v1283_v19 }
 0x1bb   : > { %v4619_v30 = vpop.eup %4618  ;;  %v1051_v35 = vadd.bf16 1065369472, %v1035_v27  ;;  %v5405_v53 = vadd.bf16 %v5330_v16, %v905_v41  ;;  %v1327_v16 = vmul.bf16 1069105081, %v1302_v48  ;;  %v5416_v1 = vcombine.high %v5315_v5, %v5315_v5 }
 0x1bc   : > { %v1006_v32 = vmul.bf16 1060454197, %v5385_v20  ;;  %v1074_v33 = vunpack.c.l.bf16 %v1050_v25  ;;  %v1078_v34 = vunpack.c.h.bf16 %v1050_v25  ;;  %v5399_v45 = vpack.c.bf16 %v4619_v30, %v4617_v24 }
 0x1bd   : > { %v1075_v42 = vunpack.c.l.bf16 %v1051_v35  ;;  %v1079_v44 = vunpack.c.h.bf16 %v1051_v35  ;;  %v1138_v59 = vmul.bf16 1065893768, %v5393_v38  ;;  %v1007_v61 = vmul.bf16 1060454197, %v5405_v53 }
 0x1be   : > { %v5397_v40 = vand.u32 2147450879, %v1006_v32  ;;  %4628 = vrcp.f32 %v1074_v33  ;;  %v1139_v54 = vmul.bf16 1065893768, %v5399_v45  ;;  %v1318_v0 = vmul.bf16 1069105081, %v1299_v13 }
 0x1bf   : > { %4630 = vrcp.f32 %v1078_v34  ;;  %v1303_v17 = vsub.bf16 0, %v1287_v51  ;;  %v1306_v6 = vsub.bf16 0, %v1290_v52  ;;  %v5420_v9 = vand.u32 2147450879, %v1007_v61 }
 0x1c0   : > { %v1038_v49 = vmul.bf16 1051213480, %v5397_v40  ;;  %v4621_v10 = vpop.eup %4620  ;;  %4632 = vrcp.f32 %v1075_v42  ;;  %v1155_v7 = vadd.bf16 3216687034, %v1139_v54  ;;  %v1154_v12 = vadd.bf16 3216687034, %v1138_v59 }
 0x1c1   : > { %v4623_v55 = vpop.eup %4622  ;;  %4634 = vrcp.f32 %v1079_v44  ;;  %v1291_v19 = vmul.bf16 %v5380_v14, %v5380_v14  ;;  %v1039_v5 = vmul.bf16 1051213480, %v5420_v9  ;;  %v1330_v33 = vmul.bf16 1069105081, %v1303_v17 }
 0x1c2   : > { %v1054_v57 = vadd.bf16 1065369472, %v1038_v49  ;;  %v5409_v60 = vpack.c.bf16 %v4623_v55, %v4621_v10  ;;  %v4625_v50 = vpop.eup %4624  ;;  %4636 = vpow.bf16 %v1315_v47  ;;  %v1171_v25 = vmul.bf16 %v1155_v7, %v5399_v45 }
 0x1c3   : > { %v4627_v2 = vpop.eup %4626  ;;  %4638 = vpow.bf16 %v1318_v0  ;;  %v1170_v27 = vmul.bf16 %v1154_v12, %v5393_v38  ;;  %v1055_v34 = vadd.bf16 1065369472, %v1039_v5  ;;  %v1339_v44 = vmul.bf16 1069105081, %v1306_v6 }
 0x1c4   : > { %v5422_v15 = vpack.c.bf16 %v4627_v2, %v4625_v50  ;;  %v1082_v18 = vunpack.c.l.bf16 %v1054_v57  ;;  %v1142_v26 = vmul.bf16 1065893768, %v5409_v60  ;;  %v1086_v24 = vunpack.c.h.bf16 %v1054_v57 }
 0x1c5   : > { %4640 = vpow.bf16 %v1327_v16  ;;  %v1187_v35 = vadd.bf16 1068908470, %v1171_v25  ;;  %v1186_v13 = vadd.bf16 1068908470, %v1170_v27  ;;  %v1307_v47 = vsub.bf16 0, %v1291_v19 }
 0x1c6   : > { %v1143_v30 = vmul.bf16 1065893768, %v5422_v15  ;;  %v1158_v37 = vadd.bf16 3216687034, %v1142_v26  ;;  %4642 = vrcp.f32 %v1082_v18  ;;  %v1083_v55 = vunpack.c.l.bf16 %v1055_v34 }
 0x1c7   : > { %4644 = vrcp.f32 %v1086_v24  ;;  %v1203_v49 = vmul.bf16 %v1187_v35, %v5399_v45  ;;  %v1202_v10 = vmul.bf16 %v1186_v13, %v5393_v38  ;;  %v5438_v57 = vrot.slane %v949_v63, %v5321_v11 }
 0x1c8   : > { %v4629_v31 = vpop.eup %4628  ;;  %v1159_v14 = vadd.bf16 3216687034, %v1143_v30  ;;  %v1174_v41 = vmul.bf16 %v1158_v37, %v5409_v60  ;;  %4646 = vpow.bf16 %v1330_v33  ;;  %v1087_v0 = vunpack.c.h.bf16 %v1055_v34 }
 0x1c9   : > { %v4631_v29 = vpop.eup %4630  ;;  %v1219_v16 = vadd.bf16 3197288082, %v1203_v49  ;;  %v1218_v2 = vadd.bf16 3197288082, %v1202_v10  ;;  %v1342_v6 = vmul.bf16 1069105081, %v1307_v47  ;;  %4648 = vpow.bf16 %v1339_v44 }
 0x1ca   : > { %v5432_v42 = vpack.c.bf16 %v4631_v29, %v4629_v31  ;;  %v4633_v48 = vpop.eup %4632  ;;  %v1175_v51 = vmul.bf16 %v1159_v14, %v5422_v15  ;;  %v1190_v52 = vadd.bf16 1068908470, %v1174_v41  ;;  %4650 = vrcp.f32 %v1083_v55 }
 0x1cb   : > { %v4635_v54 = vpop.eup %4634  ;;  %v1235_v26 = vmul.bf16 %v1219_v16, %v5399_v45  ;;  %v1234_v19 = vmul.bf16 %v1218_v2, %v5393_v38  ;;  %4652 = vrcp.f32 %v1087_v0  ;;  %v956_v33 = vpack.i.b16 %v5416_v1, %v5416_v1 }
 0x1cc   : > { %v1146_v59 = vmul.bf16 1065893768, %v5432_v42  ;;  %v5441_v50 = vpack.c.bf16 %v4635_v54, %v4633_v48  ;;  %v1191_v7 = vadd.bf16 1068908470, %v1175_v51  ;;  %v1206_v18 = vmul.bf16 %v1190_v52, %v5409_v60 }
 0x1cd   : > { %v4637_v17 = vpop.eup %4636  ;;  %v1251_v27 = vadd.bf16 1048723074, %v1235_v26  ;;  %v1250_v30 = vadd.bf16 1048723074, %v1234_v19  ;;  %4654 = vpow.bf16 %v1342_v6  ;;  %v978_v49 = vmul.bf16 1056980736, %v5333_v21 }
 0x1ce   : > { %v1162_v12 = vadd.bf16 3216687034, %v1146_v59  ;;  %v1147_v63 = vmul.bf16 1065893768, %v5441_v50  ;;  %v1207_v24 = vmul.bf16 %v1191_v7, %v5422_v15  ;;  %v1222_v5 = vadd.bf16 3197288082, %v1206_v18  ;;  %v4639_v31 = vpop.eup %4638 }
 0x1cf   : > { %v1267_v41 = vmul.bf16 %v1251_v27, %v5399_v45  ;;  %v1266_v44 = vmul.bf16 %v1250_v30, %v5393_v38  ;;  %v979_v52 = vmul.bf16 1056980736, %v5337_v22  ;;  %v982_v26 = vmul.bf16 1056980736, %v5352_v36  ;;  %v4468_v45 = vld [vmem:[#allocation9 + $0x100] ss:$8 sps:$4 sm:$0xff]  }
 0x1d0   : > { %v1178_v25 = vmul.bf16 %v1162_v12, %v5432_v42  ;;  %v1163_v37 = vadd.bf16 3216687034, %v1147_v63  ;;  %v1223_v34 = vadd.bf16 3197288082, %v1207_v24  ;;  %v1238_v35 = vmul.bf16 %v1222_v5, %v5409_v60  ;;  %v4641_v13 = vpop.eup %4640 }
 0x1d1   : > { %v4643_v14 = vpop.eup %4642  ;;  %v1363_v54 = vmul.bf16 %v4639_v31, %v1267_v41  ;;  %v1362_v55 = vmul.bf16 %v4637_v17, %v1266_v44  ;;  %v4479_v44 = vld [vmem:[#allocation9 + $0x134] ss:$8 sps:$4 sm:$0xff]   ;;  %vm5598_vm6 = vcmp.lt.bf16.partialorder %v1006_v32, 0  ;;  %vm5622_vm7 = vcmp.lt.bf16.partialorder %v1007_v61, 0 }
 0x1d2   : > { %v1194_v29 = vadd.bf16 1068908470, %v1178_v25  ;;  %v1179_v47 = vmul.bf16 %v1163_v37, %v5441_v50  ;;  %v4645_v48 = vpop.eup %4644  ;;  %v1239_v10 = vmul.bf16 %v1223_v34, %v5422_v15  ;;  %v1254_v51 = vadd.bf16 1048723074, %v1238_v35 }
 0x1d3   : > { %v4647_v2 = vpop.eup %4646  ;;  %v5466_v6 = vpack.c.bf16 %v4645_v48, %v4643_v14  ;;  %v1379_v7 = vsub.bf16 1065369472, %v1363_v54  ;;  %v1378_v18 = vsub.bf16 1065369472, %v1362_v55  ;;  %v983_v25 = vmul.bf16 1056980736, %v5355_v39 }
 0x1d4   : > { %v1210_v1 = vmul.bf16 %v1194_v29, %v5432_v42  ;;  %v1195_v59 = vadd.bf16 1068908470, %v1179_v47  ;;  %v1255_v38 = vadd.bf16 1048723074, %v1239_v10  ;;  %v1270_v0 = vmul.bf16 %v1254_v51, %v5409_v60  ;;  %v4649_v24 = vpop.eup %4648 }
 0x1d5   : > { %v1411_v19 = vsub.bf16 0, %v1379_v7  ;;  %v1410_v60 = vsub.bf16 0, %v1378_v18  ;;  %v4651_v5 = vpop.eup %4650  ;;  %v1150_v34 = vmul.bf16 1065893768, %v5466_v6  ;;  %v5487_v48 = vrot.slane %v956_v33, %v5321_v11 }
 0x1d6   : > { %v1226_v16 = vadd.bf16 3197288082, %v1210_v1  ;;  %v1211_v12 = vmul.bf16 %v1195_v59, %v5441_v50  ;;  %v1271_v21 = vmul.bf16 %v1255_v38, %v5422_v15  ;;  %v1366_v28 = vmul.bf16 %v4641_v13, %v1270_v0  ;;  %v4653_v31 = vpop.eup %4652  ;;  %v4473_v0 = vld [vmem:[#allocation9 + $0x114] ss:$8 sps:$4 sm:$0xff]  }
 0x1d7   : > { %v1427_v22 = vsel %vm1395_vm1, %v1411_v19, %v1379_v7  ;;  %v1426_v23 = vsel %vm5461_vm0, %v1410_v60, %v1378_v18  ;;  %v5489_v54 = vpack.c.bf16 %v4653_v31, %v4651_v5  ;;  %v987_v18 = vmul.bf16 1056980736, %v5370_v58 }
 0x1d8   : > { %v1242_v17 = vmul.bf16 %v1226_v16, %v5432_v42  ;;  %v1227_v63 = vadd.bf16 3197288082, %v1211_v12  ;;  %v1367_v27 = vmul.bf16 %v4647_v2, %v1271_v21  ;;  %v1382_v30 = vsub.bf16 1065369472, %v1366_v28  ;;  %v4655_v1 = vpop.eup %4654  ;;  %v4471_v12 = vld [vmem:[#allocation9 + $0x110] ss:$8 sps:$4 sm:$0xff]  }
 0x1d9   : > { %v1443_v35 = vadd.bf16 1065369472, %v1427_v22  ;;  %v1442_v29 = vadd.bf16 1065369472, %v1426_v23  ;;  %v1166_v60 = vadd.bf16 3216687034, %v1150_v34 }
 0x1da   : > { %v1258_v37 = vadd.bf16 1048723074, %v1242_v17  ;;  %v1243_v15 = vmul.bf16 %v1227_v63, %v5441_v50  ;;  %v1414_v14 = vsub.bf16 0, %v1382_v30  ;;  %v1383_v10 = vsub.bf16 1065369472, %v1367_v27 }
 0x1db   : > { %v1459_v55 = vmul.bf16 %v1443_v35, %v979_v52  ;;  %v1458_v59 = vmul.bf16 %v1442_v29, %v978_v49  ;;  %v4476_v17 = vld [vmem:[#allocation9 + $0x124] ss:$8 sps:$4 sm:$0xff]   ;;  %v1151_v63 = vmul.bf16 1065893768, %v5489_v54  ;;  %v4474_v35 = vld [vmem:[#allocation9 + $0x120] ss:$8 sps:$4 sm:$0xff]  }
 0x1dc   : > { %v1274_v41 = vmul.bf16 %v1258_v37, %v5432_v42  ;;  %v1259_v51 = vadd.bf16 1048723074, %v1243_v15  ;;  %v1415_v2 = vsub.bf16 0, %v1383_v10  ;;  %v1430_v7 = vsel %vm5482_vm2, %v1414_v14, %v1382_v30  ;;  %v4485_v30 = vld [vmem:[#allocation9 + $0x154] ss:$8 sps:$4 sm:$0xff]  }
 0x1dd   : > { %v853_v13 = vpop.f32.mrb[16].mxu1  ;;  %1909 = vmatprep.mubr.bf16.mxu0 %v1459_v55  ;;  %v1446_v46 = vadd.bf16 1065369472, %v1430_v7  ;;  %v1294_v37 = vmul.bf16 %v5397_v40, %v5397_v40  ;;  %v1295_v15 = vmul.bf16 %v5420_v9, %v5420_v9  ;;  %v1167_v14 = vadd.bf16 3216687034, %v1151_v63 }
 0x1de   : > { %v855_v47 = vpop.f32.mrb[17].mxu1  ;;  %v1370_v42 = vmul.bf16 %v4649_v24, %v1274_v41  ;;  %v1275_v33 = vmul.bf16 %v1259_v51, %v5441_v50  ;;  %1910 = vmatmul.mubr.bf16.vlgmr.msra.gmra.mrb[0].mxu0 %v1458_v59  ;;  %v1431_v28 = vsel %vm1399_vm3, %v1415_v2, %v1383_v10  ;;  %v986_v7 = vmul.bf16 1056980736, %v5367_v56 }
 0x1df   : > { %v857_v38 = vpop.f32.mrb[18].mxu1  ;;  %1951 = vmatpush1.bf16.msra.mxu0 %v4468_v45  ;;  %v1447_v39 = vadd.bf16 1065369472, %v1431_v28  ;;  %v1462_v9 = vmul.bf16 %v1446_v46, %v982_v26  ;;  %v1310_v3 = vsub.bf16 0, %v1294_v37  ;;  %v1311_v45 = vsub.bf16 0, %v1295_v15 }
 0x1e0   : > { %v894_v16 = vpack.c.bf16 %v857_v38, %v853_v13  ;;  %v859_v43 = vpop.f32.mrb[19].mxu1  ;;  %v1386_v49 = vsub.bf16 1065369472, %v1370_v42  ;;  %v1371_v19 = vmul.bf16 %v4655_v1, %v1275_v33  ;;  %1952 = vmatprep.subr.bf16.mxu0 %v4473_v0  ;;  %v1182_v13 = vmul.bf16 %v1166_v60, %v5466_v6  ;;  %v4477_v0 = vld [vmem:[#allocation9 + $0x130] ss:$8 sps:$4 sm:$0xff]  }
 0x1e1   : > { %v895_v52 = vpack.c.bf16 %v859_v43, %v855_v47  ;;  %v1463_v22 = vmul.bf16 %v1447_v39, %v983_v25  ;;  %v1351_v28 = vmul.bf16 1069105081, %v1310_v3  ;;  %v1354_v39 = vmul.bf16 1069105081, %v1311_v45 }
 0x1e2   : > { %v5498_v21 = vadd.bf16 %v5438_v57, %v894_v16  ;;  %v1387_v5 = vsub.bf16 1065369472, %v1371_v19  ;;  %v1418_v27 = vsub.bf16 0, %v1386_v49  ;;  %v1198_v38 = vadd.bf16 1068908470, %v1182_v13 }
 0x1e3   : > { %v5501_v50 = vadd.bf16 %v5487_v48, %v895_v52  ;;  %1953 = vmatpush1.bf16.msra.mxu0 %v4471_v12  ;;  %1919 = vmatprep.mubr.bf16.mxu0 %v1463_v22  ;;  %v1183_v12 = vmul.bf16 %v1167_v14, %v5489_v54  ;;  %v4480_v19 = vld [vmem:[#allocation9 + $0x140] ss:$8 sps:$4 sm:$0xff]  }
 0x1e4   : > { %v996_v24 = vmul.bf16 1060454197, %v5498_v21  ;;  %v1419_v62 = vsub.bf16 0, %v1387_v5  ;;  %1954 = vmatprep.subr.bf16.mxu0 %v4476_v17  ;;  %v1434_v58 = vsel %vm5507_vm4, %v1418_v27, %v1386_v49  ;;  %v4482_v49 = vld [vmem:[#allocation9 + $0x144] ss:$8 sps:$4 sm:$0xff]   ;;  %v1214_v63 = vmul.bf16 %v1198_v38, %v5466_v6 }
 0x1e5   : > { %v997_v31 = vmul.bf16 1060454197, %v5501_v50  ;;  %v863_v23 = vpop.f32.mrb[20].mxu1  ;;  %v1450_v2 = vadd.bf16 1065369472, %v1434_v58 }
 0x1e6   : > { %v5518_v34 = vand.u32 2147450879, %v996_v24  ;;  %v865_v29 = vpop.f32.mrb[21].mxu1  ;;  %v1435_v51 = vsel %vm1403_vm5, %v1419_v62, %v1387_v5  ;;  %1920 = vmatmul.mubr.bf16.gmra.mrb[4].mxu0 %v1462_v9  ;;  %v4488_v58 = vld [vmem:[#allocation9 + $0x164] ss:$8 sps:$4 sm:$0xff]   ;;  %vm1396_vm8 = vcmp.lt.bf16.partialorder %v996_v24, 0 }
 0x1e7   : > { %v5525_v40 = vand.u32 2147450879, %v997_v31  ;;  %v867_v25 = vpop.f32.mrb[22].mxu1  ;;  %v1451_v59 = vadd.bf16 1065369472, %v1435_v51  ;;  %1955 = vmatpush1.bf16.msra.mxu0 %v4474_v35  ;;  %v1466_v27 = vmul.bf16 %v1450_v2, %v986_v7  ;;  %vm1397_vm9 = vcmp.lt.bf16.partialorder %v997_v31, 0 }
 0x1e8   : > { %v1028_v41 = vmul.bf16 1051213480, %v5518_v34  ;;  %v898_v47 = vpack.c.bf16 %v867_v25, %v863_v23  ;;  %v869_v10 = vpop.f32.mrb[23].mxu1  ;;  %1956 = vmatprep.subr.bf16.mxu0 %v4479_v44 }
 0x1e9   : > { %v1029_v1 = vmul.bf16 1051213480, %v5525_v40  ;;  %v899_v55 = vpack.c.bf16 %v869_v10, %v865_v29  ;;  %v1467_v43 = vmul.bf16 %v1451_v59, %v987_v18  ;;  %v1199_v29 = vadd.bf16 1068908470, %v1183_v12  ;;  %v4491_v12 = vld [vmem:[#allocation9 + $0x174] ss:$8 sps:$4 sm:$0xff]  }
 0x1ea   : > { %v1044_v36 = vadd.bf16 1065369472, %v1028_v41  ;;  %v5534_v26 = vadd.bf16 %v5438_v57, %v898_v47  ;;  %v4483_v41 = vld [vmem:[#allocation9 + $0x150] ss:$8 sps:$4 sm:$0xff]   ;;  %v1230_v47 = vadd.bf16 3197288082, %v1214_v63  ;;  %v1284_v59 = vmul.bf16 %v5518_v34, %v5518_v34 }
 0x1eb   : > { %v1045_v42 = vadd.bf16 1065369472, %v1029_v1  ;;  %v5537_v16 = vadd.bf16 %v5487_v48, %v899_v55  ;;  %1929 = vmatprep.mubr.bf16.mxu0 %v1467_v43  ;;  %1957 = vmatpush1.bf16.msra.mxu0 %v4477_v0  ;;  %v1215_v51 = vmul.bf16 %v1199_v29, %v5489_v54 }
 0x1ec   : > { %v1060_v33 = vunpack.c.l.bf16 %v1044_v36  ;;  %v1064_v52 = vunpack.c.h.bf16 %v1044_v36  ;;  %v1000_v17 = vmul.bf16 1060454197, %v5534_v26  ;;  %1958 = vmatprep.subr.bf16.mxu0 %v4482_v49  ;;  %v4486_v36 = vld [vmem:[#allocation9 + $0x160] ss:$8 sps:$4 sm:$0xff]   ;;  %v1246_v2 = vmul.bf16 %v1230_v47, %v5466_v6 }
 0x1ed   : > { %v873_v60 = vpop.f32.mrb[24].mxu1  ;;  %v1001_v46 = vmul.bf16 1060454197, %v5537_v16  ;;  %v1061_v56 = vunpack.c.l.bf16 %v1045_v42  ;;  %v1065_v22 = vunpack.c.h.bf16 %v1045_v42  ;;  %v1231_v34 = vadd.bf16 3197288082, %v1215_v51 }
 0x1ee   : > { %4656 = vrcp.f32 %v1060_v33  ;;  %v875_v18 = vpop.f32.mrb[25].mxu1  ;;  %v5546_v5 = vand.u32 2147450879, %v1000_v17  ;;  %1930 = vmatmul.mubr.bf16.gmra.mrb[8].mxu0 %v1466_v27  ;;  %v5585_v27 = vsub.bf16 0, %v1284_v59  ;;  %v990_v47 = vmul.bf16 1056980736, %v5385_v20 }
 0x1ef   : > { %4658 = vrcp.f32 %v1064_v52  ;;  %v877_v37 = vpop.f32.mrb[26].mxu1  ;;  %v5550_v23 = vand.u32 2147450879, %v1001_v46  ;;  %1959 = vmatpush1.bf16.msra.mxu0 %v4480_v19  ;;  %vm1401_vm10 = vcmp.lt.bf16.partialorder %v1001_v46, 0  ;;  %vm1400_vm11 = vcmp.lt.bf16.partialorder %v1000_v17, 0 }
 0x1f0   : > { %v902_v15 = vpack.c.bf16 %v877_v37, %v873_v60  ;;  %v879_v35 = vpop.f32.mrb[27].mxu1  ;;  %4660 = vpow.bf16 %v1351_v28  ;;  %v1032_v62 = vmul.bf16 1051213480, %v5546_v5  ;;  %1960 = vmatprep.subr.bf16.mxu0 %v4485_v30  ;;  %v1247_v30 = vmul.bf16 %v1231_v34, %v5489_v54  ;;  %v4489_v37 = vld [vmem:[#allocation9 + $0x170] ss:$8 sps:$4 sm:$0xff]  }
 0x1f1   : > { %v903_v13 = vpack.c.bf16 %v879_v35, %v875_v18  ;;  %4662 = vpow.bf16 %v1354_v39  ;;  %v1033_v9 = vmul.bf16 1051213480, %v5550_v23  ;;  %v5572_v33 = vld.sshfl [vmem:[#allocation8 + $0x4] sm:$0x33 pattern:$0x75316420]  ;;  %v1285_v39 = vmul.bf16 %v5525_v40, %v5525_v40 }
 0x1f2   : > { %v5555_v25 = vadd.bf16 %v5438_v57, %v902_v15  ;;  %4664 = vrcp.f32 %v1061_v56  ;;  %v1048_v14 = vadd.bf16 1065369472, %v1032_v62  ;;  %v1262_v40 = vadd.bf16 1048723074, %v1246_v2 }
 0x1f3   : > { %v5558_v44 = vadd.bf16 %v5487_v48, %v903_v13  ;;  %4666 = vrcp.f32 %v1065_v22  ;;  %v1049_v10 = vadd.bf16 1065369472, %v1033_v9  ;;  %1961 = vmatpush1.bf16.msra.mxu0 %v4483_v41  ;;  %v1263_v62 = vadd.bf16 1048723074, %v1247_v30  ;;  %v4494_v13 = vld [vmem:[#allocation9 + $0x184] ss:$8 sps:$4 sm:$0xff]  }
 0x1f4   : > { %v1068_v3 = vunpack.c.l.bf16 %v1048_v14  ;;  %v1004_v1 = vmul.bf16 1060454197, %v5555_v25  ;;  %v1072_v45 = vunpack.c.h.bf16 %v1048_v14  ;;  %1962 = vmatprep.subr.bf16.mxu0 %v4488_v58  ;;  %v5592_v9 = vrot.slane %v5572_v33, %v5308_v8 }
 0x1f5   : > { %v883_v55 = vpop.f32.mrb[28].mxu1  ;;  %v1069_v42 = vunpack.c.l.bf16 %v1049_v10  ;;  %v1005_v43 = vmul.bf16 1060454197, %v5558_v44  ;;  %v1073_v49 = vunpack.c.h.bf16 %v1049_v10  ;;  %v991_v10 = vmul.bf16 1056980736, %v5405_v53 }
 0x1f6   : > { %v5564_v38 = vpop.f32.mrb[29].mxu1  ;;  %v5568_v0 = vand.u32 2147450879, %v1004_v1  ;;  %4668 = vrcp.f32 %v1068_v3  ;;  %v1321_v2 = vmul.bf16 1069105081, %v5585_v27  ;;  %v1289_v30 = vmul.bf16 %v5550_v23, %v5550_v23 }
 0x1f7   : > { %v887_v7 = vpop.f32.mrb[30].mxu1  ;;  %v5581_v63 = vand.u32 2147450879, %v1005_v43  ;;  %4670 = vrcp.f32 %v1072_v45  ;;  %1963 = vmatpush1.bf16.msra.mxu0 %v4486_v36  ;;  %v5602_v45 = vsub.bf16 0, %v1285_v39  ;;  %v4497_v39 = vld [vmem:[#allocation9 + $0x194] ss:$8 sps:$4 sm:$0xff]  }
 0x1f8   : > { %v4657_v52 = vpop.eup %4656  ;;  %v906_v28 = vpack.c.bf16 %v887_v7, %v883_v55  ;;  %v5574_v19 = vpop.f32.mrb[31].mxu1  ;;  %v1036_v18 = vmul.bf16 1051213480, %v5568_v0  ;;  %4672 = vrcp.f32 %v1069_v42  ;;  %1964 = vmatprep.subr.bf16.mxu0 %v4491_v12  ;;  %v1279_v42 = vmul.bf16 %v1263_v62, %v5489_v54 }
 0x1f9   : > { %v4659_v60 = vpop.eup %4658  ;;  %v1037_v15 = vmul.bf16 1051213480, %v5581_v63  ;;  %4674 = vrcp.f32 %v1073_v49  ;;  %v1278_v7 = vmul.bf16 %v1262_v40, %v5466_v6  ;;  %v907_v32 = vpack.c.bf16 %v5574_v19, %v5564_v38  ;;  %v4492_v49 = vld [vmem:[#allocation9 + $0x180] ss:$8 sps:$4 sm:$0xff]  }
 0x1fa   : > { %v5583_v56 = vpack.c.bf16 %v4659_v60, %v4657_v52  ;;  %v1052_v22 = vadd.bf16 1065369472, %v1036_v18  ;;  %v5608_v52 = vadd.bf16 %v5438_v57, %v906_v28  ;;  %v1288_v57 = vmul.bf16 %v5546_v5, %v5546_v5  ;;  %v4495_v28 = vld [vmem:[#allocation9 + $0x190] ss:$8 sps:$4 sm:$0xff]  }
 0x1fb   : > { %v4661_v35 = vpop.eup %4660  ;;  %v1053_v36 = vadd.bf16 1065369472, %v1037_v15  ;;  %1965 = vmatpush1.bf16.msra.mxu0 %v4489_v37  ;;  %v4500_v15 = vld [vmem:[#allocation9 + $0x1a4] ss:$8 sps:$4 sm:$0xff]   ;;  %vm5757_vm12 = vcmp.lt.bf16.partialorder %v1004_v1, 0  ;;  %vm5767_vm13 = vcmp.lt.bf16.partialorder %v1005_v43, 0 }
 0x1fc   : > { %v1140_v29 = vmul.bf16 1065893768, %v5583_v56  ;;  %v4663_v14 = vpop.eup %4662  ;;  %v1076_v51 = vunpack.c.l.bf16 %v1052_v22  ;;  %v1080_v58 = vunpack.c.h.bf16 %v1052_v22  ;;  %1966 = vmatprep.subr.bf16.mxu0 %v4494_v13  ;;  %v1374_v6 = vmul.bf16 %v4661_v35, %v1278_v7 }
 0x1fd   : > { %v4665_v41 = vpop.eup %4664  ;;  %v1077_v12 = vunpack.c.l.bf16 %v1053_v36  ;;  %v1081_v60 = vunpack.c.h.bf16 %v1053_v36  ;;  %v1375_v18 = vmul.bf16 %v4663_v14, %v1279_v42  ;;  %v1008_v38 = vmul.bf16 1060454197, %v5608_v52 }
 0x1fe   : > { %v4667_v3 = vpop.eup %4666  ;;  %v1156_v59 = vadd.bf16 3216687034, %v1140_v29  ;;  %4676 = vrcp.f32 %v1076_v51  ;;  %v1390_v22 = vsub.bf16 1065369472, %v1374_v6  ;;  %v1324_v29 = vmul.bf16 1069105081, %v5602_v45 }
 0x1ff   : > { %v5613_v54 = vpack.c.bf16 %v4667_v3, %v4665_v41  ;;  %4678 = vrcp.f32 %v1080_v58  ;;  %v1391_v37 = vsub.bf16 1065369472, %v1375_v18  ;;  %1967 = vmatpush1.bf16.msra.mxu0 %v4492_v49  ;;  %v5630_v62 = vand.u32 2147450879, %v1008_v38  ;;  %v4498_v45 = vld [vmem:[#allocation9 + $0x1a0] ss:$8 sps:$4 sm:$0xff]  }
 0x200   : > { %v1172_v34 = vmul.bf16 %v1156_v59, %v5583_v56  ;;  %4680 = vrcp.f32 %v1077_v12  ;;  %v4669_v19 = vpop.eup %4668  ;;  %1968 = vmatprep.subr.bf16.mxu0 %v4497_v39  ;;  %v1422_v14 = vsub.bf16 0, %v1390_v22  ;;  %v5633_v41 = vadd.bf16 %v5487_v48, %v907_v32  ;;  %v4503_v32 = vld [vmem:[#allocation9 + $0x1b4] ss:$8 sps:$4 sm:$0xff]  }
 0x201   : > { %4682 = vrcp.f32 %v1081_v60  ;;  %v4671_v40 = vpop.eup %4670  ;;  %v1423_v13 = vsub.bf16 0, %v1391_v37  ;;  %v1141_v61 = vmul.bf16 1065893768, %v5613_v54  ;;  %v1304_v3 = vsub.bf16 0, %v1288_v57 }
 0x202   : > { %v1188_v27 = vadd.bf16 1068908470, %v1172_v34  ;;  %v4673_v23 = vpop.eup %4672  ;;  %4684 = vpow.bf16 %v1321_v2  ;;  %v1292_v59 = vmul.bf16 %v5568_v0, %v5568_v0  ;;  %v1305_v36 = vsub.bf16 0, %v1289_v30 }
 0x203   : > { %v4675_v51 = vpop.eup %4674  ;;  %v1439_v42 = vsel %vm5622_vm7, %v1423_v13, %v1391_v37  ;;  %v1438_v7 = vsel %vm5598_vm6, %v1422_v14, %v1390_v22  ;;  %v1009_v48 = vmul.bf16 1060454197, %v5633_v41  ;;  %1969 = vmatpush1.bf16.msra.mxu0 %v4495_v28  ;;  %v1040_v12 = vmul.bf16 1051213480, %v5630_v62 }
 0x204   : > { %v1204_v5 = vmul.bf16 %v1188_v27, %v5583_v56  ;;  %v1455_v34 = vadd.bf16 1065369472, %v1439_v42  ;;  %v1454_v2 = vadd.bf16 1065369472, %v1438_v7  ;;  %1970 = vmatprep.subr.bf16.mxu0 %v4500_v15  ;;  %v5645_v0 = vpack.c.bf16 %v4671_v40, %v4669_v19  ;;  %v4501_v19 = vld [vmem:[#allocation9 + $0x1b0] ss:$8 sps:$4 sm:$0xff]  }
 0x205   : > { %v5647_v60 = vpack.c.bf16 %v4675_v51, %v4673_v23  ;;  %v5651_v39 = vand.u32 2147450879, %v1009_v48  ;;  %v1157_v55 = vadd.bf16 3216687034, %v1141_v61  ;;  %v1308_v27 = vsub.bf16 0, %v1292_v59 }
 0x206   : > { %v1220_v58 = vadd.bf16 3197288082, %v1204_v5  ;;  %v1471_v57 = vmul.bf16 %v1455_v34, %v991_v10  ;;  %v1333_v30 = vmul.bf16 1069105081, %v1304_v3  ;;  %v1470_v37 = vmul.bf16 %v1454_v2, %v990_v47  ;;  %v4506_v10 = vld [vmem:[#allocation9 + $0x1c4] ss:$8 sps:$4 sm:$0xff]  }
 0x207   : > { %1971 = vmatpush1.bf16.msra.mxu0 %v4498_v45  ;;  %v2678_v22 = vpack.i.b16 %v5592_v9, %v5592_v9  ;;  %v2660_v15 = vcombine.high %v5572_v33, %v5572_v33  ;;  %v1336_v35 = vmul.bf16 1069105081, %v1305_v36  ;;  %v1293_v5 = vmul.bf16 %v5581_v63, %v5581_v63  ;;  %v4509_v42 = vld [vmem:[#allocation9 + $0x1d4] ss:$8 sps:$4 sm:$0xff]  }
 0x208   : > { %v1236_v49 = vmul.bf16 %v1220_v58, %v5583_v56  ;;  %v4677_v18 = vpop.eup %4676  ;;  %1939 = vmatprep.mubr.bf16.mxu0 %v1471_v57  ;;  %v1056_v53 = vadd.bf16 1065369472, %v1040_v12  ;;  %1972 = vmatprep.subr.bf16.mxu0 %v4503_v32  ;;  %v1173_v20 = vmul.bf16 %v1157_v55, %v5613_v54  ;;  %4686 = vpow.bf16 %v1324_v29  ;;  %v4504_v58 = vld [vmem:[#allocation9 + $0x1c0] ss:$8 sps:$4 sm:$0xff]   ;;  %v4512_v55 = vld [vmem:[#allocation9 + $0x1e4] ss:$8 sps:$4 sm:$0xff]  }
 0x209   : > { %v4679_v28 = vpop.eup %4678  ;;  %1940 = vmatmul.mubr.bf16.gmra.mrb[12].mxu0 %v1470_v37  ;;  %v1041_v23 = vmul.bf16 1051213480, %v5651_v39  ;;  %v1145_v13 = vmul.bf16 1065893768, %v5647_v60  ;;  %v1144_v33 = vmul.bf16 1065893768, %v5645_v0  ;;  %4688 = vpow.bf16 %v1333_v30 }
 0x20a   : > { %v1252_v6 = vadd.bf16 1048723074, %v1236_v49  ;;  %v4681_v40 = vpop.eup %4680  ;;  %v5668_v61 = vpack.c.bf16 %v4679_v28, %v4677_v18  ;;  %v1345_v63 = vmul.bf16 1069105081, %v1308_v27  ;;  %v1189_v3 = vadd.bf16 1068908470, %v1173_v20 }
 0x20b   : > { %v4683_v47 = vpop.eup %4682  ;;  %1973 = vmatpush1.bf16.msra.mxu0 %v4501_v19  ;;  %v5673_v29 = vrot.slane %v2660_v15, %v5308_v8  ;;  %v1161_v59 = vadd.bf16 3216687034, %v1145_v13  ;;  %4690 = vpow.bf16 %v1336_v35  ;;  %v1309_v45 = vsub.bf16 0, %v1293_v5  ;;  %v4507_v8 = vld [vmem:[#allocation9 + $0x1d0] ss:$8 sps:$4 sm:$0xff]  }
 0x20c   : > { %v1268_v14 = vmul.bf16 %v1252_v6, %v5583_v56  ;;  %v5670_v51 = vpack.c.bf16 %v4683_v47, %v4681_v40  ;;  %v1084_v36 = vunpack.c.l.bf16 %v1056_v53  ;;  %1974 = vmatprep.subr.bf16.mxu0 %v4506_v10  ;;  %v1160_v7 = vadd.bf16 3216687034, %v1144_v33 }
 0x20d   : > { %v4685_v56 = vpop.eup %4684  ;;  %v1057_v32 = vadd.bf16 1065369472, %v1041_v23  ;;  %v1205_v49 = vmul.bf16 %v1189_v3, %v5613_v54  ;;  %v1177_v34 = vmul.bf16 %v1161_v59, %v5647_v60  ;;  %4692 = vpow.bf16 %v1345_v63  ;;  %v4515_v3 = vld [vmem:[#allocation9 + $0x1f4] ss:$8 sps:$4 sm:$0xff]  }
 0x20e   : > { %v1149_v2 = vmul.bf16 1065893768, %v5670_v51  ;;  %v5678_v12 = vmul.bf16 %v4685_v56, %v1268_v14  ;;  %v1176_v18 = vmul.bf16 %v1160_v7, %v5645_v0  ;;  %v1148_v6 = vmul.bf16 1065893768, %v5668_v61 }
 0x20f   : > { %v1088_v27 = vunpack.c.h.bf16 %v1056_v53  ;;  %1975 = vmatpush1.bf16.msra.mxu0 %v4504_v58  ;;  %v1221_v57 = vadd.bf16 3197288082, %v1205_v49  ;;  %v1193_v28 = vadd.bf16 1068908470, %v1177_v34  ;;  %v1348_v37 = vmul.bf16 1069105081, %v1309_v45 }
 0x210   : > { %v1165_v30 = vadd.bf16 3216687034, %v1149_v2  ;;  %4694 = vrcp.f32 %v1084_v36  ;;  %1976 = vmatprep.subr.bf16.mxu0 %v4509_v42  ;;  %v1192_v19 = vadd.bf16 1068908470, %v1176_v18  ;;  %v1164_v15 = vadd.bf16 3216687034, %v1148_v6 }
 0x211   : > { %v1085_v40 = vunpack.c.l.bf16 %v1057_v32  ;;  %v1237_v35 = vmul.bf16 %v1221_v57, %v5613_v54  ;;  %v1209_v5 = vmul.bf16 %v1193_v28, %v5647_v60  ;;  %v1380_v20 = vsub.bf16 1065369472, %v5678_v12  ;;  %v4510_v53 = vld [vmem:[#allocation9 + $0x1e0] ss:$8 sps:$4 sm:$0xff]   ;;  %v4513_v34 = vld [vmem:[#allocation9 + $0x1f0] ss:$8 sps:$4 sm:$0xff]  }
 0x212   : > { %v1181_v10 = vmul.bf16 %v1165_v30, %v5670_v51  ;;  %v1089_v47 = vunpack.c.h.bf16 %v1057_v32  ;;  %v1208_v23 = vmul.bf16 %v1192_v19, %v5645_v0  ;;  %v1180_v13 = vmul.bf16 %v1164_v15, %v5668_v61  ;;  %v4518_v18 = vld [vmem:[#allocation9 + $0x204] ss:$8 sps:$4 sm:$0xff]  }
 0x213   : > { %4696 = vrcp.f32 %v1088_v27  ;;  %1977 = vmatpush1.bf16.msra.mxu0 %v4507_v8  ;;  %v1253_v33 = vadd.bf16 1048723074, %v1237_v35  ;;  %v1225_v14 = vadd.bf16 3197288082, %v1209_v5  ;;  %v4687_v58 = vpop.eup %4686  ;;  %v2685_v59 = vpack.i.b16 %v5673_v29, %v5673_v29 }
 0x214   : > { %v1197_v63 = vadd.bf16 1068908470, %v1181_v10  ;;  %4698 = vpow.bf16 %v1348_v37  ;;  %1978 = vmatprep.subr.bf16.mxu0 %v4512_v55  ;;  %v1224_v45 = vadd.bf16 3197288082, %v1208_v23  ;;  %v1196_v36 = vadd.bf16 1068908470, %v1180_v13  ;;  %v4689_v32 = vpop.eup %4688 }
 0x215   : > { %4700 = vrcp.f32 %v1085_v40  ;;  %v1269_v42 = vmul.bf16 %v1253_v33, %v5613_v54  ;;  %v1241_v7 = vmul.bf16 %v1225_v14, %v5647_v60  ;;  %v1412_v49 = vsub.bf16 0, %v1380_v20 }
 0x216   : > { %v1213_v56 = vmul.bf16 %v1197_v63, %v5670_v51  ;;  %4702 = vrcp.f32 %v1089_v47  ;;  %v1240_v2 = vmul.bf16 %v1224_v45, %v5645_v0  ;;  %v1212_v12 = vmul.bf16 %v1196_v36, %v5668_v61  ;;  %v4691_v8 = vpop.eup %4690 }
 0x217   : > { %1979 = vmatpush1.bf16.msra.mxu0 %v4510_v53  ;;  %v1365_v55 = vmul.bf16 %v4687_v58, %v1269_v42  ;;  %v5699_v54 = vrot.slane %v2678_v22, %v5321_v11  ;;  %v1257_v6 = vadd.bf16 1048723074, %v1241_v7  ;;  %v980_v57 = vmul.bf16 1056980736, %v5498_v21 }
 0x218   : > { %v1229_v27 = vadd.bf16 3197288082, %v1213_v56  ;;  %1980 = vmatprep.subr.bf16.mxu0 %v4515_v3  ;;  %v5703_v28 = vrot.slane %v2685_v59, %v5321_v11  ;;  %v1256_v30 = vadd.bf16 1048723074, %v1240_v2  ;;  %v1228_v37 = vadd.bf16 3197288082, %v1212_v12  ;;  %v5705_v19 = vpop.eup %4692 }
 0x219   : > { %v1381_v15 = vsub.bf16 1065369472, %v1365_v55  ;;  %v1273_v22 = vmul.bf16 %v1257_v6, %v5647_v60  ;;  %v1428_v10 = vsel %vm1396_vm8, %v1412_v49, %v1380_v20  ;;  %v981_v47 = vmul.bf16 1056980736, %v5501_v50  ;;  %v4516_v6 = vld [vmem:[#allocation9 + $0x200] ss:$8 sps:$4 sm:$0xff]  }
 0x21a   : > { %v1245_v35 = vmul.bf16 %v1229_v27, %v5670_v51  ;;  %v4695_v5 = vpop.eup %4694  ;;  %v1272_v23 = vmul.bf16 %v1256_v30, %v5645_v0  ;;  %v1244_v13 = vmul.bf16 %v1228_v37, %v5668_v61  ;;  %v985_v60 = vmul.bf16 1056980736, %v5537_v16  ;;  %v4521_v16 = vld [vmem:[#allocation9 + $0x214] ss:$8 sps:$4 sm:$0xff]  }
 0x21b   : > { %1981 = vmatpush1.bf16.msra.mxu0 %v4513_v34  ;;  %v1413_v21 = vsub.bf16 0, %v1381_v15  ;;  %v1369_v33 = vmul.bf16 %v4691_v8, %v1273_v22  ;;  %v1444_v45 = vadd.bf16 1065369472, %v1428_v10  ;;  %v1296_v17 = vmul.bf16 %v5630_v62, %v5630_v62 }
 0x21c   : > { %v1261_v14 = vadd.bf16 1048723074, %v1245_v35  ;;  %3620 = vmatprep.subr.bf16.mxu0 %v4518_v18  ;;  %v1368_v58 = vmul.bf16 %v4689_v32, %v1272_v23  ;;  %v1260_v3 = vadd.bf16 1048723074, %v1244_v13  ;;  %vm5842_vm14 = vcmp.lt.bf16.partialorder %v1008_v38, 0 }
 0x21d   : > { %v2522_v40 = vpop.f32.mrb[32].mxu1  ;;  %v4697_v59 = vpop.eup %4696  ;;  %v1429_v0 = vsel %vm1397_vm9, %v1413_v21, %v1381_v15  ;;  %v1385_v42 = vsub.bf16 1065369472, %v1369_v33  ;;  %vm1409_vm15 = vcmp.lt.bf16.partialorder %v1009_v48, 0 }
 0x21e   : > { %v2524_v53 = vpop.f32.mrb[33].mxu1  ;;  %v1445_v7 = vadd.bf16 1065369472, %v1429_v0  ;;  %v1384_v31 = vsub.bf16 1065369472, %v1368_v58  ;;  %v1277_v56 = vmul.bf16 %v1261_v14, %v5670_v51  ;;  %v1276_v12 = vmul.bf16 %v1260_v3, %v5668_v61 }
 0x21f   : > { %v2526_v24 = vpop.f32.mrb[34].mxu1  ;;  %v4699_v49 = vpop.eup %4698  ;;  %v1417_v2 = vsub.bf16 0, %v1385_v42  ;;  %v5727_v55 = vpack.c.bf16 %v4697_v59, %v4695_v5  ;;  %v1460_v51 = vmul.bf16 %v1444_v45, %v980_v57  ;;  %v984_v57 = vmul.bf16 1056980736, %v5534_v26  ;;  %v4522_v59 = vld [vmem:[#allocation9 + $0x220] ss:$8 sps:$4 sm:$0xff]  }
 0x220   : > { %v2634_v63 = vpack.c.bf16 %v2526_v24, %v2522_v40  ;;  %v2528_v20 = vpop.f32.mrb[35].mxu1  ;;  %v4701_v34 = vpop.eup %4700  ;;  %v1461_v18 = vmul.bf16 %v1445_v7, %v981_v47  ;;  %v1416_v30 = vsub.bf16 0, %v1384_v31  ;;  %v4519_v40 = vld [vmem:[#allocation9 + $0x210] ss:$8 sps:$4 sm:$0xff]   ;;  %v1373_v10 = vmul.bf16 %v4699_v49, %v1277_v56  ;;  %v4527_v49 = vld [vmem:[#allocation9 + $0x234] ss:$8 sps:$4 sm:$0xff]  }
 0x221   : > { %v2635_v36 = vpack.c.bf16 %v2528_v20, %v2524_v53  ;;  %v4703_v8 = vpop.eup %4702  ;;  %v1433_v37 = vsel %vm1401_vm10, %v1417_v2, %v1385_v42  ;;  %v4524_v53 = vld [vmem:[#allocation9 + $0x224] ss:$8 sps:$4 sm:$0xff]   ;;  %v1372_v13 = vmul.bf16 %v5705_v19, %v1276_v12  ;;  %v989_v26 = vmul.bf16 1056980736, %v5558_v44 }
 0x222   : > { %v5718_v50 = vadd.bf16 %v5699_v54, %v2634_v63  ;;  %1982 = vmatprep.mubr.bf16.mxu0 %v1461_v18  ;;  %v1449_v22 = vadd.bf16 1065369472, %v1433_v37  ;;  %v1432_v35 = vsel %vm1400_vm11, %v1416_v30, %v1384_v31  ;;  %v5740_v47 = vpack.c.bf16 %v4703_v8, %v4701_v34  ;;  %v4525_v30 = vld [vmem:[#allocation9 + $0x230] ss:$8 sps:$4 sm:$0xff]  }
 0x223   : > { %v5724_v32 = vadd.bf16 %v5703_v28, %v2635_v36  ;;  %1983 = vmatmul.mubr.bf16.vlgmr.msra.gmra.mrb[0].mxu0 %v1460_v51  ;;  %v1152_v63 = vmul.bf16 1065893768, %v5727_v55  ;;  %v1448_v20 = vadd.bf16 1065369472, %v1432_v35  ;;  %v1297_v19 = vmul.bf16 %v5651_v39, %v5651_v39 }
 0x224   : > { %v2737_v27 = vmul.bf16 1060454197, %v5718_v50  ;;  %3621 = vmatpush1.bf16.msra.mxu0 %v4516_v6  ;;  %v1465_v24 = vmul.bf16 %v1449_v22, %v985_v60  ;;  %v1389_v45 = vsub.bf16 1065369472, %v1373_v10  ;;  %v1388_v42 = vsub.bf16 1065369472, %v1372_v13 }
 0x225   : > { %v2738_v46 = vmul.bf16 1060454197, %v5724_v32  ;;  %v2532_v15 = vpop.f32.mrb[36].mxu1  ;;  %3622 = vmatprep.subr.bf16.mxu0 %v4521_v16  ;;  %v1153_v7 = vmul.bf16 1065893768, %v5740_v47  ;;  %v1312_v39 = vsub.bf16 0, %v1296_v17  ;;  %v1464_v12 = vmul.bf16 %v1448_v20, %v984_v57 }
 0x226   : > { %v5735_v61 = vand.u32 2147450879, %v2737_v27  ;;  %v2534_v5 = vpop.f32.mrb[37].mxu1  ;;  %1992 = vmatprep.mubr.bf16.mxu0 %v1465_v24  ;;  %v1168_v34 = vadd.bf16 3216687034, %v1152_v63  ;;  %v1313_v6 = vsub.bf16 0, %v1297_v19 }
 0x227   : > { %v2536_v23 = vpop.f32.mrb[38].mxu1  ;;  %v5748_v62 = vand.u32 2147450879, %v2738_v46  ;;  %v1421_v16 = vsub.bf16 0, %v1389_v45  ;;  %v1420_v43 = vsub.bf16 0, %v1388_v42  ;;  %vm5924_vm0 = vcmp.lt.bf16.partialorder %v2737_v27, 0 }
 0x228   : > { %v2769_v21 = vmul.bf16 1051213480, %v5735_v61  ;;  %v2638_v33 = vpack.c.bf16 %v2536_v23, %v2532_v15  ;;  %v2538_v14 = vpop.f32.mrb[39].mxu1  ;;  %3623 = vmatpush1.bf16.msra.mxu0 %v4519_v40  ;;  %v4530_v15 = vld [vmem:[#allocation9 + $0x244] ss:$8 sps:$4 sm:$0xff]   ;;  %v1184_v17 = vmul.bf16 %v1168_v34, %v5727_v55  ;;  %vm5942_vm1 = vcmp.lt.bf16.partialorder %v2738_v46, 0 }
 0x229   : > { %v2639_v58 = vpack.c.bf16 %v2538_v14, %v2534_v5  ;;  %v2770_v1 = vmul.bf16 1051213480, %v5748_v62  ;;  %3624 = vmatprep.subr.bf16.mxu0 %v4524_v53  ;;  %v1169_v22 = vadd.bf16 3216687034, %v1153_v7  ;;  %v1357_v35 = vmul.bf16 1069105081, %v1312_v39 }
 0x22a   : > { %v2785_v3 = vadd.bf16 1065369472, %v2769_v21  ;;  %v5753_v60 = vadd.bf16 %v5699_v54, %v2638_v33  ;;  %v1437_v10 = vsel %vm5767_vm13, %v1421_v16, %v1389_v45  ;;  %v1360_v21 = vmul.bf16 1069105081, %v1313_v6  ;;  %v4528_v7 = vld [vmem:[#allocation9 + $0x240] ss:$8 sps:$4 sm:$0xff]  }
 0x22b   : > { %v5762_v36 = vadd.bf16 %v5703_v28, %v2639_v58  ;;  %1993 = vmatmul.mubr.bf16.gmra.mrb[4].mxu0 %v1464_v12  ;;  %v2786_v53 = vadd.bf16 1065369472, %v2770_v1  ;;  %v1453_v13 = vadd.bf16 1065369472, %v1437_v10  ;;  %v1436_v33 = vsel %vm5757_vm12, %v1420_v43, %v1388_v42  ;;  %v4533_v42 = vld [vmem:[#allocation9 + $0x254] ss:$8 sps:$4 sm:$0xff]  }
 0x22c   : > { %v2801_v31 = vunpack.c.l.bf16 %v2785_v3  ;;  %v2805_v56 = vunpack.c.h.bf16 %v2785_v3  ;;  %v2741_v8 = vmul.bf16 1060454197, %v5753_v60  ;;  %3625 = vmatpush1.bf16.msra.mxu0 %v4522_v59  ;;  %v1185_v63 = vmul.bf16 %v1169_v22, %v5740_v47  ;;  %v4555_v27 = vld [vmem:[#allocation9 + $0x2d0] ss:$8 sps:$4 sm:$0xff]  }
 0x22d   : > { %v2542_v18 = vpop.f32.mrb[40].mxu1  ;;  %v2742_v51 = vmul.bf16 1060454197, %v5762_v36  ;;  %3626 = vmatprep.subr.bf16.mxu0 %v4527_v49  ;;  %v1469_v14 = vmul.bf16 %v1453_v13, %v989_v26  ;;  %v988_v20 = vmul.bf16 1056980736, %v5555_v25  ;;  %v2802_v59 = vunpack.c.l.bf16 %v2786_v53 }
 0x22e   : > { %4704 = vrcp.f32 %v2801_v31  ;;  %v2544_v37 = vpop.f32.mrb[41].mxu1  ;;  %v5776_v44 = vand.u32 2147450879, %v2741_v8  ;;  %v1452_v58 = vadd.bf16 1065369472, %v1436_v33  ;;  %v2806_v25 = vunpack.c.h.bf16 %v2786_v53 }
 0x22f   : > { %4706 = vrcp.f32 %v2805_v56  ;;  %v2546_v40 = vpop.f32.mrb[42].mxu1  ;;  %v5780_v5 = vand.u32 2147450879, %v2742_v51  ;;  %v1200_v3 = vadd.bf16 1068908470, %v1184_v17  ;;  %2002 = vmatprep.mubr.bf16.mxu0 %v1469_v14  ;;  %vm5952_vm2 = vcmp.lt.bf16.partialorder %v2741_v8, 0 }
 0x230   : > { %v2548_v57 = vpop.f32.mrb[43].mxu1  ;;  %v2773_v23 = vmul.bf16 1051213480, %v5776_v44  ;;  %3627 = vmatpush1.bf16.msra.mxu0 %v4525_v30  ;;  %v2642_v19 = vpack.c.bf16 %v2546_v40, %v2542_v18  ;;  %4708 = vpow.bf16 %v1357_v35  ;;  %v1468_v26 = vmul.bf16 %v1452_v58, %v988_v20  ;;  %v4536_v17 = vld [vmem:[#allocation9 + $0x264] ss:$8 sps:$4 sm:$0xff]  }
 0x231   : > { %v2774_v24 = vmul.bf16 1051213480, %v5780_v5  ;;  %3628 = vmatprep.subr.bf16.mxu0 %v4530_v15  ;;  %v2643_v39 = vpack.c.bf16 %v2548_v57, %v2544_v37  ;;  %4710 = vpow.bf16 %v1360_v21  ;;  %v1201_v2 = vadd.bf16 1068908470, %v1185_v63  ;;  %v4531_v15 = vld [vmem:[#allocation9 + $0x250] ss:$8 sps:$4 sm:$0xff]  }
 0x232   : > { %v2789_v45 = vadd.bf16 1065369472, %v2773_v23  ;;  %v5796_v49 = vadd.bf16 %v5699_v54, %v2642_v19  ;;  %v1216_v18 = vmul.bf16 %v1200_v3, %v5727_v55  ;;  %v3025_v37 = vmul.bf16 %v5735_v61, %v5735_v61  ;;  %v4534_v63 = vld [vmem:[#allocation9 + $0x260] ss:$8 sps:$4 sm:$0xff]   ;;  %v4567_v8 = vld [vmem:[#allocation9 + $0x310] ss:$8 sps:$4 sm:$0xff]  }
 0x233   : > { %v2790_v0 = vadd.bf16 1065369472, %v2774_v24  ;;  %v5799_v34 = vadd.bf16 %v5703_v28, %v2643_v39  ;;  %2003 = vmatmul.mubr.bf16.gmra.mrb[8].mxu0 %v1468_v26  ;;  %4712 = vrcp.f32 %v2802_v59  ;;  %v1217_v57 = vmul.bf16 %v1201_v2, %v5740_v47  ;;  %v4539_v59 = vld [vmem:[#allocation9 + $0x274] ss:$8 sps:$4 sm:$0xff]  }
 0x234   : > { %v2809_v43 = vunpack.c.l.bf16 %v2789_v45  ;;  %3629 = vmatpush1.bf16.msra.mxu0 %v4528_v7  ;;  %v2745_v40 = vmul.bf16 1060454197, %v5796_v49  ;;  %4714 = vrcp.f32 %v2806_v25  ;;  %v1232_v23 = vadd.bf16 3197288082, %v1216_v18 }
 0x235   : > { %v5791_v31 = vpop.f32.mrb[44].mxu1  ;;  %v2810_v35 = vunpack.c.l.bf16 %v2790_v0  ;;  %3630 = vmatprep.subr.bf16.mxu0 %v4533_v42  ;;  %v2746_v10 = vmul.bf16 1060454197, %v5799_v34  ;;  %v2814_v53 = vunpack.c.h.bf16 %v2790_v0  ;;  %v2813_v21 = vunpack.c.h.bf16 %v2789_v45 }
 0x236   : > { %v5793_v56 = vpop.f32.mrb[45].mxu1  ;;  %v5817_v61 = vand.u32 2147450879, %v2745_v40  ;;  %4716 = vrcp.f32 %v2809_v43  ;;  %v1233_v14 = vadd.bf16 3197288082, %v1217_v57  ;;  %v5827_v20 = vcombine.high %v5592_v9, %v5592_v9 }
 0x237   : > { %v5801_v1 = vpop.f32.mrb[46].mxu1  ;;  %v5822_v24 = vand.u32 2147450879, %v2746_v10  ;;  %4718 = vrcp.f32 %v2810_v35  ;;  %v1248_v3 = vmul.bf16 %v1232_v23, %v5727_v55  ;;  %v3041_v45 = vsub.bf16 0, %v3025_v37  ;;  %v4537_v43 = vld [vmem:[#allocation9 + $0x270] ss:$8 sps:$4 sm:$0xff]  }
 0x238   : > { %v4705_v12 = vpop.eup %4704  ;;  %v2646_v6 = vpack.c.bf16 %v5801_v1, %v5791_v31  ;;  %v5806_v30 = vpop.f32.mrb[47].mxu1  ;;  %v2777_v33 = vmul.bf16 1051213480, %v5817_v61  ;;  %3631 = vmatpush1.bf16.msra.mxu0 %v4531_v15  ;;  %4720 = vrcp.f32 %v2814_v53  ;;  %v1249_v39 = vmul.bf16 %v1233_v14, %v5740_v47 }
 0x239   : > { %v4707_v16 = vpop.eup %4706  ;;  %v2778_v19 = vmul.bf16 1051213480, %v5822_v24  ;;  %3632 = vmatprep.subr.bf16.mxu0 %v4536_v17  ;;  %4722 = vrcp.f32 %v2813_v21  ;;  %v1264_v9 = vadd.bf16 1048723074, %v1248_v3  ;;  %v992_v2 = vmul.bf16 1056980736, %v5608_v52 }
 0x23a   : > { %v5811_v22 = vpack.c.bf16 %v4707_v16, %v4705_v12  ;;  %v2793_v7 = vadd.bf16 1065369472, %v2777_v33  ;;  %v1265_v16 = vadd.bf16 1048723074, %v1249_v39  ;;  %v3026_v37 = vmul.bf16 %v5748_v62, %v5748_v62  ;;  %v4542_v17 = vld [vmem:[#allocation9 + $0x284] ss:$8 sps:$4 sm:$0xff]  }
 0x23b   : > { %v4709_v0 = vpop.eup %4708  ;;  %v2794_v42 = vadd.bf16 1065369472, %v2778_v19  ;;  %v3029_v35 = vmul.bf16 %v5776_v44, %v5776_v44  ;;  %v1280_v21 = vmul.bf16 %v1264_v9, %v5727_v55  ;;  %v3058_v14 = vmul.bf16 1069105081, %v3041_v45  ;;  %v4545_v45 = vld [vmem:[#allocation9 + $0x294] ss:$8 sps:$4 sm:$0xff]  }
 0x23c   : > { %v2881_v13 = vmul.bf16 1065893768, %v5811_v22  ;;  %v4711_v25 = vpop.eup %4710  ;;  %v2817_v12 = vunpack.c.l.bf16 %v2793_v7  ;;  %v2821_v18 = vunpack.c.h.bf16 %v2793_v7  ;;  %3633 = vmatpush1.bf16.msra.mxu0 %v4534_v63  ;;  %v2647_v19 = vpack.c.bf16 %v5806_v30, %v5793_v56  ;;  %v4546_v33 = vld [vmem:[#allocation9 + $0x2a0] ss:$8 sps:$4 sm:$0xff]   ;;  %v4549_v52 = vld [vmem:[#allocation9 + $0x2b0] ss:$8 sps:$4 sm:$0xff]  }
 0x23d   : > { %v2818_v57 = vunpack.c.l.bf16 %v2794_v42  ;;  %3634 = vmatprep.subr.bf16.mxu0 %v4539_v59  ;;  %v4713_v53 = vpop.eup %4712  ;;  %v2822_v23 = vunpack.c.h.bf16 %v2794_v42  ;;  %v2692_v55 = vpack.i.b16 %v5827_v20, %v5827_v20  ;;  %v3042_v38 = vsub.bf16 0, %v3026_v37 }
 0x23e   : > { %v2897_v58 = vadd.bf16 3216687034, %v2881_v13  ;;  %4724 = vrcp.f32 %v2817_v12  ;;  %v1281_v13 = vmul.bf16 %v1265_v16, %v5740_v47  ;;  %v4715_v44 = vpop.eup %4714  ;;  %v4540_v47 = vld [vmem:[#allocation9 + $0x280] ss:$8 sps:$4 sm:$0xff]   ;;  %v3030_v59 = vmul.bf16 %v5780_v5, %v5780_v5  ;;  %v4543_v16 = vld [vmem:[#allocation9 + $0x290] ss:$8 sps:$4 sm:$0xff]  }
 0x23f   : > { %4726 = vrcp.f32 %v2821_v18  ;;  %v3045_v39 = vsub.bf16 0, %v3029_v35  ;;  %v993_v56 = vmul.bf16 1056980736, %v5633_v41  ;;  %v5854_v30 = vpack.c.bf16 %v4715_v44, %v4713_v53  ;;  %v4548_v35 = vld [vmem:[#allocation9 + $0x2a4] ss:$8 sps:$4 sm:$0xff]  }
 0x240   : > { %v2913_v26 = vmul.bf16 %v2897_v58, %v5811_v22  ;;  %v1377_v63 = vmul.bf16 %v4711_v25, %v1281_v13  ;;  %v1376_v58 = vmul.bf16 %v4709_v0, %v1280_v21  ;;  %3635 = vmatpush1.bf16.msra.mxu0 %v4537_v43  ;;  %4728 = vrcp.f32 %v2818_v57  ;;  %v4717_v7 = vpop.eup %4716 }
 0x241   : > { %3636 = vmatprep.subr.bf16.mxu0 %v4542_v17  ;;  %4730 = vrcp.f32 %v2822_v23  ;;  %v4719_v42 = vpop.eup %4718  ;;  %v5858_v20 = vcombine.high %v5673_v29, %v5673_v29  ;;  %v5862_v18 = vadd.bf16 %v5703_v28, %v2647_v19  ;;  %v3046_v37 = vsub.bf16 0, %v3030_v59 }
 0x242   : > { %v2929_v15 = vadd.bf16 1068908470, %v2913_v26  ;;  %v1393_v0 = vsub.bf16 1065369472, %v1377_v63  ;;  %v1392_v26 = vsub.bf16 1065369472, %v1376_v58  ;;  %4732 = vpow.bf16 %v3058_v14  ;;  %v4721_v9 = vpop.eup %4720 }
 0x243   : > { %v4723_v43 = vpop.eup %4722  ;;  %v5867_v29 = vrot.slane %v2692_v55, %v5321_v11  ;;  %v3070_v57 = vmul.bf16 1069105081, %v3045_v39  ;;  %v2750_v28 = vmul.bf16 1060454197, %v5862_v18  ;;  %v5872_v23 = vpack.c.bf16 %v4721_v9, %v4719_v42 }
 0x244   : > { %v2945_v62 = vmul.bf16 %v2929_v15, %v5811_v22  ;;  %v1425_v25 = vsub.bf16 0, %v1393_v0  ;;  %v1424_v12 = vsub.bf16 0, %v1392_v26  ;;  %3637 = vmatpush1.bf16.msra.mxu0 %v4540_v47  ;;  %v3061_v15 = vmul.bf16 1069105081, %v3042_v38 }
 0x245   : > { %3638 = vmatprep.subr.bf16.mxu0 %v4545_v45  ;;  %v2882_v41 = vmul.bf16 1065893768, %v5854_v30  ;;  %v5875_v14 = vpack.c.bf16 %v4723_v43, %v4717_v7  ;;  %v5881_v44 = vadd.bf16 %v5699_v54, %v2646_v6  ;;  %v2699_v63 = vpack.i.b16 %v5858_v20, %v5858_v20  ;;  %v4551_v6 = vld [vmem:[#allocation9 + $0x2b4] ss:$8 sps:$4 sm:$0xff]   ;;  %v4552_v43 = vld [vmem:[#allocation9 + $0x2c0] ss:$8 sps:$4 sm:$0xff]  }
 0x246   : > { %v2961_v3 = vadd.bf16 3197288082, %v2945_v62  ;;  %v1441_v17 = vsel %vm1409_vm15, %v1425_v25, %v1393_v0  ;;  %v1440_v53 = vsel %vm5842_vm14, %v1424_v12, %v1392_v26  ;;  %v2721_v19 = vmul.bf16 1056980736, %v5718_v50 }
 0x247   : > { %v1457_v13 = vadd.bf16 1065369472, %v1441_v17  ;;  %v1456_v21 = vadd.bf16 1065369472, %v1440_v53  ;;  %v2722_v47 = vmul.bf16 1056980736, %v5724_v32  ;;  %4734 = vpow.bf16 %v3061_v15 }
 0x248   : > { %v2977_v5 = vmul.bf16 %v2961_v3, %v5811_v22  ;;  %v4725_v48 = vpop.eup %4724  ;;  %3639 = vmatpush1.bf16.msra.mxu0 %v4543_v16  ;;  %v5889_v3 = vand.u32 2147450879, %v2750_v28  ;;  %v3073_v31 = vmul.bf16 1069105081, %v3046_v37  ;;  %v3033_v54 = vmul.bf16 %v5817_v61, %v5817_v61  ;;  %v4557_v53 = vld [vmem:[#allocation9 + $0x2d4] ss:$8 sps:$4 sm:$0xff]  }
 0x249   : > { %v4727_v58 = vpop.eup %4726  ;;  %v1473_v55 = vmul.bf16 %v1457_v13, %v993_v56  ;;  %3640 = vmatprep.subr.bf16.mxu0 %v4548_v35  ;;  %v1472_v1 = vmul.bf16 %v1456_v21, %v992_v2  ;;  %4736 = vpow.bf16 %v3070_v57  ;;  %v3034_v59 = vmul.bf16 %v5822_v24, %v5822_v24  ;;  %v4554_v24 = vld [vmem:[#allocation9 + $0x2c4] ss:$8 sps:$4 sm:$0xff]  }
 0x24a   : > { %v2993_v62 = vadd.bf16 1048723074, %v2977_v5  ;;  %v4729_v38 = vpop.eup %4728  ;;  %v2898_v45 = vadd.bf16 3216687034, %v2882_v41  ;;  %v2886_v7 = vmul.bf16 1065893768, %v5872_v23  ;;  %v5899_v26 = vpack.c.bf16 %v4727_v58, %v4725_v48 }
 0x24b   : > { %2012 = vmatprep.mubr.bf16.mxu0 %v1473_v55  ;;  %v4731_v39 = vpop.eup %4730  ;;  %v2749_v61 = vmul.bf16 1060454197, %v5881_v44  ;;  %v2885_v2 = vmul.bf16 1065893768, %v5875_v14  ;;  %v2782_v56 = vmul.bf16 1051213480, %v5889_v3  ;;  %4738 = vpow.bf16 %v3073_v31 }
 0x24c   : > { %v3009_v0 = vmul.bf16 %v2993_v62, %v5811_v22  ;;  %2013 = vmatmul.mubr.bf16.gmra.mrb[12].mxu0 %v1472_v1  ;;  %v5903_v42 = vpack.c.bf16 %v4731_v39, %v4729_v38  ;;  %v2914_v20 = vmul.bf16 %v2898_v45, %v5854_v30  ;;  %v2902_v9 = vadd.bf16 3216687034, %v2886_v7 }
 0x24d   : > { %3641 = vmatpush1.bf16.msra.mxu0 %v4546_v33  ;;  %v4733_v5 = vpop.eup %4732  ;;  %v2726_v22 = vmul.bf16 1056980736, %v5762_v36  ;;  %v3049_v25 = vsub.bf16 0, %v3033_v54  ;;  %v2901_v12 = vadd.bf16 3216687034, %v2885_v2  ;;  %v3050_v16 = vsub.bf16 0, %v3034_v59 }
 0x24e   : > { %3642 = vmatprep.subr.bf16.mxu0 %v4551_v6  ;;  %v2930_v15 = vadd.bf16 1068908470, %v2914_v20  ;;  %v2918_v37 = vmul.bf16 %v2902_v9, %v5872_v23  ;;  %v2890_v35 = vmul.bf16 1065893768, %v5903_v42  ;;  %v5910_v57 = vmul.bf16 %v4733_v5, %v3009_v0 }
 0x24f   : > { %v5914_v17 = vand.u32 2147450879, %v2749_v61  ;;  %v2917_v13 = vmul.bf16 %v2901_v12, %v5875_v14  ;;  %v2889_v21 = vmul.bf16 1065893768, %v5899_v26  ;;  %v2798_v41 = vadd.bf16 1065369472, %v2782_v56 }
 0x250   : > { %v2946_v48 = vmul.bf16 %v2930_v15, %v5854_v30  ;;  %v2934_v62 = vadd.bf16 1068908470, %v2918_v37  ;;  %v2906_v33 = vadd.bf16 3216687034, %v2890_v35  ;;  %v3082_v58 = vmul.bf16 1069105081, %v3049_v25 }
 0x251   : > { %3643 = vmatpush1.bf16.msra.mxu0 %v4549_v52  ;;  %v5920_v55 = vrot.slane %v2699_v63, %v5321_v11  ;;  %v2933_v31 = vadd.bf16 1068908470, %v2917_v13  ;;  %v2905_v54 = vadd.bf16 3216687034, %v2889_v21  ;;  %v3085_v6 = vmul.bf16 1069105081, %v3050_v16 }
 0x252   : > { %3644 = vmatprep.subr.bf16.mxu0 %v4554_v24  ;;  %v2962_v38 = vadd.bf16 3197288082, %v2946_v48  ;;  %v2950_v59 = vmul.bf16 %v2934_v62, %v5872_v23  ;;  %v2922_v45 = vmul.bf16 %v2906_v33, %v5903_v42  ;;  %v3121_v7 = vsub.bf16 1065369472, %v5910_v57  ;;  %v4735_v52 = vpop.eup %4734  ;;  %v4560_v25 = vld [vmem:[#allocation9 + $0x2e4] ss:$8 sps:$4 sm:$0xff]  }
 0x253   : > { %v2781_v39 = vmul.bf16 1051213480, %v5914_v17  ;;  %v2949_v63 = vmul.bf16 %v2933_v31, %v5875_v14  ;;  %v2921_v0 = vmul.bf16 %v2905_v54, %v5899_v26  ;;  %v2826_v2 = vunpack.c.l.bf16 %v2798_v41  ;;  %v4558_v15 = vld [vmem:[#allocation9 + $0x2e0] ss:$8 sps:$4 sm:$0xff]   ;;  %v4563_v21 = vld [vmem:[#allocation9 + $0x2f4] ss:$8 sps:$4 sm:$0xff]  }
 0x254   : > { %v2978_v56 = vmul.bf16 %v2962_v38, %v5854_v30  ;;  %v2966_v24 = vadd.bf16 3197288082, %v2950_v59  ;;  %v2938_v20 = vadd.bf16 1068908470, %v2922_v45  ;;  %v4737_v9 = vpop.eup %4736  ;;  %4740 = vpow.bf16 %v3082_v58 }
 0x255   : > { %3645 = vmatpush1.bf16.msra.mxu0 %v4552_v43  ;;  %v2830_v5 = vunpack.c.h.bf16 %v2798_v41  ;;  %v2965_v12 = vadd.bf16 3197288082, %v2949_v63  ;;  %v2937_v16 = vadd.bf16 1068908470, %v2921_v0  ;;  %4742 = vpow.bf16 %v3085_v6 }
 0x256   : > { %3646 = vmatprep.subr.bf16.mxu0 %v4557_v53  ;;  %v2994_v37 = vadd.bf16 1048723074, %v2978_v56  ;;  %v2982_v35 = vmul.bf16 %v2966_v24, %v5872_v23  ;;  %v2954_v57 = vmul.bf16 %v2938_v20, %v5903_v42  ;;  %v3153_v43 = vsub.bf16 0, %v3121_v7  ;;  %v4739_v41 = vpop.eup %4738  ;;  %v4561_v20 = vld [vmem:[#allocation9 + $0x2f0] ss:$8 sps:$4 sm:$0xff]  }
 0x257   : > { %v2797_v13 = vadd.bf16 1065369472, %v2781_v39  ;;  %v2981_v62 = vmul.bf16 %v2965_v12, %v5875_v14  ;;  %v2953_v33 = vmul.bf16 %v2937_v16, %v5899_v26  ;;  %4744 = vrcp.f32 %v2826_v2  ;;  %v4566_v12 = vld [vmem:[#allocation9 + $0x304] ss:$8 sps:$4 sm:$0xff]  }
 0x258   : > { %v3010_v53 = vmul.bf16 %v2994_v37, %v5854_v30  ;;  %v2998_v31 = vadd.bf16 1048723074, %v2982_v35  ;;  %v2970_v54 = vadd.bf16 3197288082, %v2954_v57  ;;  %4746 = vrcp.f32 %v2830_v5 }
 0x259   : > { %3647 = vmatpush1.bf16.msra.mxu0 %v4555_v27  ;;  %v2997_v59 = vadd.bf16 1048723074, %v2981_v62  ;;  %v2969_v45 = vadd.bf16 3197288082, %v2953_v33  ;;  %v3169_v27 = vsel %vm5924_vm0, %v3153_v43, %v3121_v7  ;;  %vm5963_vm3 = vcmp.lt.bf16.partialorder %v2742_v51, 0 }
 0x25a   : > { %3648 = vmatprep.subr.bf16.mxu0 %v4560_v25  ;;  %v3106_v39 = vmul.bf16 %v4735_v52, %v3010_v53  ;;  %v3014_v2 = vmul.bf16 %v2998_v31, %v5872_v23  ;;  %v2986_v30 = vmul.bf16 %v2970_v54, %v5903_v42  ;;  %v2825_v7 = vunpack.c.l.bf16 %v2797_v13 }
 0x25b   : > { %v3013_v24 = vmul.bf16 %v2997_v59, %v5875_v14  ;;  %v2985_v52 = vmul.bf16 %v2969_v45, %v5899_v26  ;;  %v2829_v37 = vunpack.c.h.bf16 %v2797_v13  ;;  %v3037_v6 = vmul.bf16 %v5914_v17, %v5914_v17  ;;  %v4564_v59 = vld [vmem:[#allocation9 + $0x300] ss:$8 sps:$4 sm:$0xff]  }
 0x25c   : > { %v3122_v5 = vsub.bf16 1065369472, %v3106_v39  ;;  %v3110_v25 = vmul.bf16 %v4739_v41, %v3014_v2  ;;  %v3002_v1 = vadd.bf16 1048723074, %v2986_v30  ;;  %4748 = vrcp.f32 %v2825_v7  ;;  %v4569_v30 = vld [vmem:[#allocation9 + $0x314] ss:$8 sps:$4 sm:$0xff]  }
 0x25d   : > { %v2595_v48 = vpop.f32.mrb[48].mxu1  ;;  %3649 = vmatpush1.bf16.msra.mxu0 %v4558_v15  ;;  %v3109_v16 = vmul.bf16 %v4737_v9, %v3013_v24  ;;  %v3185_v15 = vadd.bf16 1065369472, %v3169_v27  ;;  %v5972_v62 = vadd.bf16 1048723074, %v2985_v52  ;;  %4750 = vrcp.f32 %v2829_v37 }
 0x25e   : > { %v2597_v58 = vpop.f32.mrb[49].mxu1  ;;  %3650 = vmatprep.subr.bf16.mxu0 %v4563_v21  ;;  %v3154_v35 = vsub.bf16 0, %v3122_v5  ;;  %v3018_v13 = vmul.bf16 %v3002_v1, %v5903_v42  ;;  %v2725_v50 = vmul.bf16 1056980736, %v5753_v60  ;;  %v3038_v1 = vmul.bf16 %v5889_v3, %v5889_v3 }
 0x25f   : > { %v2599_v38 = vpop.f32.mrb[50].mxu1  ;;  %v4741_v51 = vpop.eup %4740  ;;  %v3125_v9 = vsub.bf16 1065369472, %v3109_v16  ;;  %v6005_v16 = vsub.bf16 0, %v3037_v6  ;;  %vm6016_vm4 = vcmp.lt.bf16.partialorder %v2745_v40, 0  ;;  %vm6023_vm5 = vcmp.lt.bf16.partialorder %v2746_v10, 0 }
 0x260   : > { %v2636_v63 = vpack.c.bf16 %v2599_v38, %v2595_v48  ;;  %v2601_v0 = vpop.f32.mrb[51].mxu1  ;;  %v3126_v48 = vsub.bf16 1065369472, %v3110_v25  ;;  %v3170_v21 = vsel %vm5942_vm1, %v3154_v35, %v3122_v5  ;;  %v4743_v53 = vpop.eup %4742  ;;  %vm6125_vm6 = vcmp.lt.bf16.partialorder %v2750_v28, 0 }
 0x261   : > { %v2637_v56 = vpack.c.bf16 %v2601_v0, %v2597_v58  ;;  %3651 = vmatpush1.bf16.msra.mxu0 %v4561_v20  ;;  %v3186_v58 = vadd.bf16 1065369472, %v3170_v21  ;;  %v4745_v38 = vpop.eup %4744  ;;  %v3157_v39 = vsub.bf16 0, %v3125_v9  ;;  %v3201_v0 = vmul.bf16 %v3185_v15, %v2721_v19 }
 0x262   : > { %v5959_v23 = vadd.bf16 %v5867_v29, %v2636_v63  ;;  %3693 = vmatprep.subr.bf16.mxu0 %v4566_v12  ;;  %v3158_v54 = vsub.bf16 0, %v3126_v48  ;;  %v4747_v42 = vpop.eup %4746  ;;  %v3114_v25 = vmul.bf16 %v4743_v53, %v3018_v13  ;;  %v2729_v19 = vmul.bf16 1056980736, %v5796_v49 }
 0x263   : > { %v5968_v14 = vadd.bf16 %v5920_v55, %v2637_v56  ;;  %v3202_v2 = vmul.bf16 %v3186_v58, %v2722_v47  ;;  %v3173_v20 = vsel %vm5952_vm2, %v3157_v39, %v3125_v9  ;;  %v3017_v47 = vmul.bf16 %v5972_v62, %v5899_v26  ;;  %v4572_v26 = vld [vmem:[#allocation9 + $0x324] ss:$8 sps:$4 sm:$0xff]   ;;  %v4570_v9 = vld [vmem:[#allocation9 + $0x320] ss:$8 sps:$4 sm:$0xff]  }
 0x264   : > { %v2739_v57 = vmul.bf16 1060454197, %v5959_v23  ;;  %v3174_v56 = vsel %vm5963_vm3, %v3158_v54, %v3126_v48  ;;  %v6007_v60 = vpack.c.bf16 %v4747_v42, %v4745_v38  ;;  %v3189_v37 = vadd.bf16 1065369472, %v3173_v20  ;;  %v4575_v42 = vld [vmem:[#allocation9 + $0x334] ss:$8 sps:$4 sm:$0xff]  }
 0x265   : > { %v2740_v43 = vmul.bf16 1060454197, %v5968_v14  ;;  %v2605_v41 = vpop.f32.mrb[52].mxu1  ;;  %v3190_v52 = vadd.bf16 1065369472, %v3174_v56  ;;  %3652 = vmatprep.mubr.bf16.mxu0 %v3202_v2  ;;  %v3054_v58 = vsub.bf16 0, %v3038_v1 }
 0x266   : > { %v5978_v33 = vand.u32 2147450879, %v2739_v57  ;;  %v2607_v63 = vpop.f32.mrb[53].mxu1  ;;  %3653 = vmatmul.mubr.bf16.vlgmr.msra.gmra.mrb[0].mxu0 %v3201_v0  ;;  %v3130_v62 = vsub.bf16 1065369472, %v3114_v25  ;;  %v4749_v6 = vpop.eup %4748  ;;  %v3205_v10 = vmul.bf16 %v3189_v37, %v2725_v50  ;;  %vm6151_vm7 = vcmp.lt.bf16.partialorder %v2749_v61, 0 }
 0x267   : > { %v5983_v31 = vand.u32 2147450879, %v2740_v43  ;;  %v2609_v24 = vpop.f32.mrb[54].mxu1  ;;  %v3206_v46 = vmul.bf16 %v3190_v52, %v2726_v22  ;;  %3694 = vmatpush1.bf16.msra.mxu0 %v4564_v59  ;;  %v2730_v22 = vmul.bf16 1056980736, %v5799_v34  ;;  %vm6194_vm8 = vcmp.lt.bf16.partialorder %v2739_v57, 0 }
 0x268   : > { %v2771_v45 = vmul.bf16 1051213480, %v5978_v33  ;;  %v2611_v5 = vpop.f32.mrb[55].mxu1  ;;  %v2640_v32 = vpack.c.bf16 %v2609_v24, %v2605_v41  ;;  %3695 = vmatprep.subr.bf16.mxu0 %v4569_v30  ;;  %v3113_v41 = vmul.bf16 %v4741_v51, %v3017_v47  ;;  %v3094_v59 = vmul.bf16 1069105081, %v6005_v16 }
 0x269   : > { %v2772_v27 = vmul.bf16 1051213480, %v5983_v31  ;;  %3662 = vmatprep.mubr.bf16.mxu0 %v3206_v46  ;;  %v2641_v48 = vpack.c.bf16 %v2611_v5, %v2607_v63  ;;  %v4751_v63 = vpop.eup %4750  ;;  %v2894_v2 = vmul.bf16 1065893768, %v6007_v60  ;;  %v4573_v50 = vld [vmem:[#allocation9 + $0x330] ss:$8 sps:$4 sm:$0xff]  }
 0x26a   : > { %v2787_v17 = vadd.bf16 1065369472, %v2771_v45  ;;  %v6010_v3 = vadd.bf16 %v5867_v29, %v2640_v32  ;;  %v3162_v45 = vsub.bf16 0, %v3130_v62  ;;  %v3129_v51 = vsub.bf16 1065369472, %v3113_v41 }
 0x26b   : > { %v2788_v15 = vadd.bf16 1065369472, %v2772_v27  ;;  %v6029_v40 = vadd.bf16 %v5920_v55, %v2641_v48  ;;  %3696 = vmatpush1.bf16.msra.mxu0 %v4567_v8  ;;  %v6044_v25 = vpack.c.bf16 %v4751_v63, %v4749_v6  ;;  %v4578_v16 = vld [vmem:[#allocation9 + $0x344] ss:$8 sps:$4 sm:$0xff]   ;;  %v2910_v48 = vadd.bf16 3216687034, %v2894_v2 }
 0x26c   : > { %v2803_v7 = vunpack.c.l.bf16 %v2787_v17  ;;  %v2807_v12 = vunpack.c.h.bf16 %v2787_v17  ;;  %v2743_v54 = vmul.bf16 1060454197, %v6010_v3  ;;  %3697 = vmatprep.subr.bf16.mxu0 %v4572_v26  ;;  %v3178_v56 = vsel %vm6023_vm5, %v3162_v45, %v3130_v62  ;;  %v4579_v63 = vld [vmem:[#allocation9 + $0x350] ss:$8 sps:$4 sm:$0xff]   ;;  %v4584_v2 = vld [vmem:[#allocation9 + $0x364] ss:$8 sps:$4 sm:$0xff]  }
 0x26d   : > { %v2615_v35 = vpop.f32.mrb[56].mxu1  ;;  %v2804_v34 = vunpack.c.l.bf16 %v2788_v15  ;;  %v2808_v30 = vunpack.c.h.bf16 %v2788_v15  ;;  %v2744_v27 = vmul.bf16 1060454197, %v6029_v40  ;;  %v3161_v24 = vsub.bf16 0, %v3129_v51  ;;  %v4605_v57 = vld [vmem:[#allocation9 + $0x3d4] ss:$8 sps:$4 sm:$0xff]  }
 0x26e   : > { %4752 = vrcp.f32 %v2803_v7  ;;  %v6012_v21 = vpop.f32.mrb[57].mxu1  ;;  %v6034_v0 = vand.u32 2147450879, %v2743_v54  ;;  %v3097_v17 = vmul.bf16 1069105081, %v3054_v58  ;;  %3663 = vmatmul.mubr.bf16.gmra.mrb[4].mxu0 %v3205_v10  ;;  %v3027_v7 = vmul.bf16 %v5978_v33, %v5978_v33 }
 0x26f   : > { %4754 = vrcp.f32 %v2807_v12  ;;  %v2619_v13 = vpop.f32.mrb[58].mxu1  ;;  %v3194_v20 = vadd.bf16 1065369472, %v3178_v56  ;;  %3698 = vmatpush1.bf16.msra.mxu0 %v4570_v9  ;;  %v6048_v32 = vand.u32 2147450879, %v2744_v27  ;;  %v3177_v47 = vsel %vm6016_vm4, %v3161_v24, %v3129_v51 }
 0x270   : > { %v2621_v38 = vpop.f32.mrb[59].mxu1  ;;  %v2644_v39 = vpack.c.bf16 %v2619_v13, %v2615_v35  ;;  %v2775_v52 = vmul.bf16 1051213480, %v6034_v0  ;;  %4756 = vrcp.f32 %v2804_v34  ;;  %3699 = vmatprep.subr.bf16.mxu0 %v4575_v42  ;;  %v3193_v46 = vadd.bf16 1065369472, %v3177_v47 }
 0x271   : > { %v2645_v1 = vpack.c.bf16 %v2621_v38, %v6012_v21  ;;  %v3210_v12 = vmul.bf16 %v3194_v20, %v2730_v22  ;;  %4758 = vrcp.f32 %v2808_v30  ;;  %v2776_v37 = vmul.bf16 1051213480, %v6048_v32  ;;  %v4576_v35 = vld [vmem:[#allocation9 + $0x340] ss:$8 sps:$4 sm:$0xff]   ;;  %v4581_v38 = vld [vmem:[#allocation9 + $0x354] ss:$8 sps:$4 sm:$0xff]  }
 0x272   : > { %v6042_v5 = vadd.bf16 %v5867_v29, %v2644_v39  ;;  %v2733_v21 = vmul.bf16 1056980736, %v5881_v44  ;;  %v3028_v33 = vmul.bf16 %v5983_v31, %v5983_v31  ;;  %v2791_v36 = vadd.bf16 1065369472, %v2775_v52 }
 0x273   : > { %3672 = vmatprep.mubr.bf16.mxu0 %v3210_v12  ;;  %4760 = vpow.bf16 %v3094_v59  ;;  %3700 = vmatpush1.bf16.msra.mxu0 %v4573_v50  ;;  %v2792_v41 = vadd.bf16 1065369472, %v2776_v37  ;;  %v2893_v53 = vmul.bf16 1065893768, %v6044_v25  ;;  %v3209_v31 = vmul.bf16 %v3193_v46, %v2729_v19 }
 0x274   : > { %v2747_v26 = vmul.bf16 1060454197, %v6042_v5  ;;  %4762 = vpow.bf16 %v3097_v17  ;;  %3701 = vmatprep.subr.bf16.mxu0 %v4578_v16  ;;  %v6076_v6 = vadd.bf16 %v5920_v55, %v2645_v1  ;;  %v6080_v45 = vsub.bf16 0, %v3027_v7 }
 0x275   : > { %v6053_v8 = vpop.f32.mrb[60].mxu1  ;;  %v2812_v51 = vunpack.c.l.bf16 %v2792_v41  ;;  %v2816_v39 = vunpack.c.h.bf16 %v2792_v41  ;;  %v2926_v34 = vmul.bf16 %v2910_v48, %v6007_v60  ;;  %v6084_v42 = vsub.bf16 0, %v3028_v33 }
 0x276   : > { %v6057_v15 = vpop.f32.mrb[61].mxu1  ;;  %v6068_v13 = vand.u32 2147450879, %v2747_v26  ;;  %v2811_v49 = vunpack.c.l.bf16 %v2791_v36  ;;  %3673 = vmatmul.mubr.bf16.gmra.mrb[8].mxu0 %v3209_v31  ;;  %v2734_v30 = vmul.bf16 1056980736, %v5862_v18  ;;  %v2815_v47 = vunpack.c.h.bf16 %v2791_v36 }
 0x277   : > { %v6064_v22 = vpop.f32.mrb[62].mxu1  ;;  %4764 = vrcp.f32 %v2812_v51  ;;  %3702 = vmatpush1.bf16.msra.mxu0 %v4576_v35  ;;  %v2748_v56 = vmul.bf16 1060454197, %v6076_v6  ;;  %v2909_v24 = vadd.bf16 3216687034, %v2893_v53  ;;  %v3031_v51 = vmul.bf16 %v6034_v0, %v6034_v0 }
 0x278   : > { %v4753_v62 = vpop.eup %4752  ;;  %v6078_v59 = vpop.f32.mrb[63].mxu1  ;;  %v2779_v19 = vmul.bf16 1051213480, %v6068_v13  ;;  %v2723_v17 = vmul.bf16 1056980736, %v5959_v23  ;;  %4766 = vrcp.f32 %v2816_v39  ;;  %3703 = vmatprep.subr.bf16.mxu0 %v4581_v38  ;;  %v2648_v38 = vpack.c.bf16 %v6064_v22, %v6053_v8 }
 0x279   : > { %v4755_v9 = vpop.eup %4754  ;;  %v2724_v50 = vmul.bf16 1056980736, %v5968_v14  ;;  %v6093_v1 = vand.u32 2147450879, %v2748_v56  ;;  %v2942_v7 = vadd.bf16 1068908470, %v2926_v34  ;;  %4768 = vrcp.f32 %v2811_v49 }
 0x27a   : > { %v6071_v58 = vpack.c.bf16 %v4755_v9, %v4753_v62  ;;  %v2795_v20 = vadd.bf16 1065369472, %v2779_v19  ;;  %v4757_v12 = vpop.eup %4756  ;;  %v3064_v16 = vmul.bf16 1069105081, %v6080_v45  ;;  %v3067_v37 = vmul.bf16 1069105081, %v6084_v42 }
 0x27b   : > { %v4759_v35 = vpop.eup %4758  ;;  %3704 = vmatpush1.bf16.msra.mxu0 %v4579_v63  ;;  %v2780_v62 = vmul.bf16 1051213480, %v6093_v1  ;;  %v2958_v33 = vmul.bf16 %v2942_v7, %v6007_v60  ;;  %v2925_v36 = vmul.bf16 %v2909_v24, %v6044_v25  ;;  %v4582_v9 = vld [vmem:[#allocation9 + $0x360] ss:$8 sps:$4 sm:$0xff]   ;;  %v4587_v31 = vld [vmem:[#allocation9 + $0x374] ss:$8 sps:$4 sm:$0xff]   ;;  %v2649_v45 = vpack.c.bf16 %v6078_v59, %v6057_v15 }
 0x27c   : > { %v2883_v10 = vmul.bf16 1065893768, %v6071_v58  ;;  %v2819_v48 = vunpack.c.l.bf16 %v2795_v20  ;;  %v2823_v53 = vunpack.c.h.bf16 %v2795_v20  ;;  %3705 = vmatprep.subr.bf16.mxu0 %v4584_v2  ;;  %4770 = vrcp.f32 %v2815_v47  ;;  %v4585_v0 = vld [vmem:[#allocation9 + $0x370] ss:$8 sps:$4 sm:$0xff]   ;;  %v4590_v47 = vld [vmem:[#allocation9 + $0x384] ss:$8 sps:$4 sm:$0xff]  }
 0x27d   : > { %v2796_v39 = vadd.bf16 1065369472, %v2780_v62  ;;  %v2974_v63 = vadd.bf16 3197288082, %v2958_v33  ;;  %v6110_v49 = vpack.c.bf16 %v4759_v35, %v4757_v12  ;;  %v2941_v19 = vadd.bf16 1068908470, %v2925_v36 }
 0x27e   : > { %v2899_v52 = vadd.bf16 3216687034, %v2883_v10  ;;  %v6107_v34 = vpop.eup %4760  ;;  %v6113_v2 = vadd.bf16 %v5867_v29, %v2648_v38  ;;  %4772 = vrcp.f32 %v2819_v48  ;;  %v6130_v62 = vsub.bf16 0, %v3031_v51 }
 0x27f   : > { %v4763_v8 = vpop.eup %4762  ;;  %v2820_v22 = vunpack.c.l.bf16 %v2796_v39  ;;  %v2824_v15 = vunpack.c.h.bf16 %v2796_v39  ;;  %v2990_v59 = vmul.bf16 %v2974_v63, %v6007_v60  ;;  %3706 = vmatpush1.bf16.msra.mxu0 %v4582_v9  ;;  %4774 = vrcp.f32 %v2823_v53  ;;  %v4588_v9 = vld [vmem:[#allocation9 + $0x380] ss:$8 sps:$4 sm:$0xff]  }
 0x280   : > { %v2915_v46 = vmul.bf16 %v2899_v52, %v6071_v58  ;;  %v3032_v52 = vmul.bf16 %v6048_v32, %v6048_v32  ;;  %v2957_v20 = vmul.bf16 %v2941_v19, %v6044_v25  ;;  %3707 = vmatprep.subr.bf16.mxu0 %v4587_v31  ;;  %v2751_v12 = vmul.bf16 1060454197, %v6113_v2 }
 0x281   : > { %v4765_v7 = vpop.eup %4764  ;;  %4776 = vrcp.f32 %v2820_v22  ;;  %v3006_v29 = vadd.bf16 1048723074, %v2990_v59  ;;  %v2884_v28 = vmul.bf16 1065893768, %v6110_v49  ;;  %v2728_v53 = vmul.bf16 1056980736, %v6029_v40 }
 0x282   : > { %v2931_v41 = vadd.bf16 1068908470, %v2915_v46  ;;  %v6121_v46 = vadd.bf16 %v5920_v55, %v2649_v45  ;;  %v4767_v35 = vpop.eup %4766  ;;  %4778 = vrcp.f32 %v2824_v15  ;;  %v2973_v33 = vadd.bf16 3197288082, %v2957_v20 }
 0x283   : > { %4780 = vpow.bf16 %v3064_v16  ;;  %v3022_v36 = vmul.bf16 %v3006_v29, %v6007_v60  ;;  %v6135_v55 = vand.u32 2147450879, %v2751_v12  ;;  %3708 = vmatpush1.bf16.msra.mxu0 %v4585_v0  ;;  %v6139_v31 = vpack.c.bf16 %v4767_v35, %v4765_v7  ;;  %v4593_v16 = vld [vmem:[#allocation9 + $0x394] ss:$8 sps:$4 sm:$0xff]   ;;  %v4596_v0 = vld [vmem:[#allocation9 + $0x3a4] ss:$8 sps:$4 sm:$0xff]  }
 0x284   : > { %v2947_v10 = vmul.bf16 %v2931_v41, %v6071_v58  ;;  %v4769_v41 = vpop.eup %4768  ;;  %v3048_v38 = vsub.bf16 0, %v3032_v52  ;;  %v2989_v45 = vmul.bf16 %v2973_v33, %v6044_v25  ;;  %3709 = vmatprep.subr.bf16.mxu0 %v4590_v47  ;;  %v3035_v60 = vmul.bf16 %v6068_v13, %v6068_v13 }
 0x285   : > { %v3118_v51 = vmul.bf16 %v4763_v8, %v3022_v36  ;;  %v2783_v39 = vmul.bf16 1051213480, %v6135_v55  ;;  %v2752_v63 = vmul.bf16 1060454197, %v6121_v46  ;;  %v3076_v22 = vmul.bf16 1069105081, %v6130_v62 }
 0x286   : > { %v2963_v24 = vadd.bf16 3197288082, %v2947_v10  ;;  %v4591_v10 = vld [vmem:[#allocation9 + $0x390] ss:$8 sps:$4 sm:$0xff]   ;;  %v3036_v15 = vmul.bf16 %v6093_v1, %v6093_v1  ;;  %v3005_v59 = vadd.bf16 1048723074, %v2989_v45  ;;  %4782 = vpow.bf16 %v3067_v37 }
 0x287   : > { %v3134_v13 = vsub.bf16 1065369472, %v3118_v51  ;;  %v2799_v8 = vadd.bf16 1065369472, %v2783_v39  ;;  %3710 = vmatpush1.bf16.msra.mxu0 %v4588_v9  ;;  %v2900_v20 = vadd.bf16 3216687034, %v2884_v28 }
 0x288   : > { %v2979_v32 = vmul.bf16 %v2963_v24, %v6071_v58  ;;  %v4771_v24 = vpop.eup %4770  ;;  %v3079_v47 = vmul.bf16 1069105081, %v3048_v38  ;;  %v3021_v7 = vmul.bf16 %v3005_v59, %v6044_v25  ;;  %v6160_v1 = vand.u32 2147450879, %v2752_v63  ;;  %3711 = vmatprep.subr.bf16.mxu0 %v4593_v16  ;;  %v4599_v51 = vld [vmem:[#allocation9 + $0x3b4] ss:$8 sps:$4 sm:$0xff]  }
 0x289   : > { %v2888_v61 = vmul.bf16 1065893768, %v6139_v31  ;;  %v4773_v29 = vpop.eup %4772  ;;  %v6163_v35 = vsub.bf16 0, %v3035_v60  ;;  %v2827_v42 = vunpack.c.l.bf16 %v2799_v8  ;;  %v2831_v37 = vunpack.c.h.bf16 %v2799_v8  ;;  %v4594_v60 = vld [vmem:[#allocation9 + $0x3a0] ss:$8 sps:$4 sm:$0xff]  }
 0x28a   : > { %v2995_v19 = vadd.bf16 1048723074, %v2979_v32  ;;  %v3166_v32 = vsub.bf16 0, %v3134_v13  ;;  %v4775_v33 = vpop.eup %4774  ;;  %v6165_v36 = vpack.c.bf16 %v4771_v24, %v4769_v41  ;;  %v6167_v9 = vsub.bf16 0, %v3036_v15 }
 0x28b   : > { %v3117_v25 = vmul.bf16 %v6107_v34, %v3021_v7  ;;  %v2784_v28 = vmul.bf16 1051213480, %v6160_v1  ;;  %v4777_v38 = vpop.eup %4776  ;;  %4784 = vrcp.f32 %v2827_v42  ;;  %3712 = vmatpush1.bf16.msra.mxu0 %v4591_v10  ;;  %v2916_v39 = vmul.bf16 %v2900_v20, %v6110_v49  ;;  %v4602_v42 = vld [vmem:[#allocation9 + $0x3c4] ss:$8 sps:$4 sm:$0xff]  }
 0x28c   : > { %v3011_v45 = vmul.bf16 %v2995_v19, %v6071_v58  ;;  %v3182_v16 = vsel %vm6125_vm6, %v3166_v32, %v3134_v13  ;;  %v4779_v41 = vpop.eup %4778  ;;  %4786 = vrcp.f32 %v2831_v37  ;;  %3713 = vmatprep.subr.bf16.mxu0 %v4596_v0  ;;  %v2904_v34 = vadd.bf16 3216687034, %v2888_v61  ;;  %v4597_v61 = vld [vmem:[#allocation9 + $0x3b0] ss:$8 sps:$4 sm:$0xff]  }
 0x28d   : > { %v3198_v59 = vadd.bf16 1065369472, %v3182_v16  ;;  %v3133_v15 = vsub.bf16 1065369472, %v3117_v25  ;;  %4788 = vpow.bf16 %v3079_v47  ;;  %v6175_v24 = vpack.c.bf16 %v4779_v41, %v4777_v38 }
 0x28e   : > { %v3039_v58 = vmul.bf16 %v6135_v55, %v6135_v55  ;;  %v2800_v48 = vadd.bf16 1065369472, %v2784_v28  ;;  %v4781_v19 = vpop.eup %4780  ;;  %v3091_v10 = vmul.bf16 1069105081, %v6167_v9  ;;  %v2932_v20 = vadd.bf16 1068908470, %v2916_v39 }
 0x28f   : > { %v3214_v13 = vmul.bf16 %v3198_v59, %v2734_v30  ;;  %v3165_v8 = vsub.bf16 0, %v3133_v15  ;;  %v6182_v7 = vmul.bf16 %v4781_v19, %v3011_v45  ;;  %v6184_v32 = vpack.c.bf16 %v4775_v33, %v4773_v29  ;;  %3714 = vmatpush1.bf16.msra.mxu0 %v4594_v60  ;;  %v4600_v29 = vld [vmem:[#allocation9 + $0x3c0] ss:$8 sps:$4 sm:$0xff]  }
 0x290   : > { %v2828_v0 = vunpack.c.l.bf16 %v2800_v48  ;;  %v2832_v47 = vunpack.c.h.bf16 %v2800_v48  ;;  %3715 = vmatprep.subr.bf16.mxu0 %v4599_v51  ;;  %v2948_v37 = vmul.bf16 %v2932_v20, %v6110_v49  ;;  %v2920_v18 = vmul.bf16 %v2904_v34, %v6139_v31 }
 0x291   : > { %3682 = vmatprep.mubr.bf16.mxu0 %v3214_v13  ;;  %v3181_v55 = vsel %vm6151_vm7, %v3165_v8, %v3133_v15  ;;  %v2887_v30 = vmul.bf16 1065893768, %v6165_v36  ;;  %v3055_v25 = vsub.bf16 0, %v3039_v58  ;;  %v2892_v33 = vmul.bf16 1065893768, %v6175_v24  ;;  %v4783_v28 = vpop.eup %4782 }
 0x292   : > { %v3197_v9 = vadd.bf16 1065369472, %v3181_v55  ;;  %4790 = vrcp.f32 %v2828_v0  ;;  %v2964_v38 = vadd.bf16 3197288082, %v2948_v37  ;;  %v2936_v45 = vadd.bf16 1068908470, %v2920_v18 }
 0x293   : > { %4792 = vrcp.f32 %v2832_v47  ;;  %v2903_v16 = vadd.bf16 3216687034, %v2887_v30  ;;  %v3123_v60 = vsub.bf16 1065369472, %v6182_v7  ;;  %3716 = vmatpush1.bf16.msra.mxu0 %v4597_v61  ;;  %v2908_v39 = vadd.bf16 3216687034, %v2892_v33 }
 0x294   : > { %v3213_v51 = vmul.bf16 %v3197_v9, %v2733_v21  ;;  %v2891_v41 = vmul.bf16 1065893768, %v6184_v32  ;;  %4794 = vpow.bf16 %v3076_v22  ;;  %3717 = vmatprep.subr.bf16.mxu0 %v4602_v42  ;;  %v2980_v59 = vmul.bf16 %v2964_v38, %v6110_v49  ;;  %v4608_v42 = vld [vmem:[#allocation9 + $0x3e4] ss:$8 sps:$4 sm:$0xff]  }
 0x295   : > { %v2952_v15 = vmul.bf16 %v2936_v45, %v6139_v31  ;;  %v2919_v34 = vmul.bf16 %v2903_v16, %v6165_v36  ;;  %v4785_v58 = vpop.eup %4784  ;;  %v3088_v48 = vmul.bf16 1069105081, %v6163_v35  ;;  %v3100_v44 = vmul.bf16 1069105081, %v3055_v25  ;;  %v4603_v35 = vld [vmem:[#allocation9 + $0x3d0] ss:$8 sps:$4 sm:$0xff]  }
 0x296   : > { %3683 = vmatmul.mubr.bf16.gmra.mrb[12].mxu0 %v3213_v51  ;;  %v2924_v21 = vmul.bf16 %v2908_v39, %v6175_v24  ;;  %v2907_v19 = vadd.bf16 3216687034, %v2891_v41  ;;  %v4787_v13 = vpop.eup %4786  ;;  %4796 = vpow.bf16 %v3091_v10  ;;  %v2996_v62 = vadd.bf16 1048723074, %v2980_v59  ;;  %v4606_v16 = vld [vmem:[#allocation9 + $0x3e0] ss:$8 sps:$4 sm:$0xff]  }
 0x297   : > { %v2968_v22 = vadd.bf16 3197288082, %v2952_v15  ;;  %v2935_v8 = vadd.bf16 1068908470, %v2919_v34  ;;  %v3155_v20 = vsub.bf16 0, %v3123_v60  ;;  %vm6211_vm9 = vcmp.lt.bf16.partialorder %v2740_v43, 0  ;;  %3718 = vmatpush1.bf16.msra.mxu0 %v4600_v29 }
 0x298   : > { %v6215_v0 = vpack.c.bf16 %v4787_v13, %v4785_v58  ;;  %v2940_v47 = vadd.bf16 1068908470, %v2924_v21  ;;  %v2923_v61 = vmul.bf16 %v2907_v19, %v6184_v32  ;;  %v4789_v55 = vpop.eup %4788  ;;  %v3040_v10 = vmul.bf16 %v6160_v1, %v6160_v1  ;;  %3719 = vmatprep.subr.bf16.mxu0 %v4605_v57  ;;  %v4611_v59 = vld [vmem:[#allocation9 + $0x3f4] ss:$8 sps:$4 sm:$0xff]  }
 0x299   : > { %v3012_v37 = vmul.bf16 %v2996_v62, %v6110_v49  ;;  %v2984_v43 = vmul.bf16 %v2968_v22, %v6139_v31  ;;  %v2951_v18 = vmul.bf16 %v2935_v8, %v6165_v36  ;;  %4798 = vpow.bf16 %v3088_v48 }
 0x29a   : > { %v2956_v30 = vmul.bf16 %v2940_v47, %v6175_v24  ;;  %v2939_v9 = vadd.bf16 1068908470, %v2923_v61  ;;  %v2895_v25 = vmul.bf16 1065893768, %v6215_v0  ;;  %4800 = vpow.bf16 %v3100_v44 }
 0x29b   : > { %v3108_v29 = vmul.bf16 %v4783_v28, %v3012_v37  ;;  %v3000_v33 = vadd.bf16 1048723074, %v2984_v43  ;;  %v2967_v38 = vadd.bf16 3197288082, %v2951_v18  ;;  %v3171_v1 = vsel %vm6194_vm8, %v3155_v20, %v3123_v60  ;;  %3720 = vmatpush1.bf16.msra.mxu0 %v4603_v35 }
 0x29c   : > { %v4791_v45 = vpop.eup %4790  ;;  %vm6229_vm10 = vcmp.lt.bf16.partialorder %v2744_v27, 0  ;;  %v2972_v51 = vadd.bf16 3197288082, %v2956_v30  ;;  %v2955_v39 = vmul.bf16 %v2939_v9, %v6184_v32  ;;  %v2911_v41 = vadd.bf16 3216687034, %v2895_v25  ;;  %3721 = vmatprep.subr.bf16.mxu0 %v4608_v42 }
 0x29d   : > { %v4793_v57 = vpop.eup %4792  ;;  %v3056_v28 = vsub.bf16 0, %v3040_v10  ;;  %v3124_v15 = vsub.bf16 1065369472, %v3108_v29  ;;  %v3016_v52 = vmul.bf16 %v3000_v33, %v6139_v31  ;;  %v2983_v60 = vmul.bf16 %v2967_v38, %v6165_v36  ;;  %v4609_v27 = vld [vmem:[#allocation9 + $0x3f0] ss:$8 sps:$4 sm:$0xff]  }
 0x29e   : > { %v6236_v34 = vpack.c.bf16 %v4793_v57, %v4791_v45  ;;  %v2988_v58 = vmul.bf16 %v2972_v51, %v6175_v24  ;;  %v2971_v48 = vadd.bf16 3197288082, %v2955_v39  ;;  %v2927_v44 = vmul.bf16 %v2911_v41, %v6215_v0 }
 0x29f   : > { %v3187_v21 = vadd.bf16 1065369472, %v3171_v1  ;;  %v3156_v19 = vsub.bf16 0, %v3124_v15  ;;  %v3112_v13 = vmul.bf16 %v4789_v55, %v3016_v52  ;;  %v2999_v62 = vadd.bf16 1048723074, %v2983_v60  ;;  %v4795_v22 = vpop.eup %4794  ;;  %3722 = vmatpush1.bf16.msra.mxu0 %v4606_v16 }
 0x2a0   : > { %v3004_v8 = vadd.bf16 1048723074, %v2988_v58  ;;  %v2987_v20 = vmul.bf16 %v2971_v48, %v6184_v32  ;;  %v2896_v31 = vmul.bf16 1065893768, %v6236_v34  ;;  %v2943_v35 = vadd.bf16 1068908470, %v2927_v44  ;;  %3723 = vmatprep.subr.bf16.mxu0 %v4611_v59 }
 0x2a1   : > { %v3103_v47 = vmul.bf16 1069105081, %v3056_v28  ;;  %v3172_v61 = vsel %vm6211_vm9, %v3156_v19, %v3124_v15  ;;  %v3128_v10 = vsub.bf16 1065369472, %v3112_v13  ;;  %v3015_v42 = vmul.bf16 %v2999_v62, %v6165_v36  ;;  %v4797_v37 = vpop.eup %4796 }
 0x2a2   : > { %v3188_v43 = vadd.bf16 1065369472, %v3172_v61  ;;  %v3020_v55 = vmul.bf16 %v3004_v8, %v6175_v24  ;;  %v3003_v18 = vadd.bf16 1048723074, %v2987_v20  ;;  %v2912_v30 = vadd.bf16 3216687034, %v2896_v31 }
 0x2a3   : > { %v3203_v9 = vmul.bf16 %v3187_v21, %v2723_v17  ;;  %v3160_v25 = vsub.bf16 0, %v3128_v10  ;;  %v3111_v29 = vmul.bf16 %v4795_v22, %v3015_v42  ;;  %v2959_v33 = vmul.bf16 %v2943_v35, %v6215_v0  ;;  %3724 = vmatpush1.bf16.msra.mxu0 %v4609_v27 }
 0x2a4   : > { %v3204_v7 = vmul.bf16 %v3188_v43, %v2724_v50  ;;  %v3116_v38 = vmul.bf16 %v4797_v37, %v3020_v55  ;;  %v3019_v36 = vmul.bf16 %v3003_v18, %v6184_v32  ;;  %v2928_v45 = vmul.bf16 %v2912_v30, %v6236_v34  ;;  %v4799_v1 = vpop.eup %4798  ;;  %v3814_v30 = vld [vmem:[%s6355_s4] sm:$0x3] }
 0x2a5   : > { %4802 = vpow.bf16 %v3103_v47  ;;  %v3176_v24 = vsel %vm6229_vm10, %v3160_v25, %v3128_v10  ;;  %v3127_v23 = vsub.bf16 1065369472, %v3111_v29  ;;  %v2975_v17 = vadd.bf16 3197288082, %v2959_v33  ;;  %v4801_v16 = vpop.eup %4800 }
 0x2a6   : > { %3725 = vmatprep.mubr.bf16.mxu0 %v3204_v7  ;;  %v3192_v51 = vadd.bf16 1065369472, %v3176_v24  ;;  %v3132_v39 = vsub.bf16 1065369472, %v3116_v38  ;;  %v3115_v41 = vmul.bf16 %v4799_v1, %v3019_v36  ;;  %v2944_v57 = vadd.bf16 1068908470, %v2928_v45 }
 0x2a7   : > { %vm3143_vm11 = vcmp.lt.bf16.partialorder %v2743_v54, 0  ;;  %3726 = vmatmul.mubr.bf16.vlgmr.msra.gmra.mrb[0].mxu0 %v3203_v9  ;;  %v3159_v14 = vsub.bf16 0, %v3127_v23  ;;  %v2991_v50 = vmul.bf16 %v2975_v17, %v6215_v0  ;;  %vm3148_vm12 = vcmp.lt.bf16.partialorder %v2748_v56, 0 }
 0x2a8   : > { %v3208_v32 = vmul.bf16 %v3192_v51, %v2728_v53  ;;  %v3164_v49 = vsub.bf16 0, %v3132_v39  ;;  %v3131_v28 = vsub.bf16 1065369472, %v3115_v41  ;;  %v2960_v59 = vmul.bf16 %v2944_v57, %v6236_v34 }
 0x2a9   : > { %v3175_v15 = vsel %vm3143_vm11, %v3159_v14, %v3127_v23  ;;  %v3007_v52 = vadd.bf16 1048723074, %v2991_v50  ;;  %v2727_v48 = vmul.bf16 1056980736, %v6010_v3  ;;  %v2732_v44 = vmul.bf16 1056980736, %v6076_v6 }
 0x2aa   : > { %3735 = vmatprep.mubr.bf16.mxu0 %v3208_v32  ;;  %v3191_v60 = vadd.bf16 1065369472, %v3175_v15  ;;  %v3180_v27 = vsel %vm3148_vm12, %v3164_v49, %v3132_v39  ;;  %v3163_v54 = vsub.bf16 0, %v3131_v28  ;;  %v2976_v58 = vadd.bf16 3197288082, %v2960_v59 }
 0x2ab   : > { %v3196_v40 = vadd.bf16 1065369472, %v3180_v27  ;;  %v3023_v53 = vmul.bf16 %v3007_v52, %v6215_v0  ;;  %vm3147_vm13 = vcmp.lt.bf16.partialorder %v2747_v26, 0  ;;  %v2731_v0 = vmul.bf16 1056980736, %v6042_v5 }
 0x2ac   : > { %v2992_v21 = vmul.bf16 %v2976_v58, %v6236_v34  ;;  %v3207_v56 = vmul.bf16 %v3191_v60, %v2727_v48  ;;  %v3179_v62 = vsel %vm3147_vm13, %v3163_v54, %v3131_v28  ;;  %vm3151_vm14 = vcmp.lt.bf16.partialorder %v2751_v12, 0 }
 0x2ad   : > { %v3212_v19 = vmul.bf16 %v3196_v40, %v2732_v44  ;;  %v3119_v13 = vmul.bf16 %v4801_v16, %v3023_v53  ;;  %v3195_v6 = vadd.bf16 1065369472, %v3179_v62  ;;  %vm3152_vm15 = vcmp.lt.bf16.partialorder %v2752_v63, 0 }
 0x2ae   : > { %v3008_v22 = vadd.bf16 1048723074, %v2992_v21  ;;  %v2735_v55 = vmul.bf16 1056980736, %v6113_v2  ;;  %v3822_v12 = vsub.s32 1, %v5304_v4  ;;  %v3819_v63 = vrot.slane %v3814_v30, %v5321_v11 }
 0x2af   : > { %3736 = vmatmul.mubr.bf16.gmra.mrb[4].mxu0 %v3207_v56  ;;  %v3135_v8 = vsub.bf16 1065369472, %v3119_v13  ;;  %v3211_v26 = vmul.bf16 %v3195_v6, %v2731_v0 }
 0x2b0   : > { %v4803_v20 = vpop.eup %4802  ;;  %3745 = vmatprep.mubr.bf16.mxu0 %v3212_v19  ;;  %v3024_v3 = vmul.bf16 %v3008_v22, %v6236_v34  ;;  %v2736_v34 = vmul.bf16 1056980736, %v6121_v46  ;;  %v3823_v9 = vrot.slane %v3814_v30, %v3822_v12 }
 0x2b1   : > { %v3167_v35 = vsub.bf16 0, %v3135_v8 }
 0x2b2   : > { %v3120_v31 = vmul.bf16 %v4803_v20, %v3024_v3 }
 0x2b3   : > { %v3183_v10 = vsel %vm3151_vm14, %v3167_v35, %v3135_v8 }
 0x2b4   : > { %v3136_v47 = vsub.bf16 1065369472, %v3120_v31  ;;  %v3199_v43 = vadd.bf16 1065369472, %v3183_v10 }
 0x2b6   : > { %v3168_v61 = vsub.bf16 0, %v3136_v47  ;;  %v3215_v18 = vmul.bf16 %v3199_v43, %v2735_v55 }
 0x2b7   : > { %3746 = vmatmul.mubr.bf16.gmra.mrb[8].mxu0 %v3211_v26 }
 0x2b8   : > { %v3184_v42 = vsel %vm3152_vm15, %v3168_v61, %v3136_v47 }
 0x2b9   : > { %v3200_v37 = vadd.bf16 1065369472, %v3184_v42 }
 0x2bb   : > { %v3216_v5 = vmul.bf16 %v3200_v37, %v2736_v34 }
 0x2bd   : > { %3755 = vmatprep.mubr.bf16.mxu0 %v3216_v5 }
 0x2bf   : > { %3756 = vmatmul.mubr.bf16.gmra.mrb[12].mxu0 %v3215_v18 }
 0x37a   : > { %v3727_v25 = vpop.f32.mrb[0].mxu0 }
 0x37b   : > { %v3826_v46 = vadd.f32 %v3819_v63, %v3727_v25  ;;  %v3729_v29 = vpop.f32.mrb[1].mxu0 }
 0x37c   : > { %v3827_v33 = vadd.f32 %v3823_v9, %v3729_v29  ;;  %v3731_v7 = vpop.f32.mrb[2].mxu0 }
 0x37d   : > { %3842 = vst [vmem:[%s6283_s14] sm:$0xff] %v3826_v46  ;;  %v3828_v4 = vadd.f32 %v3819_v63, %v3731_v7  ;;  %v3733_v2 = vpop.f32.mrb[3].mxu0 }
 0x37e   : > { %3843 = vst [vmem:[%s6283_s14 + $0x8] sm:$0xff] %v3827_v33  ;;  %v3829_v11 = vadd.f32 %v3823_v9, %v3733_v2 }
 0x37f   : > { %3844 = vst [vmem:[%s6283_s14 + $0x10] sm:$0xff] %v3828_v4 }
 0x380   : > { %3845 = vst [vmem:[%s6283_s14 + $0x18] sm:$0xff] %v3829_v11 }
 0x382   : > { %v3737_v38 = vpop.f32.mrb[4].mxu0 }
 0x383   : > { %v3830_v36 = vadd.f32 %v3819_v63, %v3737_v38  ;;  %v3739_v45 = vpop.f32.mrb[5].mxu0 }
 0x384   : > { %v3831_v1 = vadd.f32 %v3823_v9, %v3739_v45  ;;  %v3741_v24 = vpop.f32.mrb[6].mxu0 }
 0x385   : > { %3846 = vst [vmem:[%s6283_s14 + $0x20] sm:$0xff] %v3830_v36  ;;  %v3832_v23 = vadd.f32 %v3819_v63, %v3741_v24  ;;  %v3743_v17 = vpop.f32.mrb[7].mxu0 }
 0x386   : > { %3847 = vst [vmem:[%s6283_s14 + $0x28] sm:$0xff] %v3831_v1  ;;  %v3833_v16 = vadd.f32 %v3823_v9, %v3743_v17 }
 0x387   : > { %3848 = vst [vmem:[%s6283_s14 + $0x30] sm:$0xff] %v3832_v23 }
 0x388   : > { %3849 = vst [vmem:[%s6283_s14 + $0x38] sm:$0xff] %v3833_v16 }
 0x38a   : > { %v3747_v51 = vpop.f32.mrb[8].mxu0 }
 0x38b   : > { %v3834_v39 = vadd.f32 %v3819_v63, %v3747_v51  ;;  %v3749_v41 = vpop.f32.mrb[9].mxu0 }
 0x38c   : > { %v3835_v57 = vadd.f32 %v3823_v9, %v3749_v41  ;;  %v3751_v14 = vpop.f32.mrb[10].mxu0 }
 0x38d   : > { %3850 = vst [vmem:[%s6283_s14 + $0x40] sm:$0xff] %v3834_v39  ;;  %v3836_v50 = vadd.f32 %v3819_v63, %v3751_v14  ;;  %v3753_v32 = vpop.f32.mrb[11].mxu0 }
 0x38e   : > { %3851 = vst [vmem:[%s6283_s14 + $0x48] sm:$0xff] %v3835_v57  ;;  %v3837_v49 = vadd.f32 %v3823_v9, %v3753_v32 }
 0x38f   : > { %3852 = vst [vmem:[%s6283_s14 + $0x50] sm:$0xff] %v3836_v50 }
 0x390   : > { %3853 = vst [vmem:[%s6283_s14 + $0x58] sm:$0xff] %v3837_v49 }
 0x392   : > { %v3757_v28 = vpop.f32.mrb[12].mxu0 }
 0x393   : > { %v3838_v59 = vadd.f32 %v3819_v63, %v3757_v28  ;;  %v3759_v15 = vpop.f32.mrb[13].mxu0 }
 0x394   : > { %v3839_v52 = vadd.f32 %v3823_v9, %v3759_v15  ;;  %v3761_v60 = vpop.f32.mrb[14].mxu0 }
 0x395   : > { %3854 = vst [vmem:[%s6283_s14 + $0x60] sm:$0xff] %v3838_v59  ;;  %v3840_v27 = vadd.f32 %v3819_v63, %v3761_v60  ;;  %v3763_v54 = vpop.f32.mrb[15].mxu0 }
 0x396   : > { %3855 = vst [vmem:[%s6283_s14 + $0x68] sm:$0xff] %v3839_v52  ;;  %v3841_v58 = vadd.f32 %v3823_v9, %v3763_v54 }
 0x397   : > { %3856 = vst [vmem:[%s6283_s14 + $0x70] sm:$0xff] %v3840_v27 }
 0x398   : > { %3857 = vst [vmem:[%s6283_s14 + $0x78] sm:$0xff] %v3841_v58 }
 0x399   : > { %4932 = shalt.err (!%p4929_p4)
}
 0x39a   : > { %s4933_s9 = scalar_lea.hbm %s6303_s30, 2048  ;;  %s4937_s26 = scalar_lea.hbm %s6356_s5, 8192 }
 0x39b   : > { %p4934_p9 = scmp.ne.s32.totalorder %s6303_s30, %s4933_s9  ;;  %p4938_p8 = scmp.lt.u32.totalorder %s6303_s30, %s6356_s5 }
 0x39c   : > { %p4939_p12 = scmp.lt.u32.totalorder %s4937_s26, %s4933_s9  ;;  %p4941_p0 = scmp.lt.u32.totalorder %s4933_s9, %s6303_s30 }
 0x39d   : > { %p4935_p13 = pnand %p4934_p9, %p5184_p5 }
 0x39e   : > { %p4940_p6 = por %p4939_p12, %p4938_p8 }
 0x39f   : > { %p4936_p10 = pneg %p4935_p13 }
 0x3a0   : > { %p4942_p3 = por %p4941_p0, %p4940_p6 }
 0x3a2   : > { %p4943_p7 = pnand %p4942_p3, %p4936_p10 }
 0x3a4   : > { %4946 = shalt.err (!%p4943_p7)
}
 0x3a5   : > { %s5005_s11 = smov 256   ;;  %s5006_s15 = smov 16  }
 0x3a6   : > { %4338 = dma.vmem_to_hbm [thread:$0]  (%p5184_p5), %s6305_s13, 2048, %s6303_s30, %s3859_s22, %s5005_s11, %s5005_s11, %s5006_s15  }
 0x3a7 PF: > { %p4365_p11 = scmp.ge.s32.totalorder %s4993_s21, 2  ;;  %s3888_s16 = sand.u32 1, %s4981_s18  }
 0x3a8   : > { %p6412_p2 = scmp.ne.s32.totalorder %s6361_s25, 0  ;;  %s3889_s12 = scalar_lea.sflag [#allocation5], %s3888_s16 }
 0x3aa   : > { %p4355_p1 = pnand %p4365_p11, %p6412_p2 }
 0x3ac   : > { %4976 = dma.done.wait (!%p4355_p1), %s3889_s12, 2048  }
 0x3ad   : > { %4978 = vsyncadd (!%p4355_p1), %s3889_s12, 4294965248  ;;  %p20_p4 = scmp.ge.s32.totalorder %s5170_s28, 6   ;;  %s6413_s18 = smov %s4985_s19 }
 0x3ae   : > { %s6414_s19 = smov %s4989_s20  ;;  %s6415_s20 = smov %s5180_s27 }
 0x3af   : > { %s6416_s21 = smov %s5170_s28  ;;  %22 = sbr.rel (!%p20_p4) target bundleno = 7 (0x7), region = 101 }
 0x3b6   :  { %3894 = vsyncpa [#allocation4], 1 }
 0x3b7   :  { %3896 = vsyncpa [#allocation4 + $0x1], 1 }
 0x3b8   :  { %3897 = vsyncpa [#allocation7], 1 }
 0x3b9   :  { %3898 = vsyncpa [#allocation10], 1 }
 0x3ba   :  { %3899 = vsyncpa [#allocation5], 1 }
 0x3bb   :  { %3901 = vsyncpa [#allocation5 + $0x1], 1 }

</bundles_post_ra>
